<compile_context>
chip_gen: v5e
topology: v5e:2x2
jax: 0.10.0
libtpu: 0.0.40
codegen_flags: <defaults>
</compile_context>

<pallas_src>
import functools
import math

import numpy as np
import jax
import jax.numpy as jnp
from jax import lax
from jax.experimental import pallas as pl
from jax.experimental.pallas import tpu as pltpu


# ----------------------------- in-kernel helpers -----------------------------

def _layer_norm_rows(x, gamma, beta, eps=1e-5):
    """LayerNorm over the last dim; single-pass f32 stats (var = E[x^2]-mu^2)."""
    xf = x.astype(jnp.float32)
    mu = jnp.mean(xf, axis=-1, keepdims=True)
    m2 = jnp.mean(xf * xf, axis=-1, keepdims=True)
    var = m2 - mu * mu
    return ((xf - mu) * lax.rsqrt(var + eps)
            * gamma.astype(jnp.float32) + beta.astype(jnp.float32))


def _erf_poly(x):
    """erf via Abramowitz & Stegun 7.1.26 (|err| <= 1.5e-7).

    Uses only exp + polynomial VPU/EUP ops, so it lowers on every TPU
    generation without relying on an erf lowering rule.
    """
    a1, a2, a3, a4, a5 = (0.254829592, -0.284496736, 1.421413741,
                          -1.453152027, 1.061405429)
    p = 0.3275911
    sgn = jnp.where(x < 0.0, -1.0, 1.0)
    z = jnp.abs(x)
    t = 1.0 / (1.0 + p * z)
    poly = ((((a5 * t + a4) * t + a3) * t + a2) * t + a1) * t
    return sgn * (1.0 - poly * jnp.exp(-z * z))


def _gelu_exact(x):
    # nn.GELU default (erf-based), numerically exact to ~1e-7.
    return 0.5 * x * (1.0 + _erf_poly(x * (1.0 / math.sqrt(2.0))))


# ----------------------------- Pallas kernel ----------------------------------

def swin_block_kernel(x_ref, ln1_ref, wqkv_ref, bqkv_ref, rpb_ref,
                      wproj_ref, bproj_ref, ln2_ref, w1_ref, b1_ref,
                      w2_ref, b2_ref, o_ref, ctx_ref,
                      *, num_heads, head_dim, win_tokens, softmax_approx):
    """One slab of WB whole windows flattened to (R = WB*N, C) rows.

    Computes the full Swin block for those rows (in window layout):
        x1  = x + proj(W-MSA(norm1(x)))          # first residual fused
        out = x1 + fc2(gelu(fc1(norm2(x1))))     # MLP fused (per-row op)
    window_reverse is a pure row permutation, applied once outside the kernel.
    """
    x = x_ref[...]                                    # (R, C) raw tokens
    R, C = x.shape
    N = win_tokens
    wb = R // N
    w_dtype = wqkv_ref.dtype                          # MXU compute dtype

    # ---------------- norm1 + QKV: one (R, C) x (C, 3C) MXU matmul -----------
    xn = _layer_norm_rows(x, ln1_ref[0:1, :], ln1_ref[1:2, :])
    qkv = jnp.dot(xn.astype(w_dtype), wqkv_ref[...],
                  preferred_element_type=jnp.float32)
    qkv = qkv + bqkv_ref[...].astype(jnp.float32)     # (R, 3C); qk scale is
                                                      # pre-folded into W_q/b_q

    # ---------------- window-batched attention, per head ---------------------
    # Each head's (N, hd) q/k/v blocks are contiguous column slices of qkv.
    # Head-merged context is assembled in a (R, C) VMEM scratch so the output
    # projection below runs as ONE full-K (K=C) MXU matmul.
    for h in range(num_heads):
        lo = h * head_dim
        hi = lo + head_dim
        qh = qkv[:, lo:hi].astype(w_dtype).reshape(wb, N, head_dim)
        kh = qkv[:, C + lo:C + hi].astype(w_dtype).reshape(wb, N, head_dim)
        vh = qkv[:, 2 * C + lo:2 * C + hi].astype(w_dtype).reshape(wb, N, head_dim)

        s = jnp.einsum('wnd,wmd->wnm', qh, kh,
                       preferred_element_type=jnp.float32)        # (wb, N, N)
        s = s + rpb_ref[h:h + 1, :, :].astype(jnp.float32)        # rel-pos bias
        s = s - jnp.max(s, axis=-1, keepdims=True)
        p = jnp.exp(s)
        denom = jnp.sum(p, axis=-1, keepdims=True)
        if softmax_approx:
            p = p * pl.reciprocal(denom, approx=True)             # EUP slot
        else:
            p = p / denom                                         # exact (f32)

        ctx = jnp.einsum('wnm,wmd->wnd', p.astype(w_dtype), vh,
                         preferred_element_type=jnp.float32)      # (wb, N, hd)
        ctx_ref[:, lo:hi] = ctx.reshape(R, head_dim)              # head-merge

    # ------------- single full-K output projection + first residual ----------
    x1 = (x.astype(jnp.float32)
          + jnp.dot(ctx_ref[...].astype(w_dtype), wproj_ref[...],
                    preferred_element_type=jnp.float32)
          + bproj_ref[...].astype(jnp.float32))                   # (R, C)

    # ----------------------- norm2 + MLP + second residual --------------------
    xn2 = _layer_norm_rows(x1, ln2_ref[0:1, :], ln2_ref[1:2, :])
    hid = jnp.dot(xn2.astype(w_dtype), w1_ref[...],
                  preferred_element_type=jnp.float32)
    hid = _gelu_exact(hid + b1_ref[...].astype(jnp.float32))
    y = jnp.dot(hid.astype(w_dtype), w2_ref[...],                 # fc2 in the
                preferred_element_type=jnp.float32)               # weight dtype
    y = y + b2_ref[...].astype(jnp.float32)

    o_ref[...] = (x1 + y).astype(o_ref.dtype)


# ----------------------------- JAX glue (reshapes) ----------------------------

def window_partition(x, ws):
    B, H, W, C = x.shape
    x = x.reshape(B, H // ws, ws, W // ws, ws, C)
    return x.transpose(0, 1, 3, 2, 4, 5).reshape(-1, ws, ws, C)


def window_reverse(windows, ws, H, W):
    B = windows.shape[0] // ((H // ws) * (W // ws))
    x = windows.reshape(B, H // ws, W // ws, ws, ws, -1)
    return x.transpose(0, 1, 3, 2, 4, 5).reshape(B, H, W, -1)


def relative_position_bias(table, window_size, num_heads):
    ws = window_size
    coords = np.stack(np.meshgrid(np.arange(ws), np.arange(ws), indexing="ij"))
    coords_flatten = coords.reshape(2, -1)
    rel = coords_flatten[:, :, None] - coords_flatten[:, None, :]
    rel = rel.transpose(1, 2, 0).astype(np.int32)
    rel[:, :, 0] += ws - 1
    rel[:, :, 1] += ws - 1
    rel[:, :, 0] *= 2 * ws - 1
    rel_idx = rel.sum(-1)                                     # (N, N) static
    N = ws * ws
    rpb = table[rel_idx.reshape(-1)].reshape(N, N, num_heads)
    return jnp.transpose(rpb, (2, 0, 1))                      # (nh, N, N)


def _pick_window_batch(nW, N, rows_target):
    """Windows per grid step: divides nW, targets ~rows_target rows,
    keeps >=2 grid steps when possible, prefers (WB*N) % 8 == 0."""
    cap = max(1, min(nW, max(1, rows_target // N)))
    if nW >= 2:
        cap = min(cap, nW // 2)          # >=2 steps: megacore + pipelining
    divisors = [d for d in range(cap, 0, -1) if nW % d == 0]
    for d in divisors:
        if (d * N) % 8 == 0:             # sublane-aligned row slab
            return d
    # TODO(synk): for ws=7 (N=49) with odd nW, pad N up to a multiple of 8
    # with a masked softmax instead of falling back to an unaligned slab.
    return divisors[0]


def _vmem_limit_bytes(R, C, hidden, num_heads, N, wb, w_itemsize, x_itemsize):
    f32 = 4
    weights = (2 * C + C * 3 * C + 3 * C + num_heads * N * N + C * C + C
               + 2 * C + C * hidden + hidden + hidden * C + C) * w_itemsize
    io_slabs = 2 * 2 * R * C * x_itemsize                 # in+out, double-buf
    interm = (R * 3 * C                                    # qkv (f32)
              + 2 * wb * num_heads * N * N                 # scores + probs
              + 2 * R * C                                  # ctx scratch + x1
              + R * hidden) * f32                          # MLP hidden
    est = 2 * weights + io_slabs + interm + (4 << 20)      # weights double-buf
    # TODO(synk): clamp to <=48 MiB on v7x (64 MiB physical VMEM per core).
    return int(min(100 << 20, max(32 << 20, est)))


def swin_block_forward(x, params, *, hw_shape, window_size, num_heads,
                       rows_target=512):
    """x: (B, L, C).  hw_shape is STATIC (baked into the jitted partial)."""
    B, L, C = x.shape
    H, W = hw_shape
    assert L == H * W, "input feature has wrong size"
    assert H % window_size == 0 and W % window_size == 0
    # TODO(synk): pad_r/pad_b > 0 and shift_size > 0 paths not implemented.

    ws = window_size
    N = ws * ws
    nW = B * (H // ws) * (W // ws)
    hd = C // num_heads
    hidden = params["w1"].shape[1]
    out_dtype = x.dtype

    # Fold the qk scale into the Q columns of wqkv / bqkv (one cheap transform
    # outside the kernel removes an (R, C) VPU multiply per grid step).
    scale = hd ** (-0.5)
    col_scale = jnp.concatenate([jnp.full((C,), scale, jnp.float32),
                                 jnp.ones((2 * C,), jnp.float32)])
    wqkv = (params["wqkv"].astype(jnp.float32) * col_scale).astype(params["wqkv"].dtype)
    bqkv = (params["bqkv"].astype(jnp.float32) * col_scale).astype(params["bqkv"].dtype)

    rpb = relative_position_bias(params["rpb_table"], ws, num_heads)

    # Window partition of the *raw* tokens: norm1 is per-token and is applied
    # inside the kernel, and the raw window block doubles as the residual.
    xw = window_partition(x.reshape(B, H, W, C), ws).reshape(nW * N, C)

    WB = _pick_window_batch(nW, N, rows_target)
    R = WB * N
    grid = (nW // WB,)

    softmax_approx = (params["wqkv"].dtype == jnp.bfloat16)
    vmem_limit = _vmem_limit_bytes(
        R, C, hidden, num_heads, N, WB,
        jnp.dtype(params["wqkv"].dtype).itemsize, jnp.dtype(x.dtype).itemsize)

    out = pl.pallas_call(
        functools.partial(swin_block_kernel, num_heads=num_heads, head_dim=hd,
                          win_tokens=N, softmax_approx=softmax_approx),
        out_shape=jax.ShapeDtypeStruct((nW * N, C), out_dtype),
        grid=grid,
        in_specs=[
            pl.BlockSpec((R, C), lambda i: (i, 0)),               # x windows
            pl.BlockSpec((2, C), lambda i: (0, 0)),               # ln1 g/b
            pl.BlockSpec((C, 3 * C), lambda i: (0, 0)),           # wqkv
            pl.BlockSpec((1, 3 * C), lambda i: (0, 0)),           # bqkv
            pl.BlockSpec((num_heads, N, N), lambda i: (0, 0, 0)),  # rel-pos bias
            pl.BlockSpec((C, C), lambda i: (0, 0)),               # wproj
            pl.BlockSpec((1, C), lambda i: (0, 0)),               # bproj
            pl.BlockSpec((2, C), lambda i: (0, 0)),               # ln2 g/b
            pl.BlockSpec((C, hidden), lambda i: (0, 0)),          # w1
            pl.BlockSpec((1, hidden), lambda i: (0, 0)),          # b1
            pl.BlockSpec((hidden, C), lambda i: (0, 0)),          # w2
            pl.BlockSpec((1, C), lambda i: (0, 0)),               # b2
        ],
        out_specs=pl.BlockSpec((R, C), lambda i: (i, 0)),
        scratch_shapes=[pltpu.VMEM((R, C), jnp.float32)],          # head-merge ctx
        compiler_params=pltpu.CompilerParams(
            dimension_semantics=("parallel",),
            vmem_limit_bytes=vmem_limit),
    )(xw, params["ln1"], wqkv, bqkv, rpb, params["wproj"], params["bproj"],
      params["ln2"], params["w1"], params["b1"], params["w2"], params["b2"])

    # The fused kernel already produced the full block output per row in window
    # layout; a single window_reverse (pure row permutation) restores (B, L, C).
    return window_reverse(out.reshape(nW, ws, ws, C), ws, H, W).reshape(B, L, C)


# ----------------------------- pure-JAX reference ------------------------------

def swin_block_ref(x, hw_shape, params, *, window_size, num_heads):
    x = x.astype(jnp.float32)
    params = jax.tree_util.tree_map(lambda p: jnp.asarray(p, jnp.float32), params)
    B, L, C = x.shape
    H, W = hw_shape
    ws = window_size
    N = ws * ws
    hd = C // num_heads
    scale = hd ** (-0.5)

    def ln(y, g, b, eps=1e-5):
        mu = y.mean(-1, keepdims=True)
        var = ((y - mu) ** 2).mean(-1, keepdims=True)
        return (y - mu) / jnp.sqrt(var + eps) * g + b

    shortcut = x
    xn = ln(x, params["ln1"][0], params["ln1"][1])
    xw = window_partition(xn.reshape(B, H, W, C), ws).reshape(-1, N, C)
    qkv = xw @ params["wqkv"] + params["bqkv"][0]
    q, k, v = qkv[..., :C], qkv[..., C:2 * C], qkv[..., 2 * C:]

    def heads(t):
        return t.reshape(-1, N, num_heads, hd).transpose(0, 2, 1, 3)

    q, k, v = heads(q) * scale, heads(k), heads(v)
    rpb = relative_position_bias(params["rpb_table"], ws, num_heads)
    attn = jnp.einsum("whnd,whmd->whnm", q, k) + rpb[None]
    attn = jax.nn.softmax(attn, axis=-1)
    o = jnp.einsum("whnm,whmd->whnd", attn, v)
    o = o.transpose(0, 2, 1, 3).reshape(-1, N, C)
    o = o @ params["wproj"] + params["bproj"][0]
    o = window_reverse(o.reshape(-1, ws, ws, C), ws, H, W).reshape(B, L, C)
    x1 = shortcut + o
    xn2 = ln(x1, params["ln2"][0], params["ln2"][1])
    h = xn2 @ params["w1"] + params["b1"][0]
    h = 0.5 * h * (1.0 + lax.erf(h / math.sqrt(2.0)))
    y = h @ params["w2"] + params["b2"][0]
    return x1 + y


# ----------------------------------- main --------------------------------------

if __name__ == "__main__":
    # small shapes consistent with the module defaults
    B, H, W = 2, 8, 8
    dim, num_heads, window_size, mlp_ratio = 32, 4, 4, 4.0
    L = H * W
    hidden = int(dim * mlp_ratio)

    key = jax.random.PRNGKey(0)
    ks = jax.random.split(key, 12)
    x = jax.random.normal(ks[0], (B, L, dim), dtype=jnp.float32)

    params = {
        # LayerNorm gamma/beta packed as (2, C) to cut operand count.
        "ln1": jnp.stack([1.0 + 0.1 * jax.random.normal(ks[1], (dim,)),
                          0.05 * jax.random.normal(ks[2], (dim,))]).astype(jnp.float32),
        "wqkv": 0.02 * jax.random.normal(ks[3], (dim, 3 * dim), jnp.float32),
        "bqkv": 0.02 * jax.random.normal(ks[4], (1, 3 * dim), jnp.float32),
        "rpb_table": 0.02 * jax.random.normal(
            ks[5], ((2 * window_size - 1) ** 2, num_heads), jnp.float32),
        "wproj": 0.02 * jax.random.normal(ks[6], (dim, dim), jnp.float32),
        "bproj": 0.02 * jax.random.normal(ks[7], (1, dim), jnp.float32),
        "ln2": jnp.stack([1.0 + 0.1 * jax.random.normal(ks[8], (dim,)),
                          0.05 * jax.random.normal(ks[9], (dim,))]).astype(jnp.float32),
        "w1": 0.02 * jax.random.normal(ks[10], (dim, hidden), jnp.float32),
        "b1": jnp.zeros((1, hidden), jnp.float32),
        "w2": 0.02 * jax.random.normal(ks[11], (hidden, dim), jnp.float32),
        "b2": jnp.zeros((1, dim), jnp.float32),
    }

    # hw_shape / window_size / num_heads are STATIC (baked into the partial).
    fwd = jax.jit(functools.partial(
        swin_block_forward, hw_shape=(H, W),
        window_size=window_size, num_heads=num_heads))

    # float32 run (matches the PyTorch f32 module semantics; exact softmax div)
    out = jax.block_until_ready(fwd(x, params))
    ref = swin_block_ref(x, (H, W), params,
                         window_size=window_size, num_heads=num_heads)
    np.testing.assert_allclose(np.asarray(out), np.asarray(ref),
                               rtol=1e-3, atol=1e-3)

    # bfloat16 weights/activations run (halved HBM traffic, native bf16 MXU path
    # everywhere including fc2); LN / softmax stats stay f32 inside the kernel.
    x_bf = x.astype(jnp.bfloat16)
    params_bf = jax.tree_util.tree_map(lambda p: p.astype(jnp.bfloat16), params)
    out_bf = jax.block_until_ready(fwd(x_bf, params_bf))
    ref_bf = swin_block_ref(x_bf, (H, W), params_bf,
                            window_size=window_size, num_heads=num_heads)
    np.testing.assert_allclose(np.asarray(out_bf.astype(jnp.float32)),
                               np.asarray(ref_bf), rtol=1e-1, atol=1e-1)

    print("KERNEL_OK")
</pallas_src>

<mosaic_0001>
module attributes {stable_mosaic.version = 11 : i64} {
  func.func @swin_block_kernel(%arg0: i32, %arg1: memref<64x32xf32, #tpu.memory_space<vmem>>, %arg2: memref<2x32xf32, #tpu.memory_space<vmem>>, %arg3: memref<32x96xf32, #tpu.memory_space<vmem>>, %arg4: memref<1x96xf32, #tpu.memory_space<vmem>>, %arg5: memref<4x16x16xf32, #tpu.memory_space<vmem>>, %arg6: memref<32x32xf32, #tpu.memory_space<vmem>>, %arg7: memref<1x32xf32, #tpu.memory_space<vmem>>, %arg8: memref<2x32xf32, #tpu.memory_space<vmem>>, %arg9: memref<32x128xf32, #tpu.memory_space<vmem>>, %arg10: memref<1x128xf32, #tpu.memory_space<vmem>>, %arg11: memref<128x32xf32, #tpu.memory_space<vmem>>, %arg12: memref<1x32xf32, #tpu.memory_space<vmem>>, %arg13: memref<64x32xf32, #tpu.memory_space<vmem>>, %arg14: memref<64x32xf32, #tpu.memory_space<vmem>>) attributes {dimension_semantics = [#tpu.dimension_semantics<parallel>], iteration_bounds = array<i64: 2>, scalar_prefetch = 0 : i64, scratch_operands = 1 : i64, tpu.core_type = #tpu.core_type<tc>, window_params = [{transform_indices = @transform_0, window_bounds = array<i64: 64, 32>}, {pipeline_mode = #tpu.pipeline_mode<synchronous>, transform_indices = @transform_1, window_bounds = array<i64: 2, 32>}, {pipeline_mode = #tpu.pipeline_mode<synchronous>, transform_indices = @transform_2, window_bounds = array<i64: 32, 96>}, {pipeline_mode = #tpu.pipeline_mode<synchronous>, transform_indices = @transform_3, window_bounds = array<i64: 1, 96>}, {pipeline_mode = #tpu.pipeline_mode<synchronous>, transform_indices = @transform_4, window_bounds = array<i64: 4, 16, 16>}, {pipeline_mode = #tpu.pipeline_mode<synchronous>, transform_indices = @transform_5, window_bounds = array<i64: 32, 32>}, {pipeline_mode = #tpu.pipeline_mode<synchronous>, transform_indices = @transform_6, window_bounds = array<i64: 1, 32>}, {pipeline_mode = #tpu.pipeline_mode<synchronous>, transform_indices = @transform_7, window_bounds = array<i64: 2, 32>}, {pipeline_mode = #tpu.pipeline_mode<synchronous>, transform_indices = @transform_8, window_bounds = array<i64: 32, 128>}, {pipeline_mode = #tpu.pipeline_mode<synchronous>, transform_indices = @transform_9, window_bounds = array<i64: 1, 128>}, {pipeline_mode = #tpu.pipeline_mode<synchronous>, transform_indices = @transform_10, window_bounds = array<i64: 128, 32>}, {pipeline_mode = #tpu.pipeline_mode<synchronous>, transform_indices = @transform_11, window_bounds = array<i64: 1, 32>}, {transform_indices = @transform_12, window_bounds = array<i64: 64, 32>}]} {
    %c0 = arith.constant 0 : index
    %c0_0 = arith.constant 0 : index
    %0 = vector.load %arg1[%c0, %c0_0] : memref<64x32xf32, #tpu.memory_space<vmem>>, vector<64x32xf32>
    %c0_1 = arith.constant 0 : index
    %c0_2 = arith.constant 0 : index
    %1 = vector.load %arg2[%c0_1, %c0_2] : memref<2x32xf32, #tpu.memory_space<vmem>>, vector<1x32xf32>
    %c1 = arith.constant 1 : index
    %c0_3 = arith.constant 0 : index
    %2 = vector.load %arg2[%c1, %c0_3] : memref<2x32xf32, #tpu.memory_space<vmem>>, vector<1x32xf32>
    %cst = arith.constant dense<0.000000e+00> : vector<64xf32>
    %3 = vector.multi_reduction <add>, %0, %cst [1] : vector<64x32xf32> to vector<64xf32>
    %4 = vector.shape_cast %3 : vector<64xf32> to vector<64x1xf32>
    %cst_4 = arith.constant 3.200000e+01 : f32
    %5 = vector.broadcast %cst_4 : f32 to vector<64x1xf32>
    %6 = arith.divf %4, %5 : vector<64x1xf32>
    %7 = arith.mulf %0, %0 : vector<64x32xf32>
    %cst_5 = arith.constant dense<0.000000e+00> : vector<64xf32>
    %8 = vector.multi_reduction <add>, %7, %cst_5 [1] : vector<64x32xf32> to vector<64xf32>
    %9 = vector.shape_cast %8 : vector<64xf32> to vector<64x1xf32>
    %cst_6 = arith.constant 3.200000e+01 : f32
    %10 = vector.broadcast %cst_6 : f32 to vector<64x1xf32>
    %11 = arith.divf %9, %10 : vector<64x1xf32>
    %12 = arith.mulf %6, %6 : vector<64x1xf32>
    %13 = arith.subf %11, %12 : vector<64x1xf32>
    %14 = vector.broadcast %6 : vector<64x1xf32> to vector<64x32xf32>
    %15 = arith.subf %0, %14 : vector<64x32xf32>
    %cst_7 = arith.constant 9.99999974E-6 : f32
    %16 = vector.broadcast %cst_7 : f32 to vector<64x1xf32>
    %17 = arith.addf %13, %16 : vector<64x1xf32>
    %18 = math.rsqrt %17 : vector<64x1xf32>
    %19 = vector.broadcast %18 : vector<64x1xf32> to vector<64x32xf32>
    %20 = arith.mulf %15, %19 : vector<64x32xf32>
    %21 = vector.broadcast %1 : vector<1x32xf32> to vector<64x32xf32>
    %22 = arith.mulf %20, %21 : vector<64x32xf32>
    %23 = vector.broadcast %2 : vector<1x32xf32> to vector<64x32xf32>
    %24 = arith.addf %22, %23 : vector<64x32xf32>
    %c0_8 = arith.constant 0 : index
    %c0_9 = arith.constant 0 : index
    %25 = vector.load %arg3[%c0_8, %c0_9] : memref<32x96xf32, #tpu.memory_space<vmem>>, vector<32x96xf32>
    %cst_10 = arith.constant dense<0.000000e+00> : vector<64x96xf32>
    %26 = tpu.matmul %24, %25, %cst_10 {dimension_numbers = #tpu.dot_dimension_numbers<[1], [0], [0], [1], [0, 0, 1, 1], [], []>} : vector<64x32xf32>, vector<32x96xf32>, vector<64x96xf32> -> vector<64x96xf32>
    %c0_11 = arith.constant 0 : index
    %c0_12 = arith.constant 0 : index
    %27 = vector.load %arg4[%c0_11, %c0_12] : memref<1x96xf32, #tpu.memory_space<vmem>>, vector<1x96xf32>
    %28 = vector.broadcast %27 : vector<1x96xf32> to vector<64x96xf32>
    %29 = arith.addf %26, %28 : vector<64x96xf32>
    %30 = vector.extract_strided_slice %29 {offsets = [0, 0], sizes = [64, 8], strides = [1, 1]} : vector<64x96xf32> to vector<64x8xf32>
    %31 = vector.shape_cast %30 : vector<64x8xf32> to vector<4x16x8xf32>
    %32 = vector.extract_strided_slice %29 {offsets = [0, 32], sizes = [64, 8], strides = [1, 1]} : vector<64x96xf32> to vector<64x8xf32>
    %33 = vector.shape_cast %32 : vector<64x8xf32> to vector<4x16x8xf32>
    %34 = vector.extract_strided_slice %29 {offsets = [0, 64], sizes = [64, 8], strides = [1, 1]} : vector<64x96xf32> to vector<64x8xf32>
    %35 = vector.shape_cast %34 : vector<64x8xf32> to vector<4x16x8xf32>
    "tpu.trace_start"() <{level = 10 : i32, message = "wnd,wmd->wnm"}> : () -> ()
    %cst_13 = arith.constant dense<0.000000e+00> : vector<4x16x16xf32>
    %36 = tpu.matmul %31, %33, %cst_13 {dimension_numbers = #tpu.dot_dimension_numbers<[2], [2], [1], [1], [0, 0, 0, 1, 1, 1], [0], [0]>} : vector<4x16x8xf32>, vector<4x16x8xf32>, vector<4x16x16xf32> -> vector<4x16x16xf32>
    "tpu.trace_stop"() : () -> ()
    %c0_14 = arith.constant 0 : index
    %c0_15 = arith.constant 0 : index
    %c0_16 = arith.constant 0 : index
    %37 = vector.load %arg5[%c0_14, %c0_15, %c0_16] : memref<4x16x16xf32, #tpu.memory_space<vmem>>, vector<1x16x16xf32>
    %38 = vector.broadcast %37 : vector<1x16x16xf32> to vector<4x16x16xf32>
    %39 = arith.addf %36, %38 : vector<4x16x16xf32>
    %cst_17 = arith.constant dense<0xFF800000> : vector<4x16xf32>
    %40 = vector.multi_reduction <maximumf>, %39, %cst_17 [2] : vector<4x16x16xf32> to vector<4x16xf32>
    %41 = vector.shape_cast %40 : vector<4x16xf32> to vector<4x16x1xf32>
    %42 = vector.broadcast %41 : vector<4x16x1xf32> to vector<4x16x16xf32>
    %43 = arith.subf %39, %42 : vector<4x16x16xf32>
    %44 = math.exp %43 : vector<4x16x16xf32>
    %cst_18 = arith.constant dense<0.000000e+00> : vector<4x16xf32>
    %45 = vector.multi_reduction <add>, %44, %cst_18 [2] : vector<4x16x16xf32> to vector<4x16xf32>
    %46 = vector.shape_cast %45 : vector<4x16xf32> to vector<4x16x1xf32>
    %47 = vector.broadcast %46 : vector<4x16x1xf32> to vector<4x16x16xf32>
    %48 = arith.divf %44, %47 : vector<4x16x16xf32>
    "tpu.trace_start"() <{level = 10 : i32, message = "wnm,wmd->wnd"}> : () -> ()
    %cst_19 = arith.constant dense<0.000000e+00> : vector<4x16x8xf32>
    %49 = tpu.matmul %48, %35, %cst_19 {dimension_numbers = #tpu.dot_dimension_numbers<[2], [1], [1], [2], [0, 0, 0, 1, 1, 2], [0], [0]>} : vector<4x16x16xf32>, vector<4x16x8xf32>, vector<4x16x8xf32> -> vector<4x16x8xf32>
    "tpu.trace_stop"() : () -> ()
    %50 = vector.shape_cast %49 : vector<4x16x8xf32> to vector<64x8xf32>
    %c0_20 = arith.constant 0 : index
    %c0_21 = arith.constant 0 : index
    %51 = vector.load %arg14[%c0_20, %c0_21] : memref<64x32xf32, #tpu.memory_space<vmem>>, vector<64x8xf32>
    tpu.vector_store %arg14[%c0_20, %c0_21], %50 {strides = array<i32>} : memref<64x32xf32, #tpu.memory_space<vmem>>, vector<64x8xf32>,
    %52 = vector.extract_strided_slice %29 {offsets = [0, 8], sizes = [64, 8], strides = [1, 1]} : vector<64x96xf32> to vector<64x8xf32>
    %53 = vector.shape_cast %52 : vector<64x8xf32> to vector<4x16x8xf32>
    %54 = vector.extract_strided_slice %29 {offsets = [0, 40], sizes = [64, 8], strides = [1, 1]} : vector<64x96xf32> to vector<64x8xf32>
    %55 = vector.shape_cast %54 : vector<64x8xf32> to vector<4x16x8xf32>
    %56 = vector.extract_strided_slice %29 {offsets = [0, 72], sizes = [64, 8], strides = [1, 1]} : vector<64x96xf32> to vector<64x8xf32>
    %57 = vector.shape_cast %56 : vector<64x8xf32> to vector<4x16x8xf32>
    "tpu.trace_start"() <{level = 10 : i32, message = "wnd,wmd->wnm"}> : () -> ()
    %cst_22 = arith.constant dense<0.000000e+00> : vector<4x16x16xf32>
    %58 = tpu.matmul %53, %55, %cst_22 {dimension_numbers = #tpu.dot_dimension_numbers<[2], [2], [1], [1], [0, 0, 0, 1, 1, 1], [0], [0]>} : vector<4x16x8xf32>, vector<4x16x8xf32>, vector<4x16x16xf32> -> vector<4x16x16xf32>
    "tpu.trace_stop"() : () -> ()
    %c1_23 = arith.constant 1 : index
    %c0_24 = arith.constant 0 : index
    %c0_25 = arith.constant 0 : index
    %59 = vector.load %arg5[%c1_23, %c0_24, %c0_25] : memref<4x16x16xf32, #tpu.memory_space<vmem>>, vector<1x16x16xf32>
    %60 = vector.broadcast %59 : vector<1x16x16xf32> to vector<4x16x16xf32>
    %61 = arith.addf %58, %60 : vector<4x16x16xf32>
    %cst_26 = arith.constant dense<0xFF800000> : vector<4x16xf32>
    %62 = vector.multi_reduction <maximumf>, %61, %cst_26 [2] : vector<4x16x16xf32> to vector<4x16xf32>
    %63 = vector.shape_cast %62 : vector<4x16xf32> to vector<4x16x1xf32>
    %64 = vector.broadcast %63 : vector<4x16x1xf32> to vector<4x16x16xf32>
    %65 = arith.subf %61, %64 : vector<4x16x16xf32>
    %66 = math.exp %65 : vector<4x16x16xf32>
    %cst_27 = arith.constant dense<0.000000e+00> : vector<4x16xf32>
    %67 = vector.multi_reduction <add>, %66, %cst_27 [2] : vector<4x16x16xf32> to vector<4x16xf32>
    %68 = vector.shape_cast %67 : vector<4x16xf32> to vector<4x16x1xf32>
    %69 = vector.broadcast %68 : vector<4x16x1xf32> to vector<4x16x16xf32>
    %70 = arith.divf %66, %69 : vector<4x16x16xf32>
    "tpu.trace_start"() <{level = 10 : i32, message = "wnm,wmd->wnd"}> : () -> ()
    %cst_28 = arith.constant dense<0.000000e+00> : vector<4x16x8xf32>
    %71 = tpu.matmul %70, %57, %cst_28 {dimension_numbers = #tpu.dot_dimension_numbers<[2], [1], [1], [2], [0, 0, 0, 1, 1, 2], [0], [0]>} : vector<4x16x16xf32>, vector<4x16x8xf32>, vector<4x16x8xf32> -> vector<4x16x8xf32>
    "tpu.trace_stop"() : () -> ()
    %72 = vector.shape_cast %71 : vector<4x16x8xf32> to vector<64x8xf32>
    %c0_29 = arith.constant 0 : index
    %c8 = arith.constant 8 : index
    %73 = vector.load %arg14[%c0_29, %c8] : memref<64x32xf32, #tpu.memory_space<vmem>>, vector<64x8xf32>
    tpu.vector_store %arg14[%c0_29, %c8], %72 {strides = array<i32>} : memref<64x32xf32, #tpu.memory_space<vmem>>, vector<64x8xf32>,
    %74 = vector.extract_strided_slice %29 {offsets = [0, 16], sizes = [64, 8], strides = [1, 1]} : vector<64x96xf32> to vector<64x8xf32>
    %75 = vector.shape_cast %74 : vector<64x8xf32> to vector<4x16x8xf32>
    %76 = vector.extract_strided_slice %29 {offsets = [0, 48], sizes = [64, 8], strides = [1, 1]} : vector<64x96xf32> to vector<64x8xf32>
    %77 = vector.shape_cast %76 : vector<64x8xf32> to vector<4x16x8xf32>
    %78 = vector.extract_strided_slice %29 {offsets = [0, 80], sizes = [64, 8], strides = [1, 1]} : vector<64x96xf32> to vector<64x8xf32>
    %79 = vector.shape_cast %78 : vector<64x8xf32> to vector<4x16x8xf32>
    "tpu.trace_start"() <{level = 10 : i32, message = "wnd,wmd->wnm"}> : () -> ()
    %cst_30 = arith.constant dense<0.000000e+00> : vector<4x16x16xf32>
    %80 = tpu.matmul %75, %77, %cst_30 {dimension_numbers = #tpu.dot_dimension_numbers<[2], [2], [1], [1], [0, 0, 0, 1, 1, 1], [0], [0]>} : vector<4x16x8xf32>, vector<4x16x8xf32>, vector<4x16x16xf32> -> vector<4x16x16xf32>
    "tpu.trace_stop"() : () -> ()
    %c2 = arith.constant 2 : index
    %c0_31 = arith.constant 0 : index
    %c0_32 = arith.constant 0 : index
    %81 = vector.load %arg5[%c2, %c0_31, %c0_32] : memref<4x16x16xf32, #tpu.memory_space<vmem>>, vector<1x16x16xf32>
    %82 = vector.broadcast %81 : vector<1x16x16xf32> to vector<4x16x16xf32>
    %83 = arith.addf %80, %82 : vector<4x16x16xf32>
    %cst_33 = arith.constant dense<0xFF800000> : vector<4x16xf32>
    %84 = vector.multi_reduction <maximumf>, %83, %cst_33 [2] : vector<4x16x16xf32> to vector<4x16xf32>
    %85 = vector.shape_cast %84 : vector<4x16xf32> to vector<4x16x1xf32>
    %86 = vector.broadcast %85 : vector<4x16x1xf32> to vector<4x16x16xf32>
    %87 = arith.subf %83, %86 : vector<4x16x16xf32>
    %88 = math.exp %87 : vector<4x16x16xf32>
    %cst_34 = arith.constant dense<0.000000e+00> : vector<4x16xf32>
    %89 = vector.multi_reduction <add>, %88, %cst_34 [2] : vector<4x16x16xf32> to vector<4x16xf32>
    %90 = vector.shape_cast %89 : vector<4x16xf32> to vector<4x16x1xf32>
    %91 = vector.broadcast %90 : vector<4x16x1xf32> to vector<4x16x16xf32>
    %92 = arith.divf %88, %91 : vector<4x16x16xf32>
    "tpu.trace_start"() <{level = 10 : i32, message = "wnm,wmd->wnd"}> : () -> ()
    %cst_35 = arith.constant dense<0.000000e+00> : vector<4x16x8xf32>
    %93 = tpu.matmul %92, %79, %cst_35 {dimension_numbers = #tpu.dot_dimension_numbers<[2], [1], [1], [2], [0, 0, 0, 1, 1, 2], [0], [0]>} : vector<4x16x16xf32>, vector<4x16x8xf32>, vector<4x16x8xf32> -> vector<4x16x8xf32>
    "tpu.trace_stop"() : () -> ()
    %94 = vector.shape_cast %93 : vector<4x16x8xf32> to vector<64x8xf32>
    %c0_36 = arith.constant 0 : index
    %c16 = arith.constant 16 : index
    %95 = vector.load %arg14[%c0_36, %c16] : memref<64x32xf32, #tpu.memory_space<vmem>>, vector<64x8xf32>
    tpu.vector_store %arg14[%c0_36, %c16], %94 {strides = array<i32>} : memref<64x32xf32, #tpu.memory_space<vmem>>, vector<64x8xf32>,
    %96 = vector.extract_strided_slice %29 {offsets = [0, 24], sizes = [64, 8], strides = [1, 1]} : vector<64x96xf32> to vector<64x8xf32>
    %97 = vector.shape_cast %96 : vector<64x8xf32> to vector<4x16x8xf32>
    %98 = vector.extract_strided_slice %29 {offsets = [0, 56], sizes = [64, 8], strides = [1, 1]} : vector<64x96xf32> to vector<64x8xf32>
    %99 = vector.shape_cast %98 : vector<64x8xf32> to vector<4x16x8xf32>
    %100 = vector.extract_strided_slice %29 {offsets = [0, 88], sizes = [64, 8], strides = [1, 1]} : vector<64x96xf32> to vector<64x8xf32>
    %101 = vector.shape_cast %100 : vector<64x8xf32> to vector<4x16x8xf32>
    "tpu.trace_start"() <{level = 10 : i32, message = "wnd,wmd->wnm"}> : () -> ()
    %cst_37 = arith.constant dense<0.000000e+00> : vector<4x16x16xf32>
    %102 = tpu.matmul %97, %99, %cst_37 {dimension_numbers = #tpu.dot_dimension_numbers<[2], [2], [1], [1], [0, 0, 0, 1, 1, 1], [0], [0]>} : vector<4x16x8xf32>, vector<4x16x8xf32>, vector<4x16x16xf32> -> vector<4x16x16xf32>
    "tpu.trace_stop"() : () -> ()
    %c3 = arith.constant 3 : index
    %c0_38 = arith.constant 0 : index
    %c0_39 = arith.constant 0 : index
    %103 = vector.load %arg5[%c3, %c0_38, %c0_39] : memref<4x16x16xf32, #tpu.memory_space<vmem>>, vector<1x16x16xf32>
    %104 = vector.broadcast %103 : vector<1x16x16xf32> to vector<4x16x16xf32>
    %105 = arith.addf %102, %104 : vector<4x16x16xf32>
    %cst_40 = arith.constant dense<0xFF800000> : vector<4x16xf32>
    %106 = vector.multi_reduction <maximumf>, %105, %cst_40 [2] : vector<4x16x16xf32> to vector<4x16xf32>
    %107 = vector.shape_cast %106 : vector<4x16xf32> to vector<4x16x1xf32>
    %108 = vector.broadcast %107 : vector<4x16x1xf32> to vector<4x16x16xf32>
    %109 = arith.subf %105, %108 : vector<4x16x16xf32>
    %110 = math.exp %109 : vector<4x16x16xf32>
    %cst_41 = arith.constant dense<0.000000e+00> : vector<4x16xf32>
    %111 = vector.multi_reduction <add>, %110, %cst_41 [2] : vector<4x16x16xf32> to vector<4x16xf32>
    %112 = vector.shape_cast %111 : vector<4x16xf32> to vector<4x16x1xf32>
    %113 = vector.broadcast %112 : vector<4x16x1xf32> to vector<4x16x16xf32>
    %114 = arith.divf %110, %113 : vector<4x16x16xf32>
    "tpu.trace_start"() <{level = 10 : i32, message = "wnm,wmd->wnd"}> : () -> ()
    %cst_42 = arith.constant dense<0.000000e+00> : vector<4x16x8xf32>
    %115 = tpu.matmul %114, %101, %cst_42 {dimension_numbers = #tpu.dot_dimension_numbers<[2], [1], [1], [2], [0, 0, 0, 1, 1, 2], [0], [0]>} : vector<4x16x16xf32>, vector<4x16x8xf32>, vector<4x16x8xf32> -> vector<4x16x8xf32>
    "tpu.trace_stop"() : () -> ()
    %116 = vector.shape_cast %115 : vector<4x16x8xf32> to vector<64x8xf32>
    %c0_43 = arith.constant 0 : index
    %c24 = arith.constant 24 : index
    %117 = vector.load %arg14[%c0_43, %c24] : memref<64x32xf32, #tpu.memory_space<vmem>>, vector<64x8xf32>
    tpu.vector_store %arg14[%c0_43, %c24], %116 {strides = array<i32>} : memref<64x32xf32, #tpu.memory_space<vmem>>, vector<64x8xf32>,
    %c0_44 = arith.constant 0 : index
    %c0_45 = arith.constant 0 : index
    %118 = vector.load %arg14[%c0_44, %c0_45] : memref<64x32xf32, #tpu.memory_space<vmem>>, vector<64x32xf32>
    %c0_46 = arith.constant 0 : index
    %c0_47 = arith.constant 0 : index
    %119 = vector.load %arg6[%c0_46, %c0_47] : memref<32x32xf32, #tpu.memory_space<vmem>>, vector<32x32xf32>
    %cst_48 = arith.constant dense<0.000000e+00> : vector<64x32xf32>
    %120 = tpu.matmul %118, %119, %cst_48 {dimension_numbers = #tpu.dot_dimension_numbers<[1], [0], [0], [1], [0, 0, 1, 1], [], []>} : vector<64x32xf32>, vector<32x32xf32>, vector<64x32xf32> -> vector<64x32xf32>
    %121 = arith.addf %0, %120 : vector<64x32xf32>
    %c0_49 = arith.constant 0 : index
    %c0_50 = arith.constant 0 : index
    %122 = vector.load %arg7[%c0_49, %c0_50] : memref<1x32xf32, #tpu.memory_space<vmem>>, vector<1x32xf32>
    %123 = vector.broadcast %122 : vector<1x32xf32> to vector<64x32xf32>
    %124 = arith.addf %121, %123 : vector<64x32xf32>
    %c0_51 = arith.constant 0 : index
    %c0_52 = arith.constant 0 : index
    %125 = vector.load %arg8[%c0_51, %c0_52] : memref<2x32xf32, #tpu.memory_space<vmem>>, vector<1x32xf32>
    %c1_53 = arith.constant 1 : index
    %c0_54 = arith.constant 0 : index
    %126 = vector.load %arg8[%c1_53, %c0_54] : memref<2x32xf32, #tpu.memory_space<vmem>>, vector<1x32xf32>
    %cst_55 = arith.constant dense<0.000000e+00> : vector<64xf32>
    %127 = vector.multi_reduction <add>, %124, %cst_55 [1] : vector<64x32xf32> to vector<64xf32>
    %128 = vector.shape_cast %127 : vector<64xf32> to vector<64x1xf32>
    %cst_56 = arith.constant 3.200000e+01 : f32
    %129 = vector.broadcast %cst_56 : f32 to vector<64x1xf32>
    %130 = arith.divf %128, %129 : vector<64x1xf32>
    %131 = arith.mulf %124, %124 : vector<64x32xf32>
    %cst_57 = arith.constant dense<0.000000e+00> : vector<64xf32>
    %132 = vector.multi_reduction <add>, %131, %cst_57 [1] : vector<64x32xf32> to vector<64xf32>
    %133 = vector.shape_cast %132 : vector<64xf32> to vector<64x1xf32>
    %cst_58 = arith.constant 3.200000e+01 : f32
    %134 = vector.broadcast %cst_58 : f32 to vector<64x1xf32>
    %135 = arith.divf %133, %134 : vector<64x1xf32>
    %136 = arith.mulf %130, %130 : vector<64x1xf32>
    %137 = arith.subf %135, %136 : vector<64x1xf32>
    %138 = vector.broadcast %130 : vector<64x1xf32> to vector<64x32xf32>
    %139 = arith.subf %124, %138 : vector<64x32xf32>
    %cst_59 = arith.constant 9.99999974E-6 : f32
    %140 = vector.broadcast %cst_59 : f32 to vector<64x1xf32>
    %141 = arith.addf %137, %140 : vector<64x1xf32>
    %142 = math.rsqrt %141 : vector<64x1xf32>
    %143 = vector.broadcast %142 : vector<64x1xf32> to vector<64x32xf32>
    %144 = arith.mulf %139, %143 : vector<64x32xf32>
    %145 = vector.broadcast %125 : vector<1x32xf32> to vector<64x32xf32>
    %146 = arith.mulf %144, %145 : vector<64x32xf32>
    %147 = vector.broadcast %126 : vector<1x32xf32> to vector<64x32xf32>
    %148 = arith.addf %146, %147 : vector<64x32xf32>
    %c0_60 = arith.constant 0 : index
    %c0_61 = arith.constant 0 : index
    %149 = vector.load %arg9[%c0_60, %c0_61] : memref<32x128xf32, #tpu.memory_space<vmem>>, vector<32x128xf32>
    %cst_62 = arith.constant dense<0.000000e+00> : vector<64x128xf32>
    %150 = tpu.matmul %148, %149, %cst_62 {dimension_numbers = #tpu.dot_dimension_numbers<[1], [0], [0], [1], [0, 0, 1, 1], [], []>} : vector<64x32xf32>, vector<32x128xf32>, vector<64x128xf32> -> vector<64x128xf32>
    %c0_63 = arith.constant 0 : index
    %c0_64 = arith.constant 0 : index
    %151 = vector.load %arg10[%c0_63, %c0_64] : memref<1x128xf32, #tpu.memory_space<vmem>>, vector<1x128xf32>
    %152 = vector.broadcast %151 : vector<1x128xf32> to vector<64x128xf32>
    %153 = arith.addf %150, %152 : vector<64x128xf32>
    %cst_65 = arith.constant 5.000000e-01 : f32
    %154 = vector.broadcast %cst_65 : f32 to vector<64x128xf32>
    %155 = arith.mulf %154, %153 : vector<64x128xf32>
    %cst_66 = arith.constant 0.707106769 : f32
    %156 = vector.broadcast %cst_66 : f32 to vector<64x128xf32>
    %157 = arith.mulf %153, %156 : vector<64x128xf32>
    %cst_67 = arith.constant 0.000000e+00 : f32
    %158 = vector.broadcast %cst_67 : f32 to vector<64x128xf32>
    %159 = arith.cmpf olt, %157, %158 : vector<64x128xf32>
    %cst_68 = arith.constant -1.000000e+00 : f32
    %cst_69 = arith.constant 1.000000e+00 : f32
    %160 = vector.broadcast %cst_68 : f32 to vector<64x128xf32>
    %161 = vector.broadcast %cst_69 : f32 to vector<64x128xf32>
    %162 = arith.select %159, %160, %161 : vector<64x128xi1>, vector<64x128xf32>
    %163 = math.absf %157 : vector<64x128xf32>
    %cst_70 = arith.constant 0.327591091 : f32
    %164 = vector.broadcast %cst_70 : f32 to vector<64x128xf32>
    %165 = arith.mulf %164, %163 : vector<64x128xf32>
    %cst_71 = arith.constant 1.000000e+00 : f32
    %166 = vector.broadcast %cst_71 : f32 to vector<64x128xf32>
    %167 = arith.addf %166, %165 : vector<64x128xf32>
    %cst_72 = arith.constant 1.000000e+00 : f32
    %168 = vector.broadcast %cst_72 : f32 to vector<64x128xf32>
    %169 = arith.divf %168, %167 : vector<64x128xf32>
    %cst_73 = arith.constant 1.06140542 : f32
    %170 = vector.broadcast %cst_73 : f32 to vector<64x128xf32>
    %171 = arith.mulf %170, %169 : vector<64x128xf32>
    %cst_74 = arith.constant -1.45315206 : f32
    %172 = vector.broadcast %cst_74 : f32 to vector<64x128xf32>
    %173 = arith.addf %171, %172 : vector<64x128xf32>
    %174 = arith.mulf %173, %169 : vector<64x128xf32>
    %cst_75 = arith.constant 1.42141378 : f32
    %175 = vector.broadcast %cst_75 : f32 to vector<64x128xf32>
    %176 = arith.addf %174, %175 : vector<64x128xf32>
    %177 = arith.mulf %176, %169 : vector<64x128xf32>
    %cst_76 = arith.constant -0.284496725 : f32
    %178 = vector.broadcast %cst_76 : f32 to vector<64x128xf32>
    %179 = arith.addf %177, %178 : vector<64x128xf32>
    %180 = arith.mulf %179, %169 : vector<64x128xf32>
    %cst_77 = arith.constant 0.254829586 : f32
    %181 = vector.broadcast %cst_77 : f32 to vector<64x128xf32>
    %182 = arith.addf %180, %181 : vector<64x128xf32>
    %183 = arith.mulf %182, %169 : vector<64x128xf32>
    %cst_78 = arith.constant 0.000000e+00 : f32
    %184 = vector.broadcast %cst_78 : f32 to vector<64x128xf32>
    %185 = arith.subf %184, %163 : vector<64x128xf32>
    %186 = arith.mulf %185, %163 : vector<64x128xf32>
    %187 = math.exp %186 : vector<64x128xf32>
    %188 = arith.mulf %183, %187 : vector<64x128xf32>
    %cst_79 = arith.constant 1.000000e+00 : f32
    %189 = vector.broadcast %cst_79 : f32 to vector<64x128xf32>
    %190 = arith.subf %189, %188 : vector<64x128xf32>
    %191 = arith.mulf %162, %190 : vector<64x128xf32>
    %cst_80 = arith.constant 1.000000e+00 : f32
    %192 = vector.broadcast %cst_80 : f32 to vector<64x128xf32>
    %193 = arith.addf %192, %191 : vector<64x128xf32>
    %194 = arith.mulf %155, %193 : vector<64x128xf32>
    %c0_81 = arith.constant 0 : index
    %c0_82 = arith.constant 0 : index
    %195 = vector.load %arg11[%c0_81, %c0_82] : memref<128x32xf32, #tpu.memory_space<vmem>>, vector<128x32xf32>
    %cst_83 = arith.constant dense<0.000000e+00> : vector<64x32xf32>
    %196 = tpu.matmul %194, %195, %cst_83 {dimension_numbers = #tpu.dot_dimension_numbers<[1], [0], [0], [1], [0, 0, 1, 1], [], []>} : vector<64x128xf32>, vector<128x32xf32>, vector<64x32xf32> -> vector<64x32xf32>
    %c0_84 = arith.constant 0 : index
    %c0_85 = arith.constant 0 : index
    %197 = vector.load %arg12[%c0_84, %c0_85] : memref<1x32xf32, #tpu.memory_space<vmem>>, vector<1x32xf32>
    %198 = vector.broadcast %197 : vector<1x32xf32> to vector<64x32xf32>
    %199 = arith.addf %196, %198 : vector<64x32xf32>
    %200 = arith.addf %124, %199 : vector<64x32xf32>
    %c0_86 = arith.constant 0 : index
    %c0_87 = arith.constant 0 : index
    %201 = vector.load %arg13[%c0_86, %c0_87] : memref<64x32xf32, #tpu.memory_space<vmem>>, vector<64x32xf32>
    tpu.vector_store %arg13[%c0_86, %c0_87], %200 {strides = array<i32>} : memref<64x32xf32, #tpu.memory_space<vmem>>, vector<64x32xf32>,
    return
  }
  func.func @transform_0(%arg0: i32) -> (i32, i32) {
    %c0_i32 = arith.constant 0 : i32
    %c0_i32_0 = arith.constant 0 : i32
    return %arg0, %c0_i32 : i32, i32
  }
  func.func @transform_1(%arg0: i32) -> (i32, i32) {
    %c0_i32 = arith.constant 0 : i32
    %c0_i32_0 = arith.constant 0 : i32
    %c0_i32_1 = arith.constant 0 : i32
    return %c0_i32, %c0_i32_0 : i32, i32
  }
  func.func @transform_2(%arg0: i32) -> (i32, i32) {
    %c0_i32 = arith.constant 0 : i32
    %c0_i32_0 = arith.constant 0 : i32
    %c0_i32_1 = arith.constant 0 : i32
    return %c0_i32, %c0_i32_0 : i32, i32
  }
  func.func @transform_3(%arg0: i32) -> (i32, i32) {
    %c0_i32 = arith.constant 0 : i32
    %c0_i32_0 = arith.constant 0 : i32
    %c0_i32_1 = arith.constant 0 : i32
    return %c0_i32, %c0_i32_0 : i32, i32
  }
  func.func @transform_4(%arg0: i32) -> (i32, i32, i32) {
    %c0_i32 = arith.constant 0 : i32
    %c0_i32_0 = arith.constant 0 : i32
    %c0_i32_1 = arith.constant 0 : i32
    %c0_i32_2 = arith.constant 0 : i32
    return %c0_i32, %c0_i32_0, %c0_i32_1 : i32, i32, i32
  }
  func.func @transform_5(%arg0: i32) -> (i32, i32) {
    %c0_i32 = arith.constant 0 : i32
    %c0_i32_0 = arith.constant 0 : i32
    %c0_i32_1 = arith.constant 0 : i32
    return %c0_i32, %c0_i32_0 : i32, i32
  }
  func.func @transform_6(%arg0: i32) -> (i32, i32) {
    %c0_i32 = arith.constant 0 : i32
    %c0_i32_0 = arith.constant 0 : i32
    %c0_i32_1 = arith.constant 0 : i32
    return %c0_i32, %c0_i32_0 : i32, i32
  }
  func.func @transform_7(%arg0: i32) -> (i32, i32) {
    %c0_i32 = arith.constant 0 : i32
    %c0_i32_0 = arith.constant 0 : i32
    %c0_i32_1 = arith.constant 0 : i32
    return %c0_i32, %c0_i32_0 : i32, i32
  }
  func.func @transform_8(%arg0: i32) -> (i32, i32) {
    %c0_i32 = arith.constant 0 : i32
    %c0_i32_0 = arith.constant 0 : i32
    %c0_i32_1 = arith.constant 0 : i32
    return %c0_i32, %c0_i32_0 : i32, i32
  }
  func.func @transform_9(%arg0: i32) -> (i32, i32) {
    %c0_i32 = arith.constant 0 : i32
    %c0_i32_0 = arith.constant 0 : i32
    %c0_i32_1 = arith.constant 0 : i32
    return %c0_i32, %c0_i32_0 : i32, i32
  }
  func.func @transform_10(%arg0: i32) -> (i32, i32) {
    %c0_i32 = arith.constant 0 : i32
    %c0_i32_0 = arith.constant 0 : i32
    %c0_i32_1 = arith.constant 0 : i32
    return %c0_i32, %c0_i32_0 : i32, i32
  }
  func.func @transform_11(%arg0: i32) -> (i32, i32) {
    %c0_i32 = arith.constant 0 : i32
    %c0_i32_0 = arith.constant 0 : i32
    %c0_i32_1 = arith.constant 0 : i32
    return %c0_i32, %c0_i32_0 : i32, i32
  }
  func.func @transform_12(%arg0: i32) -> (i32, i32) {
    %c0_i32 = arith.constant 0 : i32
    %c0_i32_0 = arith.constant 0 : i32
    return %arg0, %c0_i32 : i32, i32
  }
}

</mosaic_0001>

<bundles_post_ra>
// kernel: mul.9
= control target key start
LH: loop header
LB: loop body
LE: loop exit
PB: predicated region body
PF: predicated region fallthrough
CT: control target
= control target key end

     0   :  { %s34_s0 = inlined_call_operand.vmem [shape: f32[1,96], index: 0, kind: input, shape index: {}]   ;;  %s35_s1 = inlined_call_operand.vmem [shape: f32[1,96], index: 1, kind: input, shape index: {}]   ;;  %s36_s2 = inlined_call_operand.vmem [shape: f32[1,96], index: 2, kind: output, shape index: {}]  }
   0x1   :  { %v3_v0 = vld [vmem:[%s34_s0] sm:$0x1] }
   0x2   :  { %v4_v1 = vld [vmem:[%s35_s1] sm:$0x1] }
   0x3   :  { %v7_v2 = vmul.f32 %v4_v1, %v3_v0 }
   0x5   :  { %9 = vst [vmem:[%s36_s2] sm:$0x1] %v7_v2 }

// kernel: swin_block_forward.1
= control target key start
LH: loop header
LB: loop body
LE: loop exit
PB: predicated region body
PF: predicated region fallthrough
CT: control target
= control target key end

     0   :  { %s4203_s21 = smov 0   ;;  %s5513_s0 = inlined_call_operand.vmem [shape: f32[128,32], index: 0, kind: input, shape index: {}]   ;;  %s5514_s1 = inlined_call_operand.vmem [shape: f32[2,32], index: 1, kind: input, shape index: {}]   ;;  %s5515_s2 = inlined_call_operand.vmem [shape: f32[32,96], index: 2, kind: input, shape index: {}]   ;;  %s5516_s3 = inlined_call_operand.vmem [shape: f32[1,96], index: 3, kind: input, shape index: {}]   ;;  %s5517_s4 = inlined_call_operand.vmem [shape: f32[4,16,16], index: 4, kind: input, shape index: {}]   ;;  %s5518_s5 = inlined_call_operand.vmem [shape: f32[32,32], index: 5, kind: input, shape index: {}]   ;;  %s5519_s6 = inlined_call_operand.vmem [shape: f32[1,32], index: 6, kind: input, shape index: {}]   ;;  %s5520_s7 = inlined_call_operand.vmem [shape: f32[2,32], index: 7, kind: input, shape index: {}]   ;;  %s5521_s8 = inlined_call_operand.vmem [shape: f32[32,128], index: 8, kind: input, shape index: {}]   ;;  %s5522_s9 = inlined_call_operand.vmem [shape: f32[1,128], index: 9, kind: input, shape index: {}]   ;;  %s5523_s10 = inlined_call_operand.vmem [shape: f32[128,32], index: 10, kind: input, shape index: {}]   ;;  %s5524_s11 = inlined_call_operand.vmem [shape: f32[1,32], index: 11, kind: input, shape index: {}]   ;;  %s5525_s12 = inlined_call_operand.vmem [shape: f32[128,32], index: 12, kind: output, shape index: {}]  }
   0x1 LB: > { %s3641_s22 = sadd.s32 4294967295, %s4120_s21   ;;  %p3645_p0 = scmp.ge.s32.totalorder %s4120_s21, 1  ;;  %s4120_s21 = sphi %s4203_s21, %s22_s21  }
   0x2   : > { %p363_p1 = scmp.lt.s32.totalorder %s4120_s21, 3 }
   0x4   : > { %p364_p2 = pnand %p3645_p0, %p363_p1 }
   0x5   : > { %s3646_s23 = sshll.u32 (!%p364_p2), %s3641_s22, 3  ;;  %s4123_s28 = smov (!%p364_p2), 96  }
   0x6   : > { %367 = sbr.rel (%p364_p2) target bundleno = 3217 (0xc91), region = 68  ;;  %p406_p3 = scmp.lt.s32.totalorder (!%p364_p2), %s3646_s23, 15 }
   0x7   : > { %s4124_s15 = smov (!%p364_p2), 88   ;;  %s4125_s16 = smov (!%p364_p2), 64  }
   0x8   : > { %s4126_s17 = smov (!%p364_p2), 120   ;;  %s4127_s18 = smov (!%p364_p2), 80  }
   0x9   : > { %s4128_s19 = smov (!%p364_p2), 56   ;;  %s4130_s29 = smov (!%p364_p2), 48  }
   0xa   : > { %s4131_s30 = smov (!%p364_p2), 72   ;;  %s4133_s25 = smov (!%p364_p2), 40  }
   0xb   : > { %s5531_s23 = smov (!%p406_p3, %s3646_s23), 15  ;;  %vm427_vm0 = vcmask 261120   ;;  %v4122_v32 = vmov 32.0   ;;  %v648_v41 = vld [vmem:[%s5515_s2 + $0x18] sm:$0xff]  ;;  %v647_v45 = vld [vmem:[%s5515_s2 + $0x10] sm:$0xff]  ;;  %v646_v46 = vld [vmem:[%s5515_s2 + $0x8] sm:$0xff] }
   0xc   : > { %s3647_s24 = sshll.u32 %s5531_s23, 3  ;;  %3912 = vrcp.f32 %v4122_v32  ;;  %689 = vmatpush.msra.mxu0 %v648_v41  ;;  %3778 = vmatpush.msra.mxu3 %v648_v41  ;;  %v645_v50 = vld [vmem:[%s5515_s2] sm:$0xff]  ;;  %s4134_s26 = smov 16  }
   0xd   : > { %s4219_s27 = scalar_lea.vmem %s5513_s0, %s3647_s24  ;;  %s5442_s13 = scalar_lea.vmem %s5525_s12, %s3647_s24 }
   0xe   : > { %v4222_v0 = vld [vmem:[%s4219_s27 + $0x10] sm:$0xff]  ;;  %v4225_v1 = vld [vmem:[%s4219_s27 + $0x8] sm:$0xff]  ;;  %v4228_v2 = vld [vmem:[%s4219_s27] sm:$0xff]  ;;  %690 = vmatpush.msra.mxu0 %v647_v45  ;;  %3779 = vmatpush.msra.mxu3 %v647_v45 }
   0xf   : > { %v434_v3 = vsel %vm427_vm0, %v4222_v0, 0.0  ;;  %v431_v4 = vsel %vm427_vm0, %v4225_v1, 0.0  ;;  %v428_v5 = vsel %vm427_vm0, %v4228_v2, 0.0  ;;  %v469_v6 = vmul.f32 %v4222_v0, %v4222_v0  ;;  %v4246_v12 = vld [vmem:[%s4219_s27 + $0x18] sm:$0xff]  ;;  %v4251_v14 = vld [vmem:[%s4219_s27 + $0x20] sm:$0xff]  ;;  %v4264_v20 = vld [vmem:[%s4219_s27 + $0x28] sm:$0xff] }
  0x10   : > { %435 = vadd.xlane.f32.xlu2 %v434_v3  ;;  %432 = vadd.xlane.f32.xlu1 %v431_v4  ;;  %v468_v7 = vmul.f32 %v4225_v1, %v4225_v1  ;;  %v467_v8 = vmul.f32 %v4228_v2, %v4228_v2  ;;  %v470_v13 = vmul.f32 %v4246_v12, %v4246_v12  ;;  %v440_v16 = vsel %vm427_vm0, %v4251_v14, 0.0  ;;  %v4259_v18 = vld [vmem:[%s4219_s27 + $0x38] sm:$0xff]  ;;  %v4276_v26 = vld [vmem:[%s4219_s27 + $0x30] sm:$0xff] }
  0x11   : > { %429 = vadd.xlane.f32.xlu0 %v428_v5  ;;  %v481_v9 = vsel %vm427_vm0, %v469_v6, 0.0  ;;  %v437_v17 = vsel %vm427_vm0, %v4246_v12, 0.0  ;;  %v471_v19 = vmul.f32 %v4251_v14, %v4251_v14  ;;  %v449_v21 = vsel %vm427_vm0, %v4259_v18, 0.0  ;;  %691 = vmatpush.msra.mxu0 %v646_v46 }
  0x12   : > { %v478_v10 = vsel %vm427_vm0, %v468_v7, 0.0  ;;  %v475_v11 = vsel %vm427_vm0, %v467_v8, 0.0  ;;  %v484_v15 = vsel %vm427_vm0, %v470_v13, 0.0  ;;  %v443_v22 = vsel %vm427_vm0, %v4264_v20, 0.0  ;;  %v3913_v33 = vpop.eup %3912  ;;  %3780 = vmatpush.msra.mxu3 %v646_v46 }
  0x13   : > { %v487_v23 = vsel %vm427_vm0, %v471_v19, 0.0  ;;  %v472_v24 = vmul.f32 %v4264_v20, %v4264_v20  ;;  %v474_v25 = vmul.f32 %v4259_v18, %v4259_v18  ;;  %v446_v28 = vsel %vm427_vm0, %v4276_v26, 0.0  ;;  %692 = vmatpush.msra.mxu0 %v645_v50 }
  0x14   : > { %v473_v30 = vmul.f32 %v4276_v26, %v4276_v26  ;;  %v453_v34 = vmul.f32 32.0, %v3913_v33  ;;  %vm457_vm1 = vweird.f32 %v3913_v33  ;;  %3781 = vmatpush.msra.mxu3 %v645_v50 }
  0x15   : > { %v490_v27 = vsel %vm427_vm0, %v472_v24, 0.0  ;;  %v496_v29 = vsel %vm427_vm0, %v474_v25, 0.0 }
  0x16   : > { %v493_v31 = vsel %vm427_vm0, %v473_v30, 0.0  ;;  %v454_v35 = vsub.f32 1.0, %v453_v34 }
  0x18   : > { %482 = vadd.xlane.f32.xlu2 %v481_v9  ;;  %479 = vadd.xlane.f32.xlu1 %v478_v10  ;;  %v455_v36 = vmul.f32 %v3913_v33, %v454_v35 }
  0x19   : > { %476 = vadd.xlane.f32.xlu0 %v475_v11 }
  0x1a   : > { %v456_v37 = vadd.f32 %v3913_v33, %v455_v36 }
  0x1c   : > { %v4288_v42 = vsel %vm457_vm1, %v3913_v33, %v456_v37 }
  0x20   : > { %485 = vadd.xlane.f32.xlu1 %v484_v15  ;;  %441 = vadd.xlane.f32.xlu2 %v440_v16 }
  0x21   : > { %438 = vadd.xlane.f32.xlu0 %v437_v17 }
  0x28   : > { %450 = vadd.xlane.f32.xlu1 %v449_v21  ;;  %444 = vadd.xlane.f32.xlu2 %v443_v22 }
  0x29   : > { %488 = vadd.xlane.f32.xlu0 %v487_v23 }
  0x30   : > { %491 = vadd.xlane.f32.xlu1 %v490_v27  ;;  %447 = vadd.xlane.f32.xlu2 %v446_v28 }
  0x31   : > { %497 = vadd.xlane.f32.xlu0 %v496_v29 }
  0x39   : > { %494 = vadd.xlane.f32.xlu0 %v493_v31 }
  0x83   : > { %v436_v38 = vpop.xlane.xlu2 %435  ;;  %v433_v39 = vpop.xlane.xlu1 %432 }
  0x84   : > { %v430_v40 = vpop.xlane.xlu0 %429  ;;  %v4291_v43 = vmul.f32 %v4288_v42, %v436_v38  ;;  %v4294_v44 = vmul.f32 %v4288_v42, %v433_v39 }
  0x85   : > { %v4303_v47 = vmul.f32 %v4288_v42, %v430_v40 }
  0x86   : > { %v509_v48 = vmul.f32 %v4291_v43, %v4291_v43  ;;  %v508_v49 = vmul.f32 %v4294_v44, %v4294_v44 }
  0x87   : > { %v507_v56 = vmul.f32 %v4303_v47, %v4303_v47  ;;  %v523_v50 = vsub.f32 %v4228_v2, %v4303_v47 }
  0x8b   : > { %v483_v51 = vpop.xlane.xlu2 %482  ;;  %v480_v52 = vpop.xlane.xlu1 %479 }
  0x8c   : > { %v501_v53 = vmul.f32 %v483_v51, %v4288_v42  ;;  %v500_v54 = vmul.f32 %v480_v52, %v4288_v42  ;;  %v477_v55 = vpop.xlane.xlu0 %476 }
  0x8d   : > { %v499_v57 = vmul.f32 %v477_v55, %v4288_v42 }
  0x8e   : > { %v517_v58 = vsub.f32 %v501_v53, %v509_v48  ;;  %v516_v59 = vsub.f32 %v500_v54, %v508_v49  ;;  %v4368_v53 = vld [vmem:[%s5514_s1] ss:$0 sm:$0xff] }
  0x8f   : > { %v515_v60 = vsub.f32 %v499_v57, %v507_v56 }
  0x90   : > { %v4317_v61 = vadd.f32 1e-05, %v517_v58  ;;  %v532_v62 = vadd.f32 1e-05, %v516_v59 }
  0x91   : > { %v531_v63 = vadd.f32 1e-05, %v515_v60  ;;  %v4382_v60 = vld [vmem:[%s5514_s1 + $0x1] ss:$0 sm:$0xff] }
  0x92   : > { %3914 = vrsqrt.f32 %v4317_v61  ;;  %vm555_vm6 = vweird.f32 %v532_v62  ;;  %vm565_vm8 = vweird.f32 %v4317_v61 }
  0x93   : > { %3916 = vrsqrt.f32 %v532_v62  ;;  %v486_v3 = vpop.xlane.xlu1 %485  ;;  %v442_v4 = vpop.xlane.xlu2 %441  ;;  %vm545_vm4 = vweird.f32 %v531_v63 }
  0x94   : > { %3918 = vrsqrt.f32 %v531_v63  ;;  %v439_v5 = vpop.xlane.xlu0 %438  ;;  %v502_v6 = vmul.f32 %v486_v3, %v4288_v42  ;;  %v4329_v10 = vmul.f32 %v4288_v42, %v442_v4 }
  0x95   : > { %v4322_v7 = vmul.f32 %v4288_v42, %v439_v5  ;;  %v524_v5 = vsub.f32 %v4225_v1, %v4294_v44 }
  0x96   : > { %v511_v24 = vmul.f32 %v4329_v10, %v4329_v10 }
  0x97   : > { %v510_v8 = vmul.f32 %v4322_v7, %v4322_v7 }
  0x98   : > { %v4326_v9 = vpop.eup %3914 }
  0x99   : > { %v4331_v11 = vpop.eup %3916  ;;  %v518_v13 = vsub.f32 %v502_v6, %v510_v8  ;;  %v560_v16 = vmul.f32 %v4326_v9, %v4317_v61  ;;  %vm566_vm9 = vweird.f32 %v4326_v9 }
  0x9a   : > { %v3919_v15 = vpop.eup %3918  ;;  %v550_v17 = vmul.f32 %v4331_v11, %v532_v62  ;;  %vm556_vm3 = vweird.f32 %v4331_v11  ;;  %vm567_vm10 = vmor %vm565_vm8, %vm566_vm9 }
  0x9b   : > { %v540_v19 = vmul.f32 %v3919_v15, %v531_v63  ;;  %v4336_v21 = vadd.f32 1e-05, %v518_v13  ;;  %v451_v22 = vpop.xlane.xlu1 %450  ;;  %v445_v27 = vpop.xlane.xlu2 %444  ;;  %v561_v29 = vmul.f32 %v4326_v9, %v560_v16  ;;  %vm546_vm2 = vweird.f32 %v3919_v15  ;;  %vm4374_vm7 = vmor %vm555_vm6, %vm556_vm3 }
  0x9c   : > { %v551_v23 = vmul.f32 %v4331_v11, %v550_v17  ;;  %v489_v25 = vpop.xlane.xlu0 %488  ;;  %v4345_v33 = vmul.f32 %v4288_v42, %v451_v22  ;;  %v4348_v34 = vmul.f32 %v4288_v42, %v445_v27  ;;  %vm547_vm5 = vmor %vm545_vm4, %vm546_vm2 }
  0x9d   : > { %v541_v28 = vmul.f32 %v3919_v15, %v540_v19  ;;  %3920 = vrsqrt.f32 %v4336_v21  ;;  %v503_v31 = vmul.f32 %v489_v25, %v4288_v42  ;;  %v562_v38 = vmul.f32 0.5, %v561_v29 }
  0x9e   : > { %v552_v30 = vmul.f32 0.5, %v551_v23  ;;  %v514_v41 = vmul.f32 %v4345_v33, %v4345_v33  ;;  %v512_v45 = vmul.f32 %v4348_v34, %v4348_v34  ;;  %vm575_vm11 = vweird.f32 %v4336_v21 }
  0x9f   : > { %v542_v32 = vmul.f32 0.5, %v541_v28  ;;  %v519_v36 = vsub.f32 %v503_v31, %v511_v24  ;;  %v563_v2 = vsub.f32 1.5, %v562_v38 }
  0xa0   : > { %v553_v35 = vsub.f32 1.5, %v552_v30  ;;  %v525_v30 = vsub.f32 %v4222_v0, %v4291_v43 }
  0xa1   : > { %v543_v37 = vsub.f32 1.5, %v542_v32  ;;  %v4351_v39 = vadd.f32 1e-05, %v519_v36  ;;  %v564_v44 = vmul.f32 %v4326_v9, %v563_v2  ;;  %v530_v2 = vsub.f32 %v4259_v18, %v4345_v33 }
  0xa2   : > { %v554_v49 = vmul.f32 %v4331_v11, %v553_v35 }
  0xa3   : > { %v4353_v40 = vpop.eup %3920  ;;  %v492_v46 = vpop.xlane.xlu1 %491  ;;  %v544_v48 = vmul.f32 %v3919_v15, %v543_v37  ;;  %3922 = vrsqrt.f32 %v4351_v39  ;;  %v568_v28 = vsel %vm567_vm10, %v4326_v9, %v564_v44  ;;  %vm585_vm1 = vweird.f32 %v4351_v39 }
  0xa4   : > { %v570_v51 = vmul.f32 %v4353_v40, %v4336_v21  ;;  %v498_v52 = vpop.xlane.xlu0 %497  ;;  %v448_v54 = vpop.xlane.xlu2 %447  ;;  %v504_v55 = vmul.f32 %v492_v46, %v4288_v42  ;;  %v558_v3 = vsel %vm4374_vm7, %v4331_v11, %v554_v49  ;;  %vm576_vm12 = vweird.f32 %v4353_v40 }
  0xa5   : > { %v506_v56 = vmul.f32 %v498_v52, %v4288_v42  ;;  %v548_v57 = vsel %vm547_vm5, %v3919_v15, %v544_v48  ;;  %v4388_v4 = vmul.f32 %v4288_v42, %v448_v54  ;;  %v620_v17 = vmul.f32 %v558_v3, %v524_v5  ;;  %vm577_vm13 = vmor %vm575_vm11, %vm576_vm12 }
  0xa6   : > { %v571_v58 = vmul.f32 %v4353_v40, %v570_v51  ;;  %v619_v59 = vmul.f32 %v548_v57, %v523_v50  ;;  %v520_v62 = vsub.f32 %v504_v55, %v512_v45  ;;  %v621_v37 = vmul.f32 %v568_v28, %v525_v30 }
  0xa7   : > { %v522_v63 = vsub.f32 %v506_v56, %v514_v41  ;;  %v513_v1 = vmul.f32 %v4388_v4, %v4388_v4  ;;  %v629_v25 = vmul.f32 %v4368_v53, %v620_v17  ;;  %v526_v49 = vsub.f32 %v4246_v12, %v4322_v7 }
  0xa8   : > { %v628_v6 = vmul.f32 %v4368_v53, %v619_v59  ;;  %v4394_v8 = vadd.f32 1e-05, %v520_v62  ;;  %v572_v16 = vmul.f32 0.5, %v571_v58  ;;  %v630_v43 = vmul.f32 %v4368_v53, %v621_v37 }
  0xa9   : > { %v538_v13 = vadd.f32 1e-05, %v522_v63  ;;  %v4396_v15 = vpop.eup %3922  ;;  %v638_v36 = vadd.f32 %v4382_v60, %v629_v25  ;;  %v527_v62 = vsub.f32 %v4251_v14, %v4329_v10  ;;  %v529_v17 = vsub.f32 %v4276_v26, %v4388_v4  ;;  %v3906_v26 = vld [vmem:[%s5516_s3] ss:$0 sm:$0xff] }
  0xaa   : > { %v637_v11 = vadd.f32 %v4382_v60, %v628_v6  ;;  %v580_v19 = vmul.f32 %v4396_v15, %v4351_v39  ;;  %3924 = vrsqrt.f32 %v4394_v8  ;;  %v573_v24 = vsub.f32 1.5, %v572_v16 }
  0xab   : > { %3926 = vrsqrt.f32 %v538_v13  ;;  %vm615_vm14 = vweird.f32 %v538_v13  ;;  %v639_v54 = vadd.f32 %v4382_v60, %v630_v43  ;;  %vm586_vm2 = vweird.f32 %v4396_v15 }
  0xac   : > { %3650 = vmatmul.msk.f32.vlgmr.msra.gmra.mxu0 %vm427_vm0, %v637_v11  ;;  %v495_v22 = vpop.xlane.xlu0 %494  ;;  %v581_v27 = vmul.f32 %v4396_v15, %v580_v19  ;;  %v574_v61 = vmul.f32 %v4353_v40, %v573_v24  ;;  %vm587_vm4 = vmor %vm585_vm1, %vm586_vm2  ;;  %vm595_vm5 = vweird.f32 %v4394_v8  ;;  %vm726_vm11 = vcmask 64512  }
  0xad   : > { %v505_v23 = vmul.f32 %v495_v22, %v4288_v42  ;;  %vm869_vm12 = vcmask 130048  }
  0xae   : > { %v582_v38 = vmul.f32 0.5, %v581_v27  ;;  %v578_v21 = vsel %vm577_vm13, %v4353_v40, %v574_v61 }
  0xaf   : > { %v521_v29 = vsub.f32 %v505_v23, %v513_v1  ;;  %v622_v52 = vmul.f32 %v578_v21, %v526_v49 }
  0xb0   : > { %v4415_v31 = vpop.eup %3924  ;;  %v583_v45 = vsub.f32 1.5, %v582_v38 }
  0xb1   : > { %v537_v32 = vadd.f32 1e-05, %v521_v29  ;;  %v3927_v35 = vpop.eup %3926  ;;  %v590_v9 = vmul.f32 %v4415_v31, %v4394_v8  ;;  %v631_v39 = vmul.f32 %v4368_v53, %v622_v52  ;;  %vm596_vm6 = vweird.f32 %v4415_v31  ;;  %v719_v52 = vld [vmem:[%s5517_s4 + $0x8] sm:$0xff] }
  0xb2   : > { %v610_v41 = vmul.f32 %v3927_v35, %v538_v13  ;;  %vm616_vm15 = vweird.f32 %v3927_v35  ;;  %v584_v57 = vmul.f32 %v4396_v15, %v583_v45  ;;  %vm597_vm7 = vmor %vm595_vm5, %vm596_vm6  ;;  %v528_v13 = vsub.f32 %v4264_v20, %v4348_v34 }
  0xb3   : > { %3928 = vrsqrt.f32 %v537_v32  ;;  %v591_v46 = vmul.f32 %v4415_v31, %v590_v9  ;;  %vm617_vm3 = vmor %vm615_vm14, %vm616_vm15  ;;  %v640_v33 = vadd.f32 %v4382_v60, %v631_v39  ;;  %vm605_vm8 = vweird.f32 %v537_v32 }
  0xb4   : > { %3651 = vmatmul.msk.f32.gmra.mxu0 %vm427_vm0, %v638_v36  ;;  %v611_v0 = vmul.f32 %v3927_v35, %v610_v41  ;;  %v588_v59 = vsel %vm587_vm4, %v4396_v15, %v584_v57 }
  0xb5   : > { %v592_v40 = vmul.f32 0.5, %v591_v46  ;;  %v623_v5 = vmul.f32 %v588_v59, %v527_v62 }
  0xb6   : > { %v612_v48 = vmul.f32 0.5, %v611_v0 }
  0xb7   : > { %v593_v58 = vsub.f32 1.5, %v592_v40  ;;  %v632_v10 = vmul.f32 %v4368_v53, %v623_v5 }
  0xb8   : > { %v613_v51 = vsub.f32 1.5, %v612_v48  ;;  %v718_v48 = vld [vmem:[%s5517_s4] sm:$0xff] }
  0xb9   : > { %v3929_v50 = vpop.eup %3928  ;;  %v594_v6 = vmul.f32 %v4415_v31, %v593_v58  ;;  %v641_v16 = vadd.f32 %v4382_v60, %v632_v10 }
  0xba   : > { %v600_v55 = vmul.f32 %v3929_v50, %v537_v32  ;;  %v614_v56 = vmul.f32 %v3927_v35, %v613_v51  ;;  %vm606_vm9 = vweird.f32 %v3929_v50 }
  0xbb   : > { %v598_v8 = vsel %vm597_vm7, %v4415_v31, %v594_v6  ;;  %vm607_vm10 = vmor %vm605_vm8, %vm606_vm9 }
  0xbc   : > { %3652 = vmatmul.msk.f32.gmra.mxu0 %vm427_vm0, %v639_v54  ;;  %v601_v12 = vmul.f32 %v3929_v50, %v600_v55  ;;  %v618_v7 = vsel %vm617_vm3, %v3927_v35, %v614_v56  ;;  %v624_v11 = vmul.f32 %v598_v8, %v528_v13 }
  0xbd   : > { %v626_v47 = vmul.f32 %v618_v7, %v530_v2 }
  0xbe   : > { %v602_v18 = vmul.f32 0.5, %v601_v12  ;;  %v633_v1 = vmul.f32 %v4368_v53, %v624_v11 }
  0xbf   : > { %v635_v63 = vmul.f32 %v4368_v53, %v626_v47 }
  0xc0   : > { %v603_v14 = vsub.f32 1.5, %v602_v18  ;;  %v642_v22 = vadd.f32 %v4382_v60, %v633_v1 }
  0xc1   : > { %v644_v3 = vadd.f32 %v4382_v60, %v635_v63 }
  0xc2   : > { %v604_v15 = vmul.f32 %v3929_v50, %v603_v14 }
  0xc3   : > { %3657 = vmatmul.msk.f32.vlgmr.msra.gmra.mxu3 %vm427_vm0, %v644_v3 }
  0xc4   : > { %3653 = vmatmul.msk.f32.gmra.mxu0 %vm427_vm0, %v640_v33  ;;  %v608_v19 = vsel %vm607_vm10, %v3929_v50, %v604_v15 }
  0xc5   : > { %v625_v44 = vmul.f32 %v608_v19, %v529_v17 }
  0xc7   : > { %v634_v20 = vmul.f32 %v4368_v53, %v625_v44 }
  0xc9   : > { %v643_v34 = vadd.f32 %v4382_v60, %v634_v20 }
  0xcc   : > { %3654 = vmatmul.msk.f32.gmra.mxu0 %vm427_vm0, %v641_v16 }
  0xd4   : > { %3655 = vmatmul.msk.f32.gmra.mxu0 %vm427_vm0, %v642_v22 }
  0xdc   : > { %3656 = vmatmul.msk.f32.gmra.mxu0 %vm427_vm0, %v643_v34 }
 0x129   : > { %v694_v23 = vpop.f32.mrf.mxu0 }
 0x12a   : > { %v4468_v27 = vadd.f32 %v3906_v26, %v694_v23 }
 0x131   : > { %v697_v4 = vpop.f32.mrf.mxu0 }
 0x132   : > { %v4465_v24 = vadd.f32 %v3906_v26, %v697_v4 }
 0x134   : > { %724 = vrot.lane.b32.xlu2 %v4465_v24, %s4123_s28  ;;  %v4546_v13 = vpack.i.bf16 %v4468_v27, %v4465_v24 }
 0x139   : > { %v700_v25 = vpop.f32.mrf.mxu0 }
 0x13a   : > { %v4470_v28 = vadd.f32 %v3906_v26, %v700_v25 }
 0x13c   : > { %760 = vrot.lane.b32.xlu0 %v4470_v28, %s4123_s28  ;;  %722 = vrot.lane.b32.xlu2 %v4468_v27, %s4123_s28 }
 0x141   : > { %v703_v53 = vpop.f32.mrf.mxu0 }
 0x142   : > { %v4474_v60 = vadd.f32 %v3906_v26, %v703_v53 }
 0x144   : > { %762 = vrot.lane.b32.xlu1 %v4474_v60, %s4123_s28  ;;  %v4539_v8 = vpack.i.bf16 %v4470_v28, %v4474_v60 }
 0x146   : > { %v715_v29 = vpop.f32.mrf.mxu3 }
 0x147   : > { %v4477_v31 = vadd.f32 %v3906_v26, %v715_v29 }
 0x149   : > { %v706_v30 = vpop.f32.mrf.mxu0 }
 0x14a   : > { %v4480_v35 = vadd.f32 %v3906_v26, %v706_v30 }
 0x14c   : > { %836 = vrot.lane.b32.xlu1 %v4477_v31, %s4123_s28 }
 0x151   : > { %v709_v32 = vpop.f32.mrf.mxu0 }
 0x152   : > { %v4482_v61 = vadd.f32 %v3906_v26, %v709_v32 }
 0x154   : > { %799 = vrot.lane.b32.xlu0 %v4482_v61, %s4123_s28  ;;  %797 = vrot.lane.b32.xlu1 %v4480_v35, %s4123_s28  ;;  %v4562_v16 = vpack.i.bf16 %v4480_v35, %v4482_v61 }
 0x159   : > { %v712_v36 = vpop.f32.mrf.mxu0 }
 0x15a   : > { %v4486_v37 = vadd.f32 %v3906_v26, %v712_v36 }
 0x15c   : > { %834 = vrot.lane.b32.xlu2 %v4486_v37, %s4123_s28  ;;  %v4550_v15 = vpack.i.bf16 %v4486_v37, %v4477_v31  ;;  %s4129_s28 = smov 112  }
 0x18e   : > { %v725_v38 = vpop.permute.xlu2 %724 }
 0x18f   : > { %3658 = vmatpush.xpose.msk.msra.mxu1 %vm726_vm11, %v725_v38  ;;  %3782 = vmatpush.xpose.msk.msrb.mxu3 %vm726_vm11, %v725_v38 }
 0x196   : > { %v723_v9 = vpop.permute.xlu2 %722 }
 0x197   : > { %3659 = vmatpush.xpose.msk.msra.mxu1 %vm726_vm11, %v723_v9  ;;  %3783 = vmatpush.xpose.msk.msrb.mxu3 %vm726_vm11, %v723_v9 }
 0x19a   : > { %3660 = vmatmul.msk.f32.vlgmr.msra.gmra.mxu1 %vm726_vm11, %v4468_v27  ;;  %3661 = vmatmul.msk.f32.vlgmr.msrb.gmra.mxu3 %vm726_vm11, %v4465_v24 }
 0x1ae   : > { %v761_v0 = vpop.permute.xlu0 %760 }
 0x1b6   : > { %v763_v41 = vpop.permute.xlu1 %762  ;;  %v835_v21 = vpop.permute.xlu2 %834 }
 0x1b7   : > { %3662 = vmatpush.xpose.msk.msra.mxu2 %vm726_vm11, %v763_v41 }
 0x1bb   : > { %3663 = vmatpush.xpose.msk.msra.mxu2 %vm726_vm11, %v761_v0 }
 0x1be   : > { %v837_v43 = vpop.permute.xlu1 %836  ;;  %3664 = vmatmul.msk.f32.vlgmr.msra.gmra.mxu2 %vm726_vm11, %v4470_v28 }
 0x1bf   : > { %3670 = vmatpush.xpose.msk.msrb.mxu1 %vm726_vm11, %v837_v43 }
 0x1c3   : > { %3671 = vmatpush.xpose.msk.msrb.mxu1 %vm726_vm11, %v835_v21 }
 0x1c6   : > { %3665 = vmatmul.msk.f32.gmra.mxu2 %vm726_vm11, %v4474_v60  ;;  %3672 = vmatmul.msk.f32.vlgmr.msrb.gmra.mxu1 %vm726_vm11, %v4486_v37  ;;  %v800_v45 = vpop.permute.xlu0 %799  ;;  %v798_v46 = vpop.permute.xlu1 %797 }
 0x1c7   : > { %3666 = vmatpush.xpose.msk.msra.mxu3 %vm726_vm11, %v800_v45 }
 0x1cb   : > { %3667 = vmatpush.xpose.msk.msra.mxu3 %vm726_vm11, %v798_v46 }
 0x1ce   : > { %3668 = vmatmul.msk.f32.vlgmr.msra.gmra.mxu3 %vm726_vm11, %v4480_v35  ;;  %3673 = vmatmul.msk.f32.gmra.mxu1 %vm726_vm11, %v4477_v31 }
 0x1d6   : > { %3669 = vmatmul.msk.f32.gmra.mxu3 %vm726_vm11, %v4482_v61 }
 0x217   : > { %v752_v49 = vpop.f32.mrf.mxu1 }
 0x218   : > { %v753_v50 = vadd.f32 %v752_v49, %v718_v48 }
 0x21a   : > { %v870_v51 = vsel %vm869_vm12, %v753_v50, -inf }
 0x21b   : > { %871 = vmax.xlane.f32.xlu0 %v870_v51 }
 0x21d   : > { %v755_v54 = vpop.f32.mrf.mxu3 }
 0x21e   : > { %v756_v55 = vadd.f32 %v755_v54, %v719_v52 }
 0x220   : > { %v873_v40 = vsel %vm869_vm12, %v756_v55, -inf }
 0x221   : > { %874 = vmax.xlane.f32.xlu1 %v873_v40 }
 0x241   : > { %v789_v56 = vpop.f32.mrf.mxu2 }
 0x242   : > { %v790_v57 = vadd.f32 %v789_v56, %v718_v48 }
 0x243   : > { %v863_v2 = vpop.f32.mrf.mxu1 }
 0x244   : > { %v876_v12 = vsel %vm869_vm12, %v790_v57, -inf  ;;  %v864_v7 = vadd.f32 %v863_v2, %v718_v48 }
 0x245   : > { %877 = vmax.xlane.f32.xlu2 %v876_v12 }
 0x246   : > { %v888_v59 = vsel %vm869_vm12, %v864_v7, -inf }
 0x249   : > { %v792_v39 = vpop.f32.mrf.mxu2 }
 0x24a   : > { %v4524_v47 = vadd.f32 %v792_v39, %v719_v52 }
 0x24b   : > { %v866_v62 = vpop.f32.mrf.mxu1 }
 0x24c   : > { %v879_v58 = vsel %vm869_vm12, %v4524_v47, -inf  ;;  %v4529_v63 = vadd.f32 %v866_v62, %v719_v52 }
 0x24d   : > { %880 = vmax.xlane.f32.xlu0 %v879_v58  ;;  %889 = vmax.xlane.f32.xlu2 %v888_v59 }
 0x24e   : > { %v891_v3 = vsel %vm869_vm12, %v4529_v63, -inf }
 0x251   : > { %v826_v18 = vpop.f32.mrf.mxu3 }
 0x252   : > { %v827_v33 = vadd.f32 %v826_v18, %v718_v48 }
 0x254   : > { %v882_v5 = vsel %vm869_vm12, %v827_v33, -inf }
 0x255   : > { %892 = vmax.xlane.f32.xlu0 %v891_v3  ;;  %883 = vmax.xlane.f32.xlu1 %v882_v5 }
 0x259   : > { %v829_v6 = vpop.f32.mrf.mxu3 }
 0x25a   : > { %v830_v14 = vadd.f32 %v829_v6, %v719_v52 }
 0x25c   : > { %v885_v10 = vsel %vm869_vm12, %v830_v14, -inf }
 0x25d   : > { %886 = vmax.xlane.f32.xlu2 %v885_v10 }
 0x269   : > { %1219 = vrot.lane.b32.xlu0 %v4465_v24, %s4124_s15 }
 0x26e   : > { %3830 = vrot.lane.b32.xlu1 %v4539_v8, %s4125_s16 }
 0x271   : > { %1213 = vrot.lane.b32.xlu0 %v4468_v27, %s4126_s17 }
 0x275   : > { %3825 = vrot.lane.b32.xlu2 %v4546_v13, %s4125_s16 }
 0x276   : > { %3835 = vrot.lane.b32.xlu1 %v4550_v15, %s4125_s16 }
 0x279   : > { %1297 = vrot.lane.b32.xlu0 %v4482_v61, %s4124_s15 }
 0x27e   : > { %1217 = vrot.lane.b32.xlu1 %v4468_v27, %s4124_s15 }
 0x281   : > { %1295 = vrot.lane.b32.xlu0 %v4480_v35, %s4124_s15 }
 0x286   : > { %3840 = vrot.lane.b32.xlu1 %v4562_v16, %s4125_s16 }
 0x289   : > { %1258 = vrot.lane.b32.xlu0 %v4474_v60, %s4124_s15 }
 0x28e   : > { %1215 = vrot.lane.b32.xlu1 %v4465_v24, %s4126_s17  ;;  %v872_v22 = vpop.xlane.xlu0 %871 }
 0x28f   : > { %v894_v20 = vsub.f32 %v753_v50, %v872_v22 }
 0x291   : > { %v902_v34 = vmul.f32 1.442695, %v894_v20 }
 0x294   : > { %v875_v11 = vpop.xlane.xlu1 %874 }
 0x295   : > { %v895_v17 = vsub.f32 %v756_v55, %v875_v11 }
 0x297   : > { %v904_v19 = vmul.f32 1.442695, %v895_v17 }
 0x299   : > { %3930 = vpow2.f32 %v904_v19 }
 0x29a   : > { %3932 = vpow2.f32 %v902_v34 }
 0x29f   : > { %v4569_v1 = vpop.eup %3930 }
 0x2a0   : > { %v921_v44 = vsel %vm869_vm12, %v4569_v1, 0.0  ;;  %v4573_v23 = vpop.eup %3932 }
 0x2a1   : > { %922 = vadd.xlane.f32.xlu2 %v921_v44  ;;  %v918_v26 = vsel %vm869_vm12, %v4573_v23, 0.0 }
 0x2b8   : > { %v878_v4 = vpop.xlane.xlu2 %877  ;;  %919 = vadd.xlane.f32.xlu1 %v918_v26  ;;  %v3849_v26 = vpack.i.bf16 %v4474_v60, %v4482_v61 }
 0x2b9   : > { %v896_v25 = vsub.f32 %v790_v57, %v878_v4 }
 0x2bb   : > { %v906_v53 = vmul.f32 1.442695, %v896_v25 }
 0x2bd   : > { %3934 = vpow2.f32 %v906_v53 }
 0x2c0   : > { %v890_v29 = vpop.xlane.xlu2 %889  ;;  %v881_v30 = vpop.xlane.xlu0 %880 }
 0x2c1   : > { %v900_v32 = vsub.f32 %v864_v7, %v890_v29  ;;  %v897_v3 = vsub.f32 %v4524_v47, %v881_v30 }
 0x2c3   : > { %v4577_v36 = vpop.eup %3934  ;;  %v914_v38 = vmul.f32 1.442695, %v900_v32  ;;  %v908_v10 = vmul.f32 1.442695, %v897_v3 }
 0x2c4   : > { %v924_v9 = vsel %vm869_vm12, %v4577_v36, 0.0 }
 0x2c5   : > { %3936 = vpow2.f32 %v914_v38  ;;  %925 = vadd.xlane.f32.xlu0 %v924_v9  ;;  %v3854_v38 = vpack.i.bf16 %v4470_v28, %v4480_v35 }
 0x2c8   : > { %v884_v41 = vpop.xlane.xlu1 %883  ;;  %v893_v43 = vpop.xlane.xlu0 %892 }
 0x2c9   : > { %v898_v0 = vsub.f32 %v827_v33, %v884_v41  ;;  %v901_v46 = vsub.f32 %v4529_v63, %v893_v43 }
 0x2cb   : > { %v4581_v21 = vpop.eup %3936  ;;  %v910_v45 = vmul.f32 1.442695, %v898_v0  ;;  %v916_v49 = vmul.f32 1.442695, %v901_v46 }
 0x2cc   : > { %v936_v48 = vsel %vm869_vm12, %v4581_v21, 0.0 }
 0x2cd   : > { %3938 = vpow2.f32 %v910_v45  ;;  %937 = vadd.xlane.f32.xlu0 %v936_v48 }
 0x2ce   : > { %3940 = vpow2.f32 %v916_v49 }
 0x2d0   : > { %v887_v50 = vpop.xlane.xlu2 %886 }
 0x2d1   : > { %v899_v51 = vsub.f32 %v830_v14, %v887_v50  ;;  %1291 = vrot.lane.b32.xlu1 %v4480_v35, %s4126_s17 }
 0x2d3   : > { %v4588_v52 = vpop.eup %3938  ;;  %v912_v54 = vmul.f32 1.442695, %v899_v51 }
 0x2d4   : > { %v930_v55 = vsel %vm869_vm12, %v4588_v52, 0.0  ;;  %v4592_v57 = vpop.eup %3940 }
 0x2d5   : > { %3942 = vpow2.f32 %v912_v54  ;;  %931 = vadd.xlane.f32.xlu0 %v930_v55  ;;  %v939_v58 = vsel %vm869_vm12, %v4592_v57, 0.0 }
 0x2d6   : > { %3944 = vpow2.f32 %v908_v10 }
 0x2d8   : > { %v3826_v40 = vpop.permute.xlu2 %3825 }
 0x2d9   : > { %v3827_v56 = vunpack.i.l.bf16 %v3826_v40  ;;  %v3828_v7 = vunpack.i.h.bf16 %v3826_v40 }
 0x2db   : > { %v4594_v2 = vpop.eup %3942  ;;  %1088 = vmatpush.msrb.mxu2 %v3827_v56  ;;  %v1220_v12 = vpop.permute.xlu0 %1219 }
 0x2dc   : > { %v933_v39 = vsel %vm869_vm12, %v4594_v2, 0.0  ;;  %v4613_v47 = vpop.eup %3944 }
 0x2dd   : > { %934 = vadd.xlane.f32.xlu2 %v933_v39  ;;  %1089 = vmatpush.msrb.mxu2 %v3828_v7  ;;  %v927_v22 = vsel %vm869_vm12, %v4613_v47, 0.0 }
 0x2de   : > { %940 = vadd.xlane.f32.xlu0 %v939_v58 }
 0x2e0   : > { %v3831_v59 = vpop.permute.xlu1 %3830 }
 0x2e1   : > { %v3832_v62 = vunpack.i.l.bf16 %v3831_v59  ;;  %v3833_v63 = vunpack.i.h.bf16 %v3831_v59 }
 0x2e3   : > { %1123 = vmatpush.msrb.mxu3 %v3832_v62  ;;  %v4600_v18 = vpop.permute.xlu0 %1213 }
 0x2e5   : > { %1124 = vmatpush.msrb.mxu3 %v3833_v63 }
 0x2e7   : > { %3684 = vmatpush.xpose.msk.msra.mxu3 %vm726_vm11, %v1220_v12 }
 0x2e8   : > { %v3836_v33 = vpop.permute.xlu1 %3835 }
 0x2e9   : > { %v3837_v5 = vunpack.i.l.bf16 %v3836_v33  ;;  %v3838_v6 = vunpack.i.h.bf16 %v3836_v33 }
 0x2eb   : > { %1193 = vmatpush.msra.mxu2 %v3837_v5  ;;  %v4604_v14 = vpop.permute.xlu0 %1297 }
 0x2ed   : > { %1194 = vmatpush.msra.mxu2 %v3838_v6 }
 0x2f0   : > { %v1218_v11 = vpop.permute.xlu1 %1217 }
 0x2f1   : > { %3685 = vmatpush.xpose.msk.msra.mxu3 %vm726_vm11, %v1218_v11 }
 0x2f2   : > { %1293 = vrot.lane.b32.xlu0 %v4482_v61, %s4126_s17 }
 0x2f3   : > { %v4609_v17 = vpop.permute.xlu0 %1295 }
 0x2f5   : > { %1256 = vrot.lane.b32.xlu2 %v4470_v28, %s4124_s15 }
 0x2f8   : > { %v3841_v19 = vpop.permute.xlu1 %3840 }
 0x2f9   : > { %v3842_v44 = vunpack.i.l.bf16 %v3841_v19  ;;  %v3843_v20 = vunpack.i.h.bf16 %v3841_v19 }
 0x2fa   : > { %1334 = vrot.lane.b32.xlu0 %v4486_v37, %s4124_s15 }
 0x2fb   : > { %1158 = vmatpush.msra.mxu1 %v3842_v44  ;;  %928 = vadd.xlane.f32.xlu1 %v927_v22  ;;  %v1259_v34 = vpop.permute.xlu0 %1258 }
 0x2fd   : > { %1332 = vrot.lane.b32.xlu2 %v4477_v31, %s4126_s17  ;;  %1159 = vmatpush.msra.mxu1 %v3843_v20 }
 0x2ff   : > { %3688 = vmatpush.xpose.msk.msrb.mxu1 %vm726_vm11, %v1259_v34 }
 0x300   : > { %v4633_v4 = vpop.permute.xlu1 %1215 }
 0x302   : > { %1330 = vrot.lane.b32.xlu0 %v4486_v37, %s4126_s17 }
 0x305   : > { %1751 = vrot.lane.b32.xlu2 %v4465_v24, %s4127_s18 }
 0x30a   : > { %3850 = vrot.lane.b32.xlu0 %v3849_v26, %s4128_s19 }
 0x314   : > { %1252 = vrot.lane.b32.xlu1 %v4470_v28, %s4126_s17  ;;  %v923_v25 = vpop.xlane.xlu2 %922 }
 0x315   : > { %3946 = vrcp.f32 %v923_v25  ;;  %v968_v56 = vand.u32 2147483648, %v923_v25  ;;  %vm962_vm3 = vweird.f32 %v923_v25  ;;  %v966_v7 = vand.u32 2147483647, %v923_v25 }
 0x317   : > { %v969_v63 = vor.u32 1.1754944e-38, %v968_v56  ;;  %vm967_vm5 = vcmp.eq.f32.partialorder %v966_v7, 8.507059e+37 }
 0x31b   : > { %v3947_v29 = vpop.eup %3946 }
 0x31c   : > { %1336 = vrot.lane.b32.xlu1 %v4477_v31, %s4124_s15  ;;  %v958_v30 = vmul.f32 %v3947_v29, %v923_v25  ;;  %vm963_vm2 = vweird.f32 %v3947_v29 }
 0x31d   : > { %vm964_vm4 = vmor %vm962_vm3, %vm963_vm2 }
 0x31e   : > { %v959_v9 = vsub.f32 1.0, %v958_v30 }
 0x320   : > { %v960_v48 = vmul.f32 %v3947_v29, %v959_v9 }
 0x322   : > { %v961_v55 = vadd.f32 %v3947_v29, %v960_v48 }
 0x324   : > { %1254 = vrot.lane.b32.xlu1 %v4474_v60, %s4126_s17  ;;  %v965_v58 = vsel %vm964_vm4, %v3947_v29, %v961_v55  ;;  %s4132_s17 = smov 104  }
 0x325   : > { %v970_v3 = vsel %vm967_vm5, %v969_v63, %v965_v58 }
 0x326   : > { %v971_v10 = vmul.f32 %v4569_v1, %v970_v3 }
 0x32b   : > { %v920_v53 = vpop.xlane.xlu1 %919 }
 0x32c   : > { %3948 = vrcp.f32 %v920_v53  ;;  %3845 = vrot.lane.b32.xlu1 %v4546_v13, %s4128_s19  ;;  %v953_v43 = vand.u32 2147483648, %v920_v53  ;;  %v951_v46 = vand.u32 2147483647, %v920_v53  ;;  %vm947_vm14 = vweird.f32 %v920_v53 }
 0x32e   : > { %v954_v51 = vor.u32 1.1754944e-38, %v953_v43  ;;  %vm952_vm1 = vcmp.eq.f32.partialorder %v951_v46, 8.507059e+37 }
 0x332   : > { %v3949_v32 = vpop.eup %3948 }
 0x333   : > { %v943_v41 = vmul.f32 %v3949_v32, %v920_v53  ;;  %vm948_vm13 = vweird.f32 %v3949_v32 }
 0x334   : > { %3855 = vrot.lane.b32.xlu1 %v3854_v38, %s4128_s19  ;;  %vm949_vm15 = vmor %vm947_vm14, %vm948_vm13 }
 0x335   : > { %v944_v0 = vsub.f32 1.0, %v943_v41 }
 0x337   : > { %v945_v45 = vmul.f32 %v3949_v32, %v944_v0 }
 0x338   : > { %v926_v49 = vpop.xlane.xlu0 %925 }
 0x339   : > { %v946_v50 = vadd.f32 %v3949_v32, %v945_v45  ;;  %3950 = vrcp.f32 %v926_v49  ;;  %v981_v6 = vand.u32 2147483647, %v926_v49  ;;  %vm977_vm7 = vweird.f32 %v926_v49 }
 0x33b   : > { %v950_v54 = vsel %vm949_vm15, %v3949_v32, %v946_v50  ;;  %vm982_vm9 = vcmp.eq.f32.partialorder %v981_v6, 8.507059e+37 }
 0x33c   : > { %v955_v40 = vsel %vm952_vm1, %v954_v51, %v950_v54 }
 0x33d   : > { %v956_v12 = vmul.f32 %v4573_v23, %v955_v40  ;;  %v983_v23 = vand.u32 2147483648, %v926_v49 }
 0x33f   : > { %v3951_v39 = vpop.eup %3950  ;;  %3674 = vmatmul.msk.f32.vlgmr.msrb.gmra.mxu2 %vm869_vm12, %v956_v12  ;;  %v984_v44 = vor.u32 1.1754944e-38, %v983_v23 }
 0x340   : > { %v973_v59 = vmul.f32 %v3951_v39, %v926_v49  ;;  %3692 = vmatpush.xpose.msk.msrb.mxu2 %vm726_vm11, %v4604_v14  ;;  %v938_v62 = vpop.xlane.xlu0 %937  ;;  %vm978_vm6 = vweird.f32 %v3951_v39 }
 0x341   : > { %3952 = vrcp.f32 %v938_v62  ;;  %vm979_vm8 = vmor %vm977_vm7, %vm978_vm6  ;;  %v1043_v25 = vand.u32 2147483648, %v938_v62  ;;  %v1041_v1 = vand.u32 2147483647, %v938_v62  ;;  %vm1037_vm13 = vweird.f32 %v938_v62 }
 0x342   : > { %v974_v33 = vsub.f32 1.0, %v973_v59 }
 0x343   : > { %v1044_v32 = vor.u32 1.1754944e-38, %v1043_v25  ;;  %vm1042_vm15 = vcmp.eq.f32.partialorder %v1041_v1, 8.507059e+37  ;;  %v1292_v25 = vpop.permute.xlu1 %1291 }
 0x344   : > { %v975_v5 = vmul.f32 %v3951_v39, %v974_v33  ;;  %3693 = vmatpush.xpose.msk.msrb.mxu2 %vm726_vm11, %v4609_v17 }
 0x346   : > { %v976_v11 = vadd.f32 %v3951_v39, %v975_v5 }
 0x347   : > { %v3953_v19 = vpop.eup %3952  ;;  %3675 = vmatmul.msk.f32.gmra.mxu2 %vm869_vm12, %v971_v10 }
 0x348   : > { %v980_v14 = vsel %vm979_vm8, %v3951_v39, %v976_v11  ;;  %v1033_v22 = vmul.f32 %v3953_v19, %v938_v62  ;;  %v932_v20 = vpop.xlane.xlu0 %931  ;;  %vm1038_vm10 = vweird.f32 %v3953_v19 }
 0x349   : > { %3954 = vrcp.f32 %v932_v20  ;;  %v985_v26 = vsel %vm982_vm9, %v984_v44, %v980_v14  ;;  %vm1039_vm14 = vmor %vm1037_vm13, %vm1038_vm10  ;;  %v1013_v46 = vand.u32 2147483648, %v932_v20  ;;  %v1011_v49 = vand.u32 2147483647, %v932_v20 }
 0x34a   : > { %v1034_v34 = vsub.f32 1.0, %v1033_v22  ;;  %v986_v17 = vmul.f32 %v4577_v36, %v985_v26  ;;  %vm1007_vm2 = vweird.f32 %v932_v20 }
 0x34b   : > { %v1014_v54 = vor.u32 1.1754944e-38, %v1013_v46  ;;  %vm1012_vm4 = vcmp.eq.f32.partialorder %v1011_v49, 8.507059e+37 }
 0x34c   : > { %v1035_v53 = vmul.f32 %v3953_v19, %v1034_v34  ;;  %3676 = vmatmul.msk.f32.vlgmr.msrb.gmra.mxu3 %vm869_vm12, %v986_v17 }
 0x34e   : > { %v1036_v29 = vadd.f32 %v3953_v19, %v1035_v53 }
 0x34f   : > { %v3955_v30 = vpop.eup %3954 }
 0x350   : > { %v1040_v38 = vsel %vm1039_vm14, %v3953_v19, %v1036_v29  ;;  %v1003_v9 = vmul.f32 %v3955_v30, %v932_v20  ;;  %v935_v41 = vpop.xlane.xlu2 %934  ;;  %vm1008_vm1 = vweird.f32 %v3955_v30 }
 0x351   : > { %3956 = vrcp.f32 %v935_v41  ;;  %v941_v0 = vpop.xlane.xlu0 %940  ;;  %v1045_v43 = vsel %vm1042_vm15, %v1044_v32, %v1040_v38  ;;  %vm1009_vm3 = vmor %vm1007_vm2, %vm1008_vm1  ;;  %v1028_v62 = vand.u32 2147483648, %v935_v41  ;;  %v1026_v33 = vand.u32 2147483647, %v935_v41 }
 0x352   : > { %v1004_v45 = vsub.f32 1.0, %v1003_v9  ;;  %3958 = vrcp.f32 %v941_v0  ;;  %v1046_v36 = vmul.f32 %v4581_v21, %v1045_v43  ;;  %v1058_v3 = vand.u32 2147483648, %v941_v0 }
 0x353   : > { %v1056_v23 = vand.u32 2147483647, %v941_v0  ;;  %vm1022_vm7 = vweird.f32 %v935_v41  ;;  %v1029_v10 = vor.u32 1.1754944e-38, %v1028_v62  ;;  %vm1052_vm9 = vweird.f32 %v941_v0 }
 0x354   : > { %v1005_v48 = vmul.f32 %v3955_v30, %v1004_v45  ;;  %3680 = vmatmul.msk.f32.vlgmr.msra.gmra.mxu2 %vm869_vm12, %v1046_v36  ;;  %vm1027_vm10 = vcmp.eq.f32.partialorder %v1026_v33, 8.507059e+37  ;;  %v3682_v33 = vld [vmem:[%s5517_s4 + $0x10] sm:$0xff] }
 0x355   : > { %vm1057_vm14 = vcmp.eq.f32.partialorder %v1056_v23, 8.507059e+37 }
 0x356   : > { %v1006_v50 = vadd.f32 %v3955_v30, %v1005_v48 }
 0x357   : > { %v3957_v51 = vpop.eup %3956 }
 0x358   : > { %v3959_v55 = vpop.eup %3958  ;;  %v1010_v40 = vsel %vm1009_vm3, %v3955_v30, %v1006_v50  ;;  %v1018_v56 = vmul.f32 %v3957_v51, %v935_v41  ;;  %v1257_v12 = vpop.permute.xlu2 %1256  ;;  %vm1023_vm5 = vweird.f32 %v3957_v51 }
 0x359   : > { %v1048_v7 = vmul.f32 %v3959_v55, %v941_v0  ;;  %3689 = vmatpush.xpose.msk.msrb.mxu1 %vm726_vm11, %v1257_v12  ;;  %v1015_v21 = vsel %vm1012_vm4, %v1014_v54, %v1010_v40  ;;  %vm1053_vm6 = vweird.f32 %v3959_v55  ;;  %vm1024_vm8 = vmor %vm1022_vm7, %vm1023_vm5 }
 0x35a   : > { %v1019_v39 = vsub.f32 1.0, %v1018_v56  ;;  %v1016_v58 = vmul.f32 %v4588_v52, %v1015_v21  ;;  %vm1054_vm13 = vmor %vm1052_vm9, %vm1053_vm6  ;;  %v1059_v52 = vor.u32 1.1754944e-38, %v1058_v3 }
 0x35b   : > { %v1049_v59 = vsub.f32 1.0, %v1048_v7 }
 0x35c   : > { %3678 = vmatmul.msk.f32.vlgmr.msra.gmra.mxu1 %vm869_vm12, %v1016_v58  ;;  %v1020_v63 = vmul.f32 %v3957_v51, %v1019_v39 }
 0x35d   : > { %v1050_v5 = vmul.f32 %v3959_v55, %v1049_v59 }
 0x35e   : > { %v1021_v6 = vadd.f32 %v3957_v51, %v1020_v63 }
 0x35f   : > { %v1051_v11 = vadd.f32 %v3959_v55, %v1050_v5 }
 0x360   : > { %v1025_v19 = vsel %vm1024_vm8, %v3957_v51, %v1021_v6  ;;  %v3683_v6 = vld [vmem:[%s5517_s4 + $0x18] sm:$0xff] }
 0x361   : > { %v1030_v14 = vsel %vm1027_vm10, %v1029_v10, %v1025_v19  ;;  %v1055_v44 = vsel %vm1054_vm13, %v3959_v55, %v1051_v11 }
 0x362   : > { %v1031_v22 = vmul.f32 %v4594_v2, %v1030_v14  ;;  %v1060_v20 = vsel %vm1057_vm14, %v1059_v52, %v1055_v44 }
 0x363   : > { %v1061_v34 = vmul.f32 %v4592_v57, %v1060_v20 }
 0x364   : > { %v1294_v26 = vpop.permute.xlu0 %1293  ;;  %3679 = vmatmul.msk.f32.gmra.mxu1 %vm869_vm12, %v1031_v22 }
 0x365   : > { %3681 = vmatmul.msk.f32.gmra.mxu2 %vm869_vm12, %v1061_v34 }
 0x36c   : > { %v1335_v17 = vpop.permute.xlu0 %1334 }
 0x36d   : > { %3694 = vmatmul.msk.f32.vlgmr.msrb.gmra.mxu2 %vm726_vm11, %v1292_v25 }
 0x36e   : > { %v929_v53 = vpop.xlane.xlu1 %928 }
 0x36f   : > { %3960 = vrcp.f32 %v929_v53  ;;  %v998_v32 = vand.u32 2147483648, %v929_v53  ;;  %v996_v57 = vand.u32 2147483647, %v929_v53  ;;  %vm992_vm1 = vweird.f32 %v929_v53 }
 0x371   : > { %v999_v0 = vor.u32 1.1754944e-38, %v998_v32  ;;  %vm997_vm3 = vcmp.eq.f32.partialorder %v996_v57, 8.507059e+37 }
 0x374   : > { %v1331_v1 = vpop.permute.xlu0 %1330 }
 0x375   : > { %v3961_v29 = vpop.eup %3960  ;;  %3695 = vmatmul.msk.f32.gmra.mxu2 %vm726_vm11, %v1294_v26 }
 0x376   : > { %v988_v30 = vmul.f32 %v3961_v29, %v929_v53  ;;  %vm993_vm15 = vweird.f32 %v3961_v29 }
 0x377   : > { %vm994_vm2 = vmor %vm992_vm1, %vm993_vm15 }
 0x378   : > { %v989_v2 = vsub.f32 1.0, %v988_v30 }
 0x37a   : > { %v990_v38 = vmul.f32 %v3961_v29, %v989_v2 }
 0x37c   : > { %v3851_v9 = vpop.permute.xlu0 %3850  ;;  %v991_v41 = vadd.f32 %v3961_v29, %v990_v38 }
 0x37d   : > { %v3853_v43 = vunpack.i.h.bf16 %v3851_v9  ;;  %v3852_v45 = vunpack.i.l.bf16 %v3851_v9 }
 0x37e   : > { %v995_v36 = vsel %vm994_vm2, %v3961_v29, %v991_v41 }
 0x37f   : > { %1622 = vmatpush.msra.mxu1 %v3853_v43  ;;  %1657 = vmatpush.msra.mxu2 %v3852_v45  ;;  %v1000_v46 = vsel %vm997_vm3, %v999_v0, %v995_v36 }
 0x380   : > { %v1001_v48 = vmul.f32 %v4613_v47, %v1000_v46  ;;  %v1333_v47 = vpop.permute.xlu2 %1332 }
 0x382   : > { %3677 = vmatmul.msk.f32.gmra.mxu3 %vm869_vm12, %v1001_v48 }
 0x386   : > { %v1253_v49 = vpop.permute.xlu1 %1252 }
 0x387   : > { %3690 = vmatmul.msk.f32.vlgmr.msrb.gmra.mxu1 %vm726_vm11, %v1253_v49 }
 0x38a   : > { %3686 = vmatmul.msk.f32.vlgmr.msra.gmra.mxu3 %vm726_vm11, %v4600_v18  ;;  %v1752_v18 = vpop.permute.xlu2 %1751 }
 0x38e   : > { %v1337_v50 = vpop.permute.xlu1 %1336 }
 0x38f   : > { %3696 = vmatpush.xpose.msk.msrb.mxu3 %vm726_vm11, %v1337_v50 }
 0x392   : > { %3687 = vmatmul.msk.f32.gmra.mxu3 %vm726_vm11, %v4633_v4 }
 0x393   : > { %3697 = vmatpush.xpose.msk.msrb.mxu3 %vm726_vm11, %v1335_v17 }
 0x396   : > { %v1255_v51 = vpop.permute.xlu1 %1254 }
 0x397   : > { %3691 = vmatmul.msk.f32.gmra.mxu1 %vm726_vm11, %v1255_v51 }
 0x39a   : > { %3698 = vmatmul.msk.f32.vlgmr.msrb.gmra.mxu3 %vm726_vm11, %v1331_v1 }
 0x39e   : > { %v3846_v54 = vpop.permute.xlu1 %3845 }
 0x39f   : > { %v3847_v55 = vunpack.i.l.bf16 %v3846_v54  ;;  %v3848_v40 = vunpack.i.h.bf16 %v3846_v54 }
 0x3a1   : > { %1587 = vmatpush.msrb.mxu0 %v3847_v55 }
 0x3a2   : > { %3699 = vmatmul.msk.f32.gmra.mxu3 %vm726_vm11, %v1333_v47 }
 0x3a3   : > { %1588 = vmatpush.msrb.mxu0 %v3848_v40 }
 0x3a5   : > { %3710 = vmatpush.xpose.msk.msra.mxu0 %vm726_vm11, %v1752_v18 }
 0x3a6   : > { %v3856_v56 = vpop.permute.xlu1 %3855 }
 0x3a7   : > { %v3858_v4 = vunpack.i.h.bf16 %v3856_v56  ;;  %v3857_v12 = vunpack.i.l.bf16 %v3856_v56 }
 0x3a9   : > { %1623 = vmatpush.msra.mxu1 %v3858_v4  ;;  %1658 = vmatpush.msra.mxu2 %v3857_v12 }
 0x3c2   : > { %v1091_v7 = vpop.f32.mrf.mxu2 }
 0x3c3   : > { %1202 = vst.msk [vmem:[#allocation2] sm:$0xff] %vm726_vm11, %v1091_v7 }
 0x3ca   : > { %v1094_v21 = vpop.f32.mrf.mxu2 }
 0x3cb   : > { %1203 = vst.msk [vmem:[#allocation2 + $0x8] sm:$0xff] %vm726_vm11, %v1094_v21 }
 0x3cf   : > { %v1126_v39 = vpop.f32.mrf.mxu3 }
 0x3d0   : > { %1204 = vst.msk [vmem:[#allocation2 + $0x10] sm:$0xff] %vm726_vm11, %v1126_v39 }
 0x3d7   : > { %v1196_v58 = vpop.f32.mrf.mxu2 }
 0x3d8   : > { %1208 = vst.msk [vmem:[#allocation2 + $0x30] sm:$0xff] %vm726_vm11, %v1196_v58 }
 0x3d9   : > { %v1161_v59 = vpop.f32.mrf.mxu1 }
 0x3da   : > { %1206 = vst.msk [vmem:[#allocation2 + $0x20] sm:$0xff] %vm726_vm11, %v1161_v59 }
 0x3e1   : > { %v1164_v62 = vpop.f32.mrf.mxu1 }
 0x3e2   : > { %1207 = vst.msk [vmem:[#allocation2 + $0x28] sm:$0xff] %vm726_vm11, %v1164_v62 }
 0x3e8   : > { %v1199_v63 = vpop.f32.mrf.mxu2 }
 0x3e9   : > { %1209 = vst.msk [vmem:[#allocation2 + $0x38] sm:$0xff] %vm726_vm11, %v1199_v63 }
 0x3f0   : > { %v1324_v3 = vpop.f32.mrf.mxu2 }
 0x3f1   : > { %v1325_v5 = vadd.f32 %v3682_v33, %v1324_v3 }
 0x3f3   : > { %v1381_v23 = vsel %vm869_vm12, %v1325_v5, -inf }
 0x3f4   : > { %1382 = vmax.xlane.f32.xlu2 %v1381_v23 }
 0x3f8   : > { %v1327_v10 = vpop.f32.mrf.mxu2 }
 0x3f9   : > { %v1328_v11 = vadd.f32 %v3683_v6, %v1327_v10 }
 0x3fb   : > { %v1384_v19 = vsel %vm869_vm12, %v1328_v11, -inf }
 0x3fc   : > { %1385 = vmax.xlane.f32.xlu2 %v1384_v19 }
 0x404   : > { %v1285_v20 = vpop.f32.mrf.mxu1 }
 0x405   : > { %v1129_v52 = vpop.f32.mrf.mxu3  ;;  %v4693_v34 = vadd.f32 %v3682_v33, %v1285_v20 }
 0x406   : > { %1205 = vst.msk [vmem:[#allocation2 + $0x18] sm:$0xff] %vm726_vm11, %v1129_v52 }
 0x407   : > { %v1375_v53 = vsel %vm869_vm12, %v4693_v34, -inf }
 0x40d   : > { %v1246_v14 = vpop.f32.mrf.mxu3 }
 0x40e   : > { %v1247_v44 = vadd.f32 %v3682_v33, %v1246_v14 }
 0x410   : > { %v1369_v22 = vsel %vm869_vm12, %v1247_v44, -inf }
 0x411   : > { %1370 = vmax.xlane.f32.xlu1 %v1369_v22 }
 0x414   : > { %v1288_v1 = vpop.f32.mrf.mxu1 }
 0x415   : > { %v1249_v26 = vpop.f32.mrf.mxu3  ;;  %v4698_v29 = vadd.f32 %v3683_v6, %v1288_v1 }
 0x416   : > { %v1250_v25 = vadd.f32 %v3683_v6, %v1249_v26 }
 0x417   : > { %v1378_v32 = vsel %vm869_vm12, %v4698_v29, -inf }
 0x418   : > { %v1372_v17 = vsel %vm869_vm12, %v1250_v25, -inf }
 0x419   : > { %1373 = vmax.xlane.f32.xlu0 %v1372_v17  ;;  %1376 = vmax.xlane.f32.xlu1 %v1375_v53 }
 0x41d   : > { %v1363_v30 = vpop.f32.mrf.mxu3 }
 0x41e   : > { %v4700_v2 = vadd.f32 %v3682_v33, %v1363_v30 }
 0x420   : > { %v1387_v38 = vsel %vm869_vm12, %v4700_v2, -inf }
 0x421   : > { %1379 = vmax.xlane.f32.xlu0 %v1378_v32  ;;  %1388 = vmax.xlane.f32.xlu1 %v1387_v38 }
 0x425   : > { %v1366_v57 = vpop.f32.mrf.mxu3 }
 0x426   : > { %v1367_v9 = vadd.f32 %v3683_v6, %v1366_v57 }
 0x428   : > { %v1390_v41 = vsel %vm869_vm12, %v1367_v9, -inf }
 0x429   : > { %1391 = vmax.xlane.f32.xlu2 %v1390_v41 }
 0x441   : > { %1745 = vrot.lane.b32.xlu2 %v4468_v27, %s4129_s28 }
 0x449   : > { %1747 = vrot.lane.b32.xlu2 %v4465_v24, %s4129_s28 }
 0x451   : > { %3860 = vrot.lane.b32.xlu2 %v4550_v15, %s4128_s19 }
 0x459   : > { %1788 = vrot.lane.b32.xlu2 %v4470_v28, %s4127_s18 }
 0x461   : > { %1784 = vrot.lane.b32.xlu2 %v4470_v28, %s4129_s28 }
 0x467   : > { %v1383_v0 = vpop.xlane.xlu2 %1382 }
 0x468   : > { %v1397_v43 = vsub.f32 %v1325_v5, %v1383_v0 }
 0x46a   : > { %v1409_v45 = vmul.f32 1.442695, %v1397_v43 }
 0x46c   : > { %3962 = vpow2.f32 %v1409_v45 }
 0x46f   : > { %v1386_v36 = vpop.xlane.xlu2 %1385 }
 0x470   : > { %v1398_v46 = vsub.f32 %v1328_v11, %v1386_v36 }
 0x472   : > { %v1411_v48 = vmul.f32 1.442695, %v1398_v46  ;;  %v4717_v51 = vpop.eup %3962 }
 0x473   : > { %v1429_v54 = vsel %vm869_vm12, %v4717_v51, 0.0 }
 0x474   : > { %3964 = vpow2.f32 %v1411_v48 }
 0x47a   : > { %v4721_v18 = vpop.eup %3964 }
 0x47b   : > { %v1432_v7 = vsel %vm869_vm12, %v4721_v18, 0.0 }
 0x484   : > { %v1371_v49 = vpop.xlane.xlu1 %1370 }
 0x485   : > { %v1393_v50 = vsub.f32 %v1247_v44, %v1371_v49 }
 0x487   : > { %v1401_v47 = vmul.f32 1.442695, %v1393_v50 }
 0x489   : > { %3966 = vpow2.f32 %v1401_v47 }
 0x48a   : > { %1430 = vadd.xlane.f32.xlu2 %v1429_v54 }
 0x48c   : > { %v1374_v55 = vpop.xlane.xlu0 %1373  ;;  %v1377_v6 = vpop.xlane.xlu1 %1376 }
 0x48d   : > { %v1394_v40 = vsub.f32 %v1250_v25, %v1374_v55  ;;  %v1395_v19 = vsub.f32 %v4693_v34, %v1377_v6 }
 0x48f   : > { %v4723_v56 = vpop.eup %3966  ;;  %v1403_v4 = vmul.f32 1.442695, %v1394_v40  ;;  %v1405_v52 = vmul.f32 1.442695, %v1395_v19 }
 0x490   : > { %v1417_v12 = vsel %vm869_vm12, %v4723_v56, 0.0 }
 0x491   : > { %1418 = vadd.xlane.f32.xlu0 %v1417_v12  ;;  %3968 = vpow2.f32 %v1403_v4 }
 0x492   : > { %1433 = vadd.xlane.f32.xlu2 %v1432_v7 }
 0x494   : > { %v1389_v14 = vpop.xlane.xlu1 %1388  ;;  %v1380_v20 = vpop.xlane.xlu0 %1379 }
 0x495   : > { %v1399_v44 = vsub.f32 %v4700_v2, %v1389_v14  ;;  %v1396_v17 = vsub.f32 %v4698_v29, %v1380_v20 }
 0x497   : > { %v4729_v21 = vpop.eup %3968  ;;  %v1413_v22 = vmul.f32 1.442695, %v1399_v44  ;;  %v1407_v34 = vmul.f32 1.442695, %v1396_v17 }
 0x498   : > { %v1420_v39 = vsel %vm869_vm12, %v4729_v21, 0.0 }
 0x499   : > { %1421 = vadd.xlane.f32.xlu1 %v1420_v39 }
 0x49c   : > { %v1392_v58 = vpop.xlane.xlu2 %1391 }
 0x49d   : > { %v1400_v5 = vsub.f32 %v1367_v9, %v1392_v58 }
 0x49f   : > { %v1415_v23 = vmul.f32 1.442695, %v1400_v5 }
 0x4a1   : > { %3970 = vpow2.f32 %v1415_v23 }
 0x4a2   : > { %3972 = vpow2.f32 %v1405_v52 }
 0x4a3   : > { %3974 = vpow2.f32 %v1413_v22 }
 0x4a4   : > { %v4733_v59 = vpop.permute.xlu2 %1745  ;;  %3976 = vpow2.f32 %v1407_v34 }
 0x4a5   : > { %1829 = vrot.lane.b32.xlu0 %v4482_v61, %s4127_s18 }
 0x4a7   : > { %v4757_v10 = vpop.eup %3970 }
 0x4a8   : > { %v1438_v11 = vsel %vm869_vm12, %v4757_v10, 0.0  ;;  %v4763_v26 = vpop.eup %3972 }
 0x4a9   : > { %v1423_v53 = vsel %vm869_vm12, %v4763_v26, 0.0  ;;  %v4770_v1 = vpop.eup %3974 }
 0x4aa   : > { %1868 = vrot.lane.b32.xlu2 %v4477_v31, %s4127_s18  ;;  %v1435_v2 = vsel %vm869_vm12, %v4770_v1, 0.0  ;;  %v4778_v32 = vpop.eup %3976 }
 0x4ab   : > { %v1426_v38 = vsel %vm869_vm12, %v4778_v32, 0.0 }
 0x4ac   : > { %v4739_v62 = vpop.permute.xlu2 %1747 }
 0x4ad   : > { %1790 = vrot.lane.b32.xlu0 %v4474_v60, %s4127_s18 }
 0x4b2   : > { %1862 = vrot.lane.b32.xlu2 %v4486_v37, %s4129_s28  ;;  %1749 = vrot.lane.b32.xlu1 %v4468_v27, %s4127_s18 }
 0x4b4   : > { %v3861_v63 = vpop.permute.xlu2 %3860 }
 0x4b5   : > { %v3862_v33 = vunpack.i.l.bf16 %v3861_v63  ;;  %1827 = vrot.lane.b32.xlu0 %v4480_v35, %s4127_s18  ;;  %v3863_v3 = vunpack.i.h.bf16 %v3861_v63 }
 0x4b7   : > { %1692 = vmatpush.msra.mxu3 %v3862_v33 }
 0x4b9   : > { %1693 = vmatpush.msra.mxu3 %v3863_v3 }
 0x4ba   : > { %3865 = vrot.lane.b32.xlu2 %v4546_v13, %s4130_s29 }
 0x4bc   : > { %v4765_v25 = vpop.permute.xlu2 %1788 }
 0x4bd   : > { %1823 = vrot.lane.b32.xlu0 %v4480_v35, %s4129_s28 }
 0x4c2   : > { %2281 = vrot.lane.b32.xlu2 %v4468_v27, %s4131_s30 }
 0x4c4   : > { %v4772_v30 = vpop.permute.xlu2 %1784 }
 0x4c5   : > { %1825 = vrot.lane.b32.xlu0 %v4482_v61, %s4129_s28 }
 0x4dc   : > { %1439 = vadd.xlane.f32.xlu1 %v1438_v11 }
 0x4ef   : > { %1424 = vadd.xlane.f32.xlu0 %v1423_v53 }
 0x4f5   : > { %1866 = vrot.lane.b32.xlu1 %v4486_v37, %s4127_s18 }
 0x4f7   : > { %1436 = vadd.xlane.f32.xlu0 %v1435_v2 }
 0x4fd   : > { %v1431_v29 = vpop.xlane.xlu2 %1430  ;;  %2283 = vrot.lane.b32.xlu1 %v4465_v24, %s4131_s30 }
 0x4fe   : > { %3978 = vrcp.f32 %v1431_v29  ;;  %v1512_v45 = vand.u32 2147483648, %v1431_v29  ;;  %v1510_v46 = vand.u32 2147483647, %v1431_v29  ;;  %vm1506_vm5 = vweird.f32 %v1431_v29 }
 0x4ff   : > { %1427 = vadd.xlane.f32.xlu0 %v1426_v38 }
 0x500   : > { %v1513_v47 = vor.u32 1.1754944e-38, %v1512_v45  ;;  %vm1511_vm7 = vcmp.eq.f32.partialorder %v1510_v46, 8.507059e+37 }
 0x504   : > { %v3979_v57 = vpop.eup %3978  ;;  %v1419_v9 = vpop.xlane.xlu0 %1418 }
 0x505   : > { %v1502_v41 = vmul.f32 %v3979_v57, %v1431_v29  ;;  %3980 = vrcp.f32 %v1419_v9  ;;  %v1434_v0 = vpop.xlane.xlu2 %1433  ;;  %vm1507_vm4 = vweird.f32 %v3979_v57  ;;  %v1452_v58 = vand.u32 2147483648, %v1419_v9 }
 0x506   : > { %3982 = vrcp.f32 %v1434_v0  ;;  %vm1508_vm6 = vmor %vm1506_vm5, %vm1507_vm4  ;;  %v1450_v5 = vand.u32 2147483647, %v1419_v9  ;;  %v1527_v23 = vand.u32 2147483648, %v1434_v0  ;;  %v1525_v11 = vand.u32 2147483647, %v1434_v0 }
 0x507   : > { %v1503_v43 = vsub.f32 1.0, %v1502_v41  ;;  %vm1446_vm10 = vweird.f32 %v1419_v9  ;;  %v1453_v52 = vor.u32 1.1754944e-38, %v1452_v58  ;;  %vm1521_vm14 = vweird.f32 %v1434_v0 }
 0x508   : > { %vm1451_vm15 = vcmp.eq.f32.partialorder %v1450_v5, 8.507059e+37  ;;  %vm1526_vm2 = vcmp.eq.f32.partialorder %v1525_v11, 8.507059e+37 }
 0x509   : > { %v1504_v36 = vmul.f32 %v3979_v57, %v1503_v43 }
 0x50b   : > { %v3981_v48 = vpop.eup %3980  ;;  %v1505_v49 = vadd.f32 %v3979_v57, %v1504_v36 }
 0x50c   : > { %v3983_v50 = vpop.eup %3982  ;;  %v1442_v54 = vmul.f32 %v3981_v48, %v1419_v9  ;;  %v1422_v4 = vpop.xlane.xlu1 %1421  ;;  %vm1447_vm8 = vweird.f32 %v3981_v48 }
 0x50d   : > { %v1509_v55 = vsel %vm1508_vm6, %v3979_v57, %v1505_v49  ;;  %v1517_v40 = vmul.f32 %v3983_v50, %v1434_v0  ;;  %v1869_v12 = vpop.permute.xlu2 %1868  ;;  %3984 = vrcp.f32 %v1422_v4  ;;  %vm1522_vm9 = vweird.f32 %v3983_v50  ;;  %vm1448_vm13 = vmor %vm1446_vm10, %vm1447_vm8 }
 0x50e   : > { %v1514_v7 = vsel %vm1511_vm7, %v1513_v47, %v1509_v55  ;;  %v1443_v39 = vsub.f32 1.0, %v1442_v54  ;;  %3722 = vmatpush.xpose.msk.msrb.mxu3 %vm726_vm11, %v1869_v12  ;;  %vm1523_vm1 = vmor %vm1521_vm14, %vm1522_vm9  ;;  %v1467_v9 = vand.u32 2147483648, %v1422_v4  ;;  %v1465_v43 = vand.u32 2147483647, %v1422_v4 }
 0x50f   : > { %v1518_v63 = vsub.f32 1.0, %v1517_v40  ;;  %v1515_v33 = vmul.f32 %v4717_v51, %v1514_v7  ;;  %v1528_v51 = vor.u32 1.1754944e-38, %v1527_v23  ;;  %vm1461_vm4 = vweird.f32 %v1422_v4 }
 0x510   : > { %v1444_v3 = vmul.f32 %v3981_v48, %v1443_v39  ;;  %v1468_v45 = vor.u32 1.1754944e-38, %v1467_v9  ;;  %vm1466_vm6 = vcmp.eq.f32.partialorder %v1465_v43, 8.507059e+37 }
 0x511   : > { %v1519_v6 = vmul.f32 %v3983_v50, %v1518_v63  ;;  %3704 = vmatmul.msk.f32.vlgmr.msra.gmra.mxu2 %vm869_vm12, %v1515_v33 }
 0x512   : > { %v1445_v19 = vadd.f32 %v3981_v48, %v1444_v3 }
 0x513   : > { %1786 = vrot.lane.b32.xlu0 %v4474_v60, %s4129_s28  ;;  %v1520_v14 = vadd.f32 %v3983_v50, %v1519_v6  ;;  %v3985_v44 = vpop.eup %3984 }
 0x514   : > { %v1449_v22 = vsel %vm1448_vm13, %v3981_v48, %v1445_v19  ;;  %v1457_v20 = vmul.f32 %v3985_v44, %v1422_v4  ;;  %vm1462_vm3 = vweird.f32 %v3985_v44 }
 0x515   : > { %v1454_v17 = vsel %vm1451_vm15, %v1453_v52, %v1449_v22  ;;  %v1524_v53 = vsel %vm1523_vm1, %v3983_v50, %v1520_v14  ;;  %v4791_v41 = vpop.permute.xlu2 %1862  ;;  %vm1463_vm5 = vmor %vm1461_vm4, %vm1462_vm3 }
 0x516   : > { %v1455_v34 = vmul.f32 %v4723_v56, %v1454_v17  ;;  %v1529_v2 = vsel %vm1526_vm2, %v1528_v51, %v1524_v53  ;;  %v1458_v29 = vsub.f32 1.0, %v1457_v20 }
 0x517   : > { %v1830_v38 = vpop.permute.xlu0 %1829  ;;  %v1530_v57 = vmul.f32 %v4721_v18, %v1529_v2 }
 0x518   : > { %3700 = vmatmul.msk.f32.vlgmr.msrb.gmra.mxu0 %vm869_vm12, %v1455_v34  ;;  %3718 = vmatpush.xpose.msk.msrb.mxu2 %vm726_vm11, %v1830_v38  ;;  %v1459_v0 = vmul.f32 %v3985_v44, %v1458_v29 }
 0x519   : > { %3705 = vmatmul.msk.f32.gmra.mxu2 %vm869_vm12, %v1530_v57 }
 0x51a   : > { %v1460_v56 = vadd.f32 %v3985_v44, %v1459_v0 }
 0x51b   : > { %1864 = vrot.lane.b32.xlu0 %v4477_v31, %s4129_s28  ;;  %s4135_s28 = smov 8  }
 0x51c   : > { %v1464_v18 = vsel %vm1463_vm5, %v3985_v44, %v1460_v56 }
 0x51d   : > { %v1469_v36 = vsel %vm1466_vm6, %v1468_v45, %v1464_v18  ;;  %v3866_v49 = vpop.permute.xlu2 %3865 }
 0x51e   : > { %v1470_v48 = vmul.f32 %v4729_v21, %v1469_v36  ;;  %v3867_v50 = vunpack.i.l.bf16 %v3866_v49  ;;  %v3868_v55 = vunpack.i.h.bf16 %v3866_v49 }
 0x51f   : > { %v1791_v46 = vpop.permute.xlu0 %1790 }
 0x520   : > { %3714 = vmatpush.xpose.msk.msrb.mxu1 %vm726_vm11, %v1791_v46  ;;  %3701 = vmatmul.msk.f32.gmra.mxu0 %vm869_vm12, %v1470_v48 }
 0x523   : > { %3870 = vrot.lane.b32.xlu0 %v4539_v8, %s4130_s29 }
 0x524   : > { %3715 = vmatpush.xpose.msk.msrb.mxu1 %vm726_vm11, %v4765_v25  ;;  %v1750_v47 = vpop.permute.xlu1 %1749 }
 0x525   : > { %3711 = vmatpush.xpose.msk.msra.mxu0 %vm726_vm11, %v1750_v47  ;;  %v2282_v20 = vpop.permute.xlu2 %2281 }
 0x527   : > { %v1828_v54 = vpop.permute.xlu0 %1827 }
 0x528   : > { %3719 = vmatpush.xpose.msk.msrb.mxu2 %vm726_vm11, %v1828_v54  ;;  %3712 = vmatmul.msk.f32.vlgmr.msra.gmra.mxu0 %vm726_vm11, %v4733_v59 }
 0x529   : > { %2119 = vmatpush.msrb.mxu0 %v3867_v50 }
 0x52b   : > { %2120 = vmatpush.msrb.mxu0 %v3868_v55 }
 0x52f   : > { %v1824_v21 = vpop.permute.xlu0 %1823 }
 0x530   : > { %3720 = vmatmul.msk.f32.vlgmr.msrb.gmra.mxu2 %vm726_vm11, %v1824_v21  ;;  %3713 = vmatmul.msk.f32.gmra.mxu0 %vm726_vm11, %v4739_v62 }
 0x537   : > { %v1826_v25 = vpop.permute.xlu0 %1825 }
 0x538   : > { %3721 = vmatmul.msk.f32.gmra.mxu2 %vm726_vm11, %v1826_v25 }
 0x54f   : > { %v4813_v40 = vpop.xlane.xlu1 %1439 }
 0x550   : > { %v1557_v45 = vand.u32 2147483648, %v4813_v40  ;;  %vm1551_vm3 = vweird.f32 %v4813_v40  ;;  %v1555_v48 = vand.u32 2147483647, %v4813_v40 }
 0x552   : > { %v1558_v55 = vor.u32 1.1754944e-38, %v1557_v45 }
 0x562   : > { %v1425_v4 = vpop.xlane.xlu0 %1424 }
 0x563   : > { %3986 = vrcp.f32 %v1425_v4  ;;  %v1482_v62 = vand.u32 2147483648, %v1425_v4  ;;  %v1480_v5 = vand.u32 2147483647, %v1425_v4  ;;  %vm1476_vm8 = vweird.f32 %v1425_v4 }
 0x564   : > { %3988 = vrcp.f32 %v4813_v40 }
 0x565   : > { %v1483_v19 = vor.u32 1.1754944e-38, %v1482_v62  ;;  %vm1481_vm10 = vcmp.eq.f32.partialorder %v1480_v5, 8.507059e+37 }
 0x567   : > { %v1867_v12 = vpop.permute.xlu1 %1866 }
 0x568   : > { %3723 = vmatpush.xpose.msk.msrb.mxu3 %vm726_vm11, %v1867_v12 }
 0x569   : > { %v3987_v7 = vpop.eup %3986 }
 0x56a   : > { %v1472_v59 = vmul.f32 %v3987_v7, %v1425_v4  ;;  %v1437_v39 = vpop.xlane.xlu0 %1436  ;;  %v4817_v58 = vpop.eup %3988  ;;  %vm1477_vm7 = vweird.f32 %v3987_v7 }
 0x56b   : > { %3990 = vrcp.f32 %v1437_v39  ;;  %v1547_v33 = vmul.f32 %v4817_v58, %v4813_v40  ;;  %vm1478_vm9 = vmor %vm1476_vm8, %vm1477_vm7  ;;  %v1542_v34 = vand.u32 2147483648, %v1437_v39  ;;  %v1540_v38 = vand.u32 2147483647, %v1437_v39 }
 0x56c   : > { %v1473_v63 = vsub.f32 1.0, %v1472_v59  ;;  %vm1536_vm14 = vweird.f32 %v1437_v39  ;;  %vm1552_vm1 = vweird.f32 %v4817_v58  ;;  %vm1556_vm7 = vcmp.eq.f32.partialorder %v1555_v48, 8.507059e+37 }
 0x56d   : > { %v1548_v52 = vsub.f32 1.0, %v1547_v33  ;;  %v1543_v0 = vor.u32 1.1754944e-38, %v1542_v34  ;;  %vm1541_vm2 = vcmp.eq.f32.partialorder %v1540_v38, 8.507059e+37  ;;  %vm1553_vm4 = vmor %vm1551_vm3, %vm1552_vm1 }
 0x56e   : > { %v1474_v3 = vmul.f32 %v3987_v7, %v1473_v63 }
 0x56f   : > { %v2284_v6 = vpop.permute.xlu1 %2283  ;;  %v1549_v2 = vmul.f32 %v4817_v58, %v1548_v52 }
 0x570   : > { %v1475_v23 = vadd.f32 %v3987_v7, %v1474_v3  ;;  %3736 = vmatpush.xpose.msk.msra.mxu0 %vm726_vm11, %v2284_v6  ;;  %v3709_v6 = vld [vmem:[%s5517_s4 + $0x28] sm:$0xff] }
 0x571   : > { %v3991_v11 = vpop.eup %3990  ;;  %v1550_v56 = vadd.f32 %v4817_v58, %v1549_v2 }
 0x572   : > { %v1479_v14 = vsel %vm1478_vm9, %v3987_v7, %v1475_v23  ;;  %v1532_v44 = vmul.f32 %v3991_v11, %v1437_v39  ;;  %v1428_v51 = vpop.xlane.xlu0 %1427  ;;  %vm1537_vm13 = vweird.f32 %v3991_v11 }
 0x573   : > { %v1484_v22 = vsel %vm1481_vm10, %v1483_v19, %v1479_v14  ;;  %3992 = vrcp.f32 %v1428_v51  ;;  %vm1538_vm15 = vmor %vm1536_vm14, %vm1537_vm13  ;;  %v1497_v49 = vand.u32 2147483648, %v1428_v51  ;;  %v1495_v47 = vand.u32 2147483647, %v1428_v51 }
 0x574   : > { %v1533_v17 = vsub.f32 1.0, %v1532_v44  ;;  %v1485_v53 = vmul.f32 %v4763_v26, %v1484_v22  ;;  %3737 = vmatpush.xpose.msk.msra.mxu0 %vm726_vm11, %v2282_v20  ;;  %v1554_v54 = vsel %vm1553_vm4, %v4817_v58, %v1550_v56  ;;  %vm1491_vm6 = vweird.f32 %v1428_v51 }
 0x575   : > { %v1498_v25 = vor.u32 1.1754944e-38, %v1497_v49  ;;  %v1559_v4 = vsel %vm1556_vm7, %v1558_v55, %v1554_v54  ;;  %vm1496_vm9 = vcmp.eq.f32.partialorder %v1495_v47, 8.507059e+37 }
 0x576   : > { %v1534_v29 = vmul.f32 %v3991_v11, %v1533_v17  ;;  %3702 = vmatmul.msk.f32.vlgmr.msra.gmra.mxu1 %vm869_vm12, %v1485_v53  ;;  %v1560_v7 = vmul.f32 %v4757_v10, %v1559_v4 }
 0x578   : > { %v1535_v57 = vadd.f32 %v3991_v11, %v1534_v29 }
 0x579   : > { %v3993_v9 = vpop.eup %3992 }
 0x57a   : > { %v1539_v43 = vsel %vm1538_vm15, %v3991_v11, %v1535_v57  ;;  %v1487_v26 = vmul.f32 %v3993_v9, %v1428_v51  ;;  %vm1492_vm5 = vweird.f32 %v3993_v9 }
 0x57b   : > { %v1544_v18 = vsel %vm1541_vm2, %v1543_v0, %v1539_v43  ;;  %vm1493_vm8 = vmor %vm1491_vm6, %vm1492_vm5 }
 0x57c   : > { %v1488_v36 = vsub.f32 1.0, %v1487_v26  ;;  %v1545_v46 = vmul.f32 %v4770_v1, %v1544_v18 }
 0x57e   : > { %v1489_v50 = vmul.f32 %v3993_v9, %v1488_v36  ;;  %3706 = vmatmul.msk.f32.vlgmr.msra.gmra.mxu3 %vm869_vm12, %v1545_v46 }
 0x580   : > { %v1490_v21 = vadd.f32 %v3993_v9, %v1489_v50 }
 0x582   : > { %v1494_v12 = vsel %vm1493_vm8, %v3993_v9, %v1490_v21 }
 0x583   : > { %v1499_v1 = vsel %vm1496_vm9, %v1498_v25, %v1494_v12 }
 0x584   : > { %v1500_v40 = vmul.f32 %v4778_v32, %v1499_v1 }
 0x585   : > { %v1787_v59 = vpop.permute.xlu0 %1786 }
 0x586   : > { %3703 = vmatmul.msk.f32.gmra.mxu1 %vm869_vm12, %v1500_v40  ;;  %3707 = vmatmul.msk.f32.gmra.mxu3 %vm869_vm12, %v1560_v7 }
 0x58d   : > { %v1865_v39 = vpop.permute.xlu0 %1864 }
 0x58e   : > { %3716 = vmatmul.msk.f32.vlgmr.msrb.gmra.mxu1 %vm726_vm11, %v4772_v30  ;;  %3724 = vmatmul.msk.f32.vlgmr.msrb.gmra.mxu3 %vm726_vm11, %v4791_v41  ;;  %v3708_v30 = vld [vmem:[%s5517_s4 + $0x20] sm:$0xff] }
 0x594   : > { %v4848_v33 = vpop.f32.mrf.mxu2 }
 0x595   : > { %v4842_v58 = vpop.f32.mrf.mxu0  ;;  %v3871_v63 = vpop.permute.xlu0 %3870 }
 0x596   : > { %v3872_v62 = vunpack.i.l.bf16 %v3871_v63  ;;  %3717 = vmatmul.msk.f32.gmra.mxu1 %vm726_vm11, %v1787_v59  ;;  %3725 = vmatmul.msk.f32.gmra.mxu3 %vm726_vm11, %v1865_v39  ;;  %v3873_v10 = vunpack.i.h.bf16 %v3871_v63 }
 0x598   : > { %2154 = vmatpush.msra.mxu1 %v3872_v62 }
 0x59a   : > { %2155 = vmatpush.msra.mxu1 %v3873_v10 }
 0x59c   : > { %v4854_v23 = vpop.f32.mrf.mxu2 }
 0x59d   : > { %v4846_v32 = vpop.f32.mrf.mxu0 }
 0x5a5   : > { %v1778_v41 = vpop.f32.mrf.mxu0 }
 0x5a6   : > { %v1779_v3 = vadd.f32 %v3708_v30, %v1778_v41 }
 0x5a8   : > { %v1901_v5 = vsel %vm869_vm12, %v1779_v3, -inf }
 0x5a9   : > { %1902 = vmax.xlane.f32.xlu2 %v1901_v5 }
 0x5ad   : > { %v1781_v11 = vpop.f32.mrf.mxu0 }
 0x5ae   : > { %v1782_v19 = vadd.f32 %v3709_v6, %v1781_v11 }
 0x5b0   : > { %v1904_v52 = vsel %vm869_vm12, %v1782_v19, -inf }
 0x5b1   : > { %1905 = vmax.xlane.f32.xlu0 %v1904_v52 }
 0x5b3   : > { %v1856_v14 = vpop.f32.mrf.mxu2 }
 0x5b4   : > { %v1857_v44 = vadd.f32 %v3708_v30, %v1856_v14 }
 0x5b6   : > { %v1913_v51 = vsel %vm869_vm12, %v1857_v44, -inf }
 0x5b7   : > { %1914 = vmax.xlane.f32.xlu2 %v1913_v51 }
 0x5bb   : > { %v1859_v22 = vpop.f32.mrf.mxu2 }
 0x5bc   : > { %v4861_v20 = vadd.f32 %v3709_v6, %v1859_v22 }
 0x5be   : > { %v1916_v17 = vsel %vm869_vm12, %v4861_v20, -inf }
 0x5bf   : > { %1917 = vmax.xlane.f32.xlu2 %v1916_v17 }
 0x5c5   : > { %3875 = vrot.lane.b32.xlu0 %v4562_v16, %s4130_s29 }
 0x5cd   : > { %2279 = vrot.lane.b32.xlu0 %v4465_v24, %s4132_s17 }
 0x5d5   : > { %2322 = vrot.lane.b32.xlu0 %v4474_v60, %s4131_s30 }
 0x5dd   : > { %2320 = vrot.lane.b32.xlu0 %v4470_v28, %s4131_s30 }
 0x5f3   : > { %v4873_v53 = vpop.f32.mrf.mxu1 }
 0x601   : > { %v4875_v34 = vpop.f32.mrf.mxu3 }
 0x603   : > { %v4877_v2 = vpop.f32.mrf.mxu1 }
 0x609   : > { %v4879_v57 = vpop.f32.mrf.mxu3 }
 0x60b   : > { %v1817_v29 = vpop.f32.mrf.mxu1 }
 0x60c   : > { %v1818_v38 = vadd.f32 %v3708_v30, %v1817_v29 }
 0x60e   : > { %v1907_v9 = vsel %vm869_vm12, %v1818_v38, -inf }
 0x60f   : > { %1908 = vmax.xlane.f32.xlu1 %v1907_v9 }
 0x611   : > { %v1895_v26 = vpop.f32.mrf.mxu3 }
 0x612   : > { %v4883_v56 = vadd.f32 %v3708_v30, %v1895_v26 }
 0x613   : > { %v1820_v24 = vpop.f32.mrf.mxu1 }
 0x614   : > { %v1821_v0 = vadd.f32 %v3709_v6, %v1820_v24  ;;  %v1919_v36 = vsel %vm869_vm12, %v4883_v56, -inf }
 0x616   : > { %v1910_v43 = vsel %vm869_vm12, %v1821_v0, -inf }
 0x617   : > { %1911 = vmax.xlane.f32.xlu0 %v1910_v43 }
 0x61c   : > { %v1903_v45 = vpop.xlane.xlu2 %1902 }
 0x61d   : > { %v1925_v18 = vsub.f32 %v1779_v3, %v1903_v45 }
 0x61f   : > { %1920 = vmax.xlane.f32.xlu0 %v1919_v36  ;;  %v1933_v46 = vmul.f32 1.442695, %v1925_v18 }
 0x621   : > { %3994 = vpow2.f32 %v1933_v46 }
 0x624   : > { %v1906_v50 = vpop.xlane.xlu0 %1905 }
 0x625   : > { %v1926_v1 = vsub.f32 %v1782_v19, %v1906_v50 }
 0x627   : > { %v4887_v48 = vpop.eup %3994  ;;  %v1935_v7 = vmul.f32 1.442695, %v1926_v1 }
 0x628   : > { %2277 = vrot.lane.b32.xlu1 %v4468_v27, %s4132_s17  ;;  %v1949_v49 = vsel %vm869_vm12, %v4887_v48, 0.0 }
 0x629   : > { %1950 = vadd.xlane.f32.xlu2 %v1949_v49  ;;  %3996 = vpow2.f32 %v1935_v7 }
 0x62a   : > { %v1915_v40 = vpop.xlane.xlu2 %1914 }
 0x62b   : > { %v1929_v59 = vsub.f32 %v1857_v44, %v1915_v40 }
 0x62d   : > { %v1941_v39 = vmul.f32 1.442695, %v1929_v59 }
 0x62f   : > { %v4909_v62 = vpop.eup %3996  ;;  %3998 = vpow2.f32 %v1941_v39 }
 0x630   : > { %v1952_v30 = vsel %vm869_vm12, %v4909_v62, 0.0 }
 0x632   : > { %v1918_v63 = vpop.xlane.xlu2 %1917 }
 0x633   : > { %2316 = vrot.lane.b32.xlu0 %v4470_v28, %s4132_s17  ;;  %v1898_v28 = vpop.f32.mrf.mxu3  ;;  %v1930_v10 = vsub.f32 %v4861_v20, %v1918_v63 }
 0x634   : > { %v4904_v25 = vadd.f32 %v3709_v6, %v1898_v28 }
 0x635   : > { %v1943_v41 = vmul.f32 1.442695, %v1930_v10  ;;  %v4914_v3 = vpop.eup %3998 }
 0x636   : > { %v1922_v12 = vsel %vm869_vm12, %v4904_v25, -inf  ;;  %v1961_v5 = vsel %vm869_vm12, %v4914_v3, 0.0 }
 0x637   : > { %v3876_v47 = vpop.permute.xlu0 %3875  ;;  %4000 = vpow2.f32 %v1943_v41 }
 0x638   : > { %v3877_v54 = vunpack.i.l.bf16 %v3876_v47  ;;  %v3878_v55 = vunpack.i.h.bf16 %v3876_v47 }
 0x63a   : > { %2189 = vmatpush.msra.mxu2 %v3877_v54 }
 0x63b   : > { %3880 = vrot.lane.b32.xlu0 %v4550_v15, %s4130_s29  ;;  %s4136_s29 = smov 24  }
 0x63c   : > { %2190 = vmatpush.msra.mxu2 %v3878_v55 }
 0x63d   : > { %v4918_v6 = vpop.eup %4000 }
 0x63e   : > { %v1964_v11 = vsel %vm869_vm12, %v4918_v6, 0.0 }
 0x63f   : > { %v4897_v21 = vpop.permute.xlu0 %2279 }
 0x641   : > { %2361 = vrot.lane.b32.xlu2 %v4482_v61, %s4131_s30 }
 0x643   : > { %2359 = vrot.lane.b32.xlu0 %v4480_v35, %s4131_s30 }
 0x647   : > { %v2323_v27 = vpop.permute.xlu0 %2322 }
 0x648   : > { %3740 = vmatpush.xpose.msk.msrb.mxu1 %vm726_vm11, %v2323_v27 }
 0x64f   : > { %v2321_v4 = vpop.permute.xlu0 %2320 }
 0x650   : > { %3741 = vmatpush.xpose.msk.msrb.mxu1 %vm726_vm11, %v2321_v4 }
 0x652   : > { %1923 = vmax.xlane.f32.xlu1 %v1922_v12 }
 0x66d   : > { %1953 = vadd.xlane.f32.xlu0 %v1952_v30 }
 0x675   : > { %1962 = vadd.xlane.f32.xlu0 %v1961_v5 }
 0x67d   : > { %1965 = vadd.xlane.f32.xlu0 %v1964_v11 }
 0x682   : > { %v1909_v19 = vpop.xlane.xlu1 %1908 }
 0x683   : > { %v1927_v52 = vsub.f32 %v1818_v38, %v1909_v19 }
 0x685   : > { %v1937_v14 = vmul.f32 1.442695, %v1927_v52 }
 0x687   : > { %4002 = vpow2.f32 %v1937_v14 }
 0x68a   : > { %v1912_v44 = vpop.xlane.xlu0 %1911 }
 0x68b   : > { %v1928_v51 = vsub.f32 %v1821_v0, %v1912_v44 }
 0x68d   : > { %v4922_v22 = vpop.eup %4002  ;;  %v1939_v20 = vmul.f32 1.442695, %v1928_v51 }
 0x68e   : > { %v1955_v17 = vsel %vm869_vm12, %v4922_v22, 0.0 }
 0x68f   : > { %4004 = vpow2.f32 %v1939_v20  ;;  %1956 = vadd.xlane.f32.xlu1 %v1955_v17 }
 0x691   : > { %2357 = vrot.lane.b32.xlu0 %v4482_v61, %s4132_s17 }
 0x692   : > { %v1921_v29 = vpop.xlane.xlu0 %1920 }
 0x693   : > { %v1931_v9 = vsub.f32 %v4883_v56, %v1921_v29 }
 0x695   : > { %v4929_v24 = vpop.eup %4004  ;;  %v1945_v38 = vmul.f32 1.442695, %v1931_v9 }
 0x696   : > { %v1958_v0 = vsel %vm869_vm12, %v4929_v24, 0.0 }
 0x697   : > { %4006 = vpow2.f32 %v1945_v38  ;;  %1959 = vadd.xlane.f32.xlu1 %v1958_v0 }
 0x699   : > { %2398 = vrot.lane.b32.xlu0 %v4486_v37, %s4131_s30 }
 0x69a   : > { %v2278_v59 = vpop.permute.xlu1 %2277 }
 0x69c   : > { %v1951_v26 = vpop.xlane.xlu2 %1950 }
 0x69d   : > { %v4935_v43 = vpop.eup %4006  ;;  %4008 = vrcp.f32 %v1951_v26  ;;  %v1984_v49 = vand.u32 2147483648, %v1951_v26  ;;  %v1982_v47 = vand.u32 2147483647, %v1951_v26  ;;  %vm1978_vm13 = vweird.f32 %v1951_v26 }
 0x69e   : > { %v1967_v61 = vsel %vm869_vm12, %v4935_v43, 0.0 }
 0x69f   : > { %1968 = vadd.xlane.f32.xlu2 %v1967_v61  ;;  %v1985_v55 = vor.u32 1.1754944e-38, %v1984_v49  ;;  %vm1983_vm15 = vcmp.eq.f32.partialorder %v1982_v47, 8.507059e+37 }
 0x6a1   : > { %2396 = vrot.lane.b32.xlu0 %v4477_v31, %s4132_s17 }
 0x6a3   : > { %v4009_v56 = vpop.eup %4008 }
 0x6a4   : > { %v1974_v45 = vmul.f32 %v4009_v56, %v1951_v26  ;;  %v2362_v18 = vpop.permute.xlu2 %2361  ;;  %vm1979_vm10 = vweird.f32 %v4009_v56 }
 0x6a5   : > { %v4941_v36 = vpop.permute.xlu0 %2316  ;;  %3744 = vmatpush.xpose.msk.msrb.mxu2 %vm726_vm11, %v2362_v18  ;;  %vm1980_vm14 = vmor %vm1978_vm13, %vm1979_vm10 }
 0x6a6   : > { %v1975_v46 = vsub.f32 1.0, %v1974_v45 }
 0x6a8   : > { %v1976_v50 = vmul.f32 %v4009_v56, %v1975_v46 }
 0x6aa   : > { %v1977_v54 = vadd.f32 %v4009_v56, %v1976_v50 }
 0x6ac   : > { %v1981_v27 = vsel %vm1980_vm14, %v4009_v56, %v1977_v54 }
 0x6ad   : > { %v3881_v28 = vpop.permute.xlu0 %3880  ;;  %v1986_v4 = vsel %vm1983_vm15, %v1985_v55, %v1981_v27 }
 0x6ae   : > { %v3882_v12 = vunpack.i.l.bf16 %v3881_v28  ;;  %v1987_v1 = vmul.f32 %v4887_v48, %v1986_v4  ;;  %v3883_v40 = vunpack.i.h.bf16 %v3881_v28 }
 0x6b0   : > { %2224 = vmatpush.msra.mxu3 %v3882_v12  ;;  %3726 = vmatmul.msk.f32.vlgmr.msrb.gmra.mxu0 %vm869_vm12, %v1987_v1 }
 0x6b2   : > { %2225 = vmatpush.msra.mxu3 %v3883_v40 }
 0x6b5   : > { %v2360_v7 = vpop.permute.xlu0 %2359 }
 0x6b6   : > { %3745 = vmatpush.xpose.msk.msrb.mxu2 %vm726_vm11, %v2360_v7 }
 0x6b7   : > { %2318 = vrot.lane.b32.xlu2 %v4474_v60, %s4132_s17 }
 0x6bf   : > { %2400 = vrot.lane.b32.xlu2 %v4477_v31, %s4131_s30 }
 0x6c5   : > { %v1924_v39 = vpop.xlane.xlu1 %1923 }
 0x6c6   : > { %v1932_v63 = vsub.f32 %v4904_v25, %v1924_v39 }
 0x6c7   : > { %2394 = vrot.lane.b32.xlu2 %v4486_v37, %s4132_s17 }
 0x6c8   : > { %v1947_v10 = vmul.f32 1.442695, %v1932_v63 }
 0x6ca   : > { %4010 = vpow2.f32 %v1947_v10 }
 0x6d0   : > { %v4954_v48 = vpop.eup %4010 }
 0x6d1   : > { %v1970_v30 = vsel %vm869_vm12, %v4954_v48, 0.0 }
 0x6d2   : > { %1971 = vadd.xlane.f32.xlu1 %v1970_v30 }
 0x6e0   : > { %v1954_v41 = vpop.xlane.xlu0 %1953 }
 0x6e1   : > { %4012 = vrcp.f32 %v1954_v41  ;;  %v1999_v19 = vand.u32 2147483648, %v1954_v41  ;;  %v1997_v37 = vand.u32 2147483647, %v1954_v41  ;;  %vm1993_vm2 = vweird.f32 %v1954_v41 }
 0x6e3   : > { %v2000_v44 = vor.u32 1.1754944e-38, %v1999_v19  ;;  %vm1998_vm4 = vcmp.eq.f32.partialorder %v1997_v37, 8.507059e+37 }
 0x6e7   : > { %v4013_v60 = vpop.eup %4012 }
 0x6e8   : > { %v1989_v5 = vmul.f32 %v4013_v60, %v1954_v41  ;;  %v1963_v11 = vpop.xlane.xlu0 %1962  ;;  %vm1994_vm1 = vweird.f32 %v4013_v60 }
 0x6e9   : > { %4014 = vrcp.f32 %v1963_v11  ;;  %vm1995_vm3 = vmor %vm1993_vm2, %vm1994_vm1  ;;  %v2044_v0 = vand.u32 2147483648, %v1963_v11  ;;  %vm2038_vm6 = vweird.f32 %v1963_v11 }
 0x6ea   : > { %v1990_v31 = vsub.f32 1.0, %v1989_v5 }
 0x6eb   : > { %2355 = vrot.lane.b32.xlu1 %v4480_v35, %s4132_s17  ;;  %v2042_v35 = vand.u32 2147483647, %v1963_v11  ;;  %v2045_v45 = vor.u32 1.1754944e-38, %v2044_v0 }
 0x6ec   : > { %v1991_v25 = vmul.f32 %v4013_v60, %v1990_v31 }
 0x6ed   : > { %vm2043_vm8 = vcmp.eq.f32.partialorder %v2042_v35, 8.507059e+37 }
 0x6ee   : > { %v1992_v52 = vadd.f32 %v4013_v60, %v1991_v25 }
 0x6ef   : > { %v4015_v14 = vpop.eup %4014 }
 0x6f0   : > { %v2034_v51 = vmul.f32 %v4015_v14, %v1963_v11  ;;  %v1966_v20 = vpop.xlane.xlu0 %1965  ;;  %v1996_v17 = vsel %vm1995_vm3, %v4013_v60, %v1992_v52  ;;  %vm2039_vm5 = vweird.f32 %v4015_v14 }
 0x6f1   : > { %4016 = vrcp.f32 %v1966_v20  ;;  %v2001_v29 = vsel %vm1998_vm4, %v2000_v44, %v1996_v17  ;;  %vm2040_vm7 = vmor %vm2038_vm6, %vm2039_vm5  ;;  %v2059_v54 = vand.u32 2147483648, %v1966_v20  ;;  %v2057_v55 = vand.u32 2147483647, %v1966_v20 }
 0x6f2   : > { %v2035_v9 = vsub.f32 1.0, %v2034_v51  ;;  %v2002_v38 = vmul.f32 %v4909_v62, %v2001_v29  ;;  %vm2053_vm10 = vweird.f32 %v1966_v20 }
 0x6f3   : > { %v2060_v28 = vor.u32 1.1754944e-38, %v2059_v54  ;;  %vm2058_vm14 = vcmp.eq.f32.partialorder %v2057_v55, 8.507059e+37 }
 0x6f4   : > { %v2036_v26 = vmul.f32 %v4015_v14, %v2035_v9  ;;  %3727 = vmatmul.msk.f32.gmra.mxu0 %vm869_vm12, %v2002_v38 }
 0x6f6   : > { %v2037_v61 = vadd.f32 %v4015_v14, %v2036_v26 }
 0x6f7   : > { %v4017_v56 = vpop.eup %4016 }
 0x6f8   : > { %v2041_v18 = vsel %vm2040_vm7, %v4015_v14, %v2037_v61  ;;  %v2049_v46 = vmul.f32 %v4017_v56, %v1966_v20  ;;  %vm2054_vm9 = vweird.f32 %v4017_v56 }
 0x6f9   : > { %v2046_v49 = vsel %vm2043_vm8, %v2045_v45, %v2041_v18  ;;  %vm2055_vm13 = vmor %vm2053_vm10, %vm2054_vm9 }
 0x6fa   : > { %v2050_v50 = vsub.f32 1.0, %v2049_v46  ;;  %v2047_v47 = vmul.f32 %v4914_v3, %v2046_v49 }
 0x6fc   : > { %v2051_v62 = vmul.f32 %v4017_v56, %v2050_v50  ;;  %3730 = vmatmul.msk.f32.vlgmr.msra.gmra.mxu2 %vm869_vm12, %v2047_v47  ;;  %3738 = vmatmul.msk.f32.vlgmr.msra.gmra.mxu0 %vm726_vm11, %v2278_v59 }
 0x6fe   : > { %v2052_v27 = vadd.f32 %v4017_v56, %v2051_v62 }
 0x700   : > { %v2056_v4 = vsel %vm2055_vm13, %v4017_v56, %v2052_v27 }
 0x701   : > { %v2061_v12 = vsel %vm2058_vm14, %v2060_v28, %v2056_v4 }
 0x702   : > { %v1957_v1 = vpop.xlane.xlu1 %1956  ;;  %v2062_v40 = vmul.f32 %v4918_v6, %v2061_v12 }
 0x703   : > { %4018 = vrcp.f32 %v1957_v1  ;;  %v2014_v63 = vand.u32 2147483648, %v1957_v1  ;;  %v2012_v30 = vand.u32 2147483647, %v1957_v1  ;;  %vm2008_vm1 = vweird.f32 %v1957_v1  ;;  %v2358_v26 = vpop.permute.xlu0 %2357 }
 0x704   : > { %3731 = vmatmul.msk.f32.gmra.mxu2 %vm869_vm12, %v2062_v40  ;;  %3739 = vmatmul.msk.f32.gmra.mxu0 %vm726_vm11, %v4897_v21 }
 0x705   : > { %v2015_v6 = vor.u32 1.1754944e-38, %v2014_v63  ;;  %vm2013_vm3 = vcmp.eq.f32.partialorder %v2012_v30, 8.507059e+37 }
 0x709   : > { %v4019_v3 = vpop.eup %4018 }
 0x70a   : > { %v2004_v7 = vmul.f32 %v4019_v3, %v1957_v1  ;;  %v1960_v59 = vpop.xlane.xlu1 %1959  ;;  %vm2009_vm15 = vweird.f32 %v4019_v3 }
 0x70b   : > { %4020 = vrcp.f32 %v1960_v59  ;;  %vm2010_vm2 = vmor %vm2008_vm1, %vm2009_vm15  ;;  %v2029_v25 = vand.u32 2147483648, %v1960_v59  ;;  %v2027_v14 = vand.u32 2147483647, %v1960_v59  ;;  %vm2023_vm5 = vweird.f32 %v1960_v59  ;;  %v2399_v47 = vpop.permute.xlu0 %2398 }
 0x70c   : > { %v2005_v39 = vsub.f32 1.0, %v2004_v7 }
 0x70d   : > { %v2030_v51 = vor.u32 1.1754944e-38, %v2029_v25  ;;  %vm2028_vm7 = vcmp.eq.f32.partialorder %v2027_v14, 8.507059e+37 }
 0x70e   : > { %v2006_v10 = vmul.f32 %v4019_v3, %v2005_v39 }
 0x710   : > { %v2007_v41 = vadd.f32 %v4019_v3, %v2006_v10 }
 0x711   : > { %v4021_v60 = vpop.eup %4020 }
 0x712   : > { %v2011_v5 = vsel %vm2010_vm2, %v4019_v3, %v2007_v41  ;;  %v2019_v11 = vmul.f32 %v4021_v60, %v1960_v59  ;;  %v1969_v19 = vpop.xlane.xlu2 %1968  ;;  %vm2024_vm4 = vweird.f32 %v4021_v60 }
 0x713   : > { %v2016_v31 = vsel %vm2013_vm3, %v2015_v6, %v2011_v5  ;;  %4022 = vrcp.f32 %v1969_v19  ;;  %vm2025_vm6 = vmor %vm2023_vm5, %vm2024_vm4  ;;  %v2072_v56 = vand.u32 2147483647, %v1969_v19  ;;  %vm2068_vm9 = vweird.f32 %v1969_v19  ;;  %v2397_v39 = vpop.permute.xlu0 %2396  ;;  %v3735_v6 = vld [vmem:[%s5517_s4 + $0x38] sm:$0xff] }
 0x714   : > { %v2020_v21 = vsub.f32 1.0, %v2019_v11  ;;  %v2017_v37 = vmul.f32 %v4922_v22, %v2016_v31  ;;  %v2074_v22 = vand.u32 2147483648, %v1969_v19 }
 0x715   : > { %vm2073_vm13 = vcmp.eq.f32.partialorder %v2072_v56, 8.507059e+37 }
 0x716   : > { %v2021_v52 = vmul.f32 %v4021_v60, %v2020_v21  ;;  %3728 = vmatmul.msk.f32.vlgmr.msra.gmra.mxu1 %vm869_vm12, %v2017_v37  ;;  %v2075_v18 = vor.u32 1.1754944e-38, %v2074_v22 }
 0x718   : > { %v2022_v44 = vadd.f32 %v4021_v60, %v2021_v52 }
 0x719   : > { %v4023_v20 = vpop.eup %4022 }
 0x71a   : > { %v2026_v17 = vsel %vm2025_vm6, %v4021_v60, %v2022_v44  ;;  %v2064_v29 = vmul.f32 %v4023_v20, %v1969_v19  ;;  %v2319_v9 = vpop.permute.xlu2 %2318  ;;  %vm2069_vm8 = vweird.f32 %v4023_v20 }
 0x71b   : > { %v2031_v38 = vsel %vm2028_vm7, %v2030_v51, %v2026_v17  ;;  %vm2070_vm10 = vmor %vm2068_vm9, %vm2069_vm8 }
 0x71c   : > { %v2032_v0 = vmul.f32 %v4929_v24, %v2031_v38  ;;  %v2065_v35 = vsub.f32 1.0, %v2064_v29 }
 0x71e   : > { %v2066_v61 = vmul.f32 %v4023_v20, %v2065_v35  ;;  %3729 = vmatmul.msk.f32.gmra.mxu1 %vm869_vm12, %v2032_v0 }
 0x720   : > { %v2067_v45 = vadd.f32 %v4023_v20, %v2066_v61 }
 0x722   : > { %v2071_v46 = vsel %vm2070_vm10, %v4023_v20, %v2067_v45  ;;  %v2401_v49 = vpop.permute.xlu2 %2400 }
 0x723   : > { %v2076_v50 = vsel %vm2073_vm13, %v2075_v18, %v2071_v46  ;;  %3748 = vmatpush.xpose.msk.msrb.mxu3 %vm726_vm11, %v2401_v49 }
 0x724   : > { %v2077_v24 = vmul.f32 %v4935_v43, %v2076_v50 }
 0x726   : > { %3732 = vmatmul.msk.f32.vlgmr.msra.gmra.mxu3 %vm869_vm12, %v2077_v24  ;;  %3742 = vmatmul.msk.f32.vlgmr.msrb.gmra.mxu1 %vm726_vm11, %v4941_v36 }
 0x727   : > { %3749 = vmatpush.xpose.msk.msrb.mxu3 %vm726_vm11, %v2399_v47 }
 0x72a   : > { %v2395_v59 = vpop.permute.xlu2 %2394 }
 0x72d   : > { %v4985_v63 = vpop.f32.mrf.mxu0 }
 0x72e   : > { %3743 = vmatmul.msk.f32.gmra.mxu1 %vm726_vm11, %v2319_v9 }
 0x745   : > { %v1972_v54 = vpop.xlane.xlu1 %1971 }
 0x746   : > { %4024 = vrcp.f32 %v1972_v54  ;;  %v2089_v28 = vand.u32 2147483648, %v1972_v54  ;;  %v2087_v12 = vand.u32 2147483647, %v1972_v54  ;;  %vm2083_vm15 = vweird.f32 %v1972_v54 }
 0x748   : > { %v2090_v1 = vor.u32 1.1754944e-38, %v2089_v28  ;;  %vm2088_vm2 = vcmp.eq.f32.partialorder %v2087_v12, 8.507059e+37 }
 0x74c   : > { %v4025_v62 = vpop.eup %4024 }
 0x74d   : > { %v2079_v55 = vmul.f32 %v4025_v62, %v1972_v54  ;;  %vm2084_vm14 = vweird.f32 %v4025_v62 }
 0x74e   : > { %vm2085_vm1 = vmor %vm2083_vm15, %vm2084_vm14 }
 0x74f   : > { %v2080_v27 = vsub.f32 1.0, %v2079_v55 }
 0x751   : > { %v2081_v4 = vmul.f32 %v4025_v62, %v2080_v27 }
 0x753   : > { %v2082_v43 = vadd.f32 %v4025_v62, %v2081_v4 }
 0x755   : > { %v2086_v40 = vsel %vm2085_vm1, %v4025_v62, %v2082_v43 }
 0x756   : > { %v2091_v36 = vsel %vm2088_vm2, %v2090_v1, %v2086_v40 }
 0x757   : > { %v2092_v3 = vmul.f32 %v4954_v48, %v2091_v36  ;;  %v3734_v48 = vld [vmem:[%s5517_s4 + $0x30] sm:$0xff] }
 0x759   : > { %3733 = vmatmul.msk.f32.gmra.mxu3 %vm869_vm12, %v2092_v3 }
 0x75d   : > { %v2356_v7 = vpop.permute.xlu1 %2355 }
 0x75e   : > { %3746 = vmatmul.msk.f32.vlgmr.msrb.gmra.mxu2 %vm726_vm11, %v2356_v7 }
 0x761   : > { %3750 = vmatmul.msk.f32.vlgmr.msrb.gmra.mxu3 %vm726_vm11, %v2395_v59 }
 0x766   : > { %3747 = vmatmul.msk.f32.gmra.mxu2 %vm726_vm11, %v2358_v26 }
 0x769   : > { %3751 = vmatmul.msk.f32.gmra.mxu3 %vm726_vm11, %v2397_v39 }
 0x771   : > { %v4988_v10 = vpop.f32.mrf.mxu0 }
 0x779   : > { %v2310_v30 = vpop.f32.mrf.mxu0 }
 0x77a   : > { %v2311_v41 = vadd.f32 %v3734_v48, %v2310_v30 }
 0x77c   : > { %v2433_v60 = vsel %vm869_vm12, %v2311_v41, -inf }
 0x77d   : > { %2434 = vmax.xlane.f32.xlu1 %v2433_v60 }
 0x77f   : > { %v5004_v20 = vpop.f32.mrf.mxu2 }
 0x781   : > { %v2313_v5 = vpop.f32.mrf.mxu0 }
 0x782   : > { %v2314_v11 = vadd.f32 %v3735_v6, %v2313_v5 }
 0x784   : > { %v2436_v31 = vsel %vm869_vm12, %v2314_v11, -inf }
 0x785   : > { %2437 = vmax.xlane.f32.xlu2 %v2436_v31 }
 0x787   : > { %v5008_v29 = vpop.f32.mrf.mxu2 }
 0x793   : > { %v4998_v19 = vpop.f32.mrf.mxu1 }
 0x79b   : > { %v5000_v21 = vpop.f32.mrf.mxu1 }
 0x7a3   : > { %v2349_v25 = vpop.f32.mrf.mxu1 }
 0x7a4   : > { %v2350_v37 = vadd.f32 %v3734_v48, %v2349_v25 }
 0x7a6   : > { %v2439_v52 = vsel %vm869_vm12, %v2350_v37, -inf }
 0x7a7   : > { %2440 = vmax.xlane.f32.xlu0 %v2439_v52 }
 0x7a9   : > { %v5006_v17 = vpop.f32.mrf.mxu3 }
 0x7ab   : > { %v2352_v14 = vpop.f32.mrf.mxu1 }
 0x7ac   : > { %v2353_v44 = vadd.f32 %v3735_v6, %v2352_v14 }
 0x7ae   : > { %v2442_v51 = vsel %vm869_vm12, %v2353_v44, -inf }
 0x7af   : > { %2443 = vmax.xlane.f32.xlu1 %v2442_v51 }
 0x7dc   : > { %v5010_v9 = vpop.f32.mrf.mxu3 }
 0x7e1   : > { %v2388_v38 = vpop.f32.mrf.mxu2 }
 0x7e2   : > { %v2389_v0 = vadd.f32 %v3734_v48, %v2388_v38 }
 0x7e4   : > { %v2427_v26 = vpop.f32.mrf.mxu3  ;;  %v2445_v35 = vsel %vm869_vm12, %v2389_v0, -inf }
 0x7e5   : > { %v2428_v22 = vadd.f32 %v3734_v48, %v2427_v26  ;;  %2446 = vmax.xlane.f32.xlu2 %v2445_v35 }
 0x7e7   : > { %v2451_v61 = vsel %vm869_vm12, %v2428_v22, -inf }
 0x7e8   : > { %2452 = vmax.xlane.f32.xlu1 %v2451_v61 }
 0x7e9   : > { %v2391_v56 = vpop.f32.mrf.mxu2 }
 0x7ea   : > { %v5014_v45 = vadd.f32 %v3735_v6, %v2391_v56 }
 0x7ec   : > { %v2430_v18 = vpop.f32.mrf.mxu3  ;;  %v2448_v46 = vsel %vm869_vm12, %v5014_v45, -inf }
 0x7ed   : > { %v2431_v49 = vadd.f32 %v3735_v6, %v2430_v18  ;;  %2449 = vmax.xlane.f32.xlu0 %v2448_v46 }
 0x7ef   : > { %v2454_v50 = vsel %vm869_vm12, %v2431_v49, -inf }
 0x7f0   : > { %v2435_v24 = vpop.xlane.xlu1 %2434  ;;  %2455 = vmax.xlane.f32.xlu2 %v2454_v50 }
 0x7f1   : > { %v2457_v47 = vsub.f32 %v2311_v41, %v2435_v24 }
 0x7f3   : > { %v2465_v54 = vmul.f32 1.442695, %v2457_v47 }
 0x7f5   : > { %4026 = vpow2.f32 %v2465_v54 }
 0x7f8   : > { %v2438_v62 = vpop.xlane.xlu2 %2437 }
 0x7f9   : > { %v2458_v55 = vsub.f32 %v2314_v11, %v2438_v62 }
 0x7fb   : > { %v5019_v27 = vpop.eup %4026  ;;  %v2467_v28 = vmul.f32 1.442695, %v2458_v55 }
 0x7fc   : > { %v2481_v4 = vsel %vm869_vm12, %v5019_v27, 0.0 }
 0x7fd   : > { %4028 = vpow2.f32 %v2467_v28  ;;  %2482 = vadd.xlane.f32.xlu0 %v2481_v4 }
 0x803   : > { %v5023_v12 = vpop.eup %4028 }
 0x804   : > { %v2484_v43 = vsel %vm869_vm12, %v5023_v12, 0.0 }
 0x805   : > { %2485 = vadd.xlane.f32.xlu1 %v2484_v43 }
 0x811   : > { %3885 = vrot.lane.b32.xlu0 %v4546_v13, %s4133_s25 }
 0x81a   : > { %v2441_v1 = vpop.xlane.xlu0 %2440 }
 0x81b   : > { %v2459_v40 = vsub.f32 %v2350_v37, %v2441_v1 }
 0x81d   : > { %v2469_v36 = vmul.f32 1.442695, %v2459_v40 }
 0x81f   : > { %4030 = vpow2.f32 %v2469_v36 }
 0x822   : > { %v2444_v3 = vpop.xlane.xlu1 %2443 }
 0x823   : > { %v2460_v7 = vsub.f32 %v2353_v44, %v2444_v3 }
 0x825   : > { %v5029_v59 = vpop.eup %4030  ;;  %v2471_v39 = vmul.f32 1.442695, %v2460_v7 }
 0x826   : > { %v2487_v48 = vsel %vm869_vm12, %v5029_v59, 0.0 }
 0x827   : > { %4032 = vpow2.f32 %v2471_v39  ;;  %2488 = vadd.xlane.f32.xlu2 %v2487_v48 }
 0x82d   : > { %v5033_v30 = vpop.eup %4032 }
 0x82e   : > { %v2490_v41 = vsel %vm869_vm12, %v5033_v30, 0.0 }
 0x82f   : > { %2491 = vadd.xlane.f32.xlu1 %v2490_v41 }
 0x848   : > { %3890 = vrot.lane.b32.xlu1 %v4539_v8, %s4133_s25 }
 0x858   : > { %v2447_v13 = vpop.xlane.xlu2 %2446 }
 0x859   : > { %v2461_v60 = vsub.f32 %v2389_v0, %v2447_v13 }
 0x85b   : > { %v2473_v6 = vmul.f32 1.442695, %v2461_v60  ;;  %v2453_v5 = vpop.xlane.xlu1 %2452 }
 0x85c   : > { %v2463_v11 = vsub.f32 %v2428_v22, %v2453_v5 }
 0x85d   : > { %4034 = vpow2.f32 %v2473_v6 }
 0x85e   : > { %v2477_v31 = vmul.f32 1.442695, %v2463_v11 }
 0x860   : > { %4036 = vpow2.f32 %v2477_v31  ;;  %v2450_v38 = vpop.xlane.xlu0 %2449 }
 0x861   : > { %v2462_v13 = vsub.f32 %v5014_v45, %v2450_v38 }
 0x863   : > { %v5039_v25 = vpop.eup %4034  ;;  %v2456_v37 = vpop.xlane.xlu2 %2455  ;;  %v2475_v60 = vmul.f32 1.442695, %v2462_v13 }
 0x864   : > { %v2464_v52 = vsub.f32 %v2431_v49, %v2456_v37  ;;  %v2493_v14 = vsel %vm869_vm12, %v5039_v25, 0.0 }
 0x865   : > { %2494 = vadd.xlane.f32.xlu2 %v2493_v14 }
 0x866   : > { %v5043_v44 = vpop.eup %4036  ;;  %v2479_v51 = vmul.f32 1.442695, %v2464_v52 }
 0x867   : > { %v2499_v8 = vsel %vm869_vm12, %v5043_v44, 0.0 }
 0x868   : > { %2500 = vadd.xlane.f32.xlu0 %v2499_v8  ;;  %4038 = vpow2.f32 %v2479_v51 }
 0x86e   : > { %v5047_v0 = vpop.eup %4038 }
 0x86f   : > { %v2502_v35 = vsel %vm869_vm12, %v5047_v0, 0.0 }
 0x870   : > { %v2483_v26 = vpop.xlane.xlu0 %2482 }
 0x871   : > { %4040 = vrcp.f32 %v2483_v26  ;;  %v2516_v50 = vand.u32 2147483648, %v2483_v26  ;;  %vm2510_vm3 = vweird.f32 %v2483_v26  ;;  %v2514_v47 = vand.u32 2147483647, %v2483_v26 }
 0x872   : > { %2503 = vadd.xlane.f32.xlu1 %v2502_v35 }
 0x873   : > { %v2517_v55 = vor.u32 1.1754944e-38, %v2516_v50  ;;  %vm2515_vm5 = vcmp.eq.f32.partialorder %v2514_v47, 8.507059e+37 }
 0x877   : > { %v4041_v22 = vpop.eup %4040 }
 0x878   : > { %v2506_v61 = vmul.f32 %v4041_v22, %v2483_v26  ;;  %v2486_v56 = vpop.xlane.xlu1 %2485  ;;  %vm2511_vm11 = vweird.f32 %v4041_v22 }
 0x879   : > { %4042 = vrcp.f32 %v2486_v56  ;;  %vm2512_vm4 = vmor %vm2510_vm3, %vm2511_vm11  ;;  %vm2525_vm7 = vweird.f32 %v2486_v56  ;;  %v2529_v7 = vand.u32 2147483647, %v2486_v56 }
 0x87a   : > { %v2507_v18 = vsub.f32 1.0, %v2506_v61  ;;  %4044 = vpow2.f32 %v2475_v60 }
 0x87b   : > { %vm2530_vm9 = vcmp.eq.f32.partialorder %v2529_v7, 8.507059e+37 }
 0x87c   : > { %v2508_v46 = vmul.f32 %v4041_v22, %v2507_v18  ;;  %2241 = vrot.lane.b32.xlu0 %v4985_v63, %s4134_s26 }
 0x87d   : > { %3895 = vrot.lane.b32.xlu2 %v4562_v16, %s4133_s25  ;;  %v2531_v16 = vand.u32 2147483648, %v2486_v56 }
 0x87e   : > { %v2509_v49 = vadd.f32 %v4041_v22, %v2508_v46 }
 0x87f   : > { %v4043_v24 = vpop.eup %4042  ;;  %v2532_v48 = vor.u32 1.1754944e-38, %v2531_v16 }
 0x880   : > { %v2521_v54 = vmul.f32 %v4043_v24, %v2486_v56  ;;  %v2513_v62 = vsel %vm2512_vm4, %v4041_v22, %v2509_v49  ;;  %vm2526_vm6 = vweird.f32 %v4043_v24  ;;  %v5064_v6 = vpop.eup %4044 }
 0x881   : > { %v2518_v43 = vsel %vm2515_vm5, %v2517_v55, %v2513_v62  ;;  %vm2527_vm8 = vmor %vm2525_vm7, %vm2526_vm6  ;;  %v2496_v11 = vsel %vm869_vm12, %v5064_v6, 0.0 }
 0x882   : > { %v2522_v28 = vsub.f32 1.0, %v2521_v54  ;;  %v2519_v3 = vmul.f32 %v5019_v27, %v2518_v43 }
 0x883   : > { %v3886_v4 = vpop.permute.xlu0 %3885 }
 0x884   : > { %v2523_v1 = vmul.f32 %v4043_v24, %v2522_v28  ;;  %v3887_v40 = vunpack.i.l.bf16 %v3886_v4  ;;  %1713 = vrot.lane.b32.xlu0 %v4873_v53, %s4135_s28  ;;  %v3888_v63 = vunpack.i.h.bf16 %v3886_v4 }
 0x886   : > { %2651 = vmatpush.msrb.mxu0 %v3887_v40  ;;  %v2524_v36 = vadd.f32 %v4043_v24, %v2523_v1 }
 0x888   : > { %2652 = vmatpush.msrb.mxu0 %v3888_v63  ;;  %v2528_v39 = vsel %vm2527_vm8, %v4043_v24, %v2524_v36  ;;  %vm1733_vm8 = vcmask 130112  }
 0x889   : > { %3752 = vmatmul.msk.f32.vlgmr.msrb.gmra.mxu0 %vm869_vm12, %v2519_v3  ;;  %v2533_v53 = vsel %vm2530_vm9, %v2532_v48, %v2528_v39 }
 0x88a   : > { %v2534_v41 = vmul.f32 %v5023_v12, %v2533_v53 }
 0x88b   : > { %2243 = vrot.lane.b32.xlu1 %v4988_v10, %s4134_s26 }
 0x891   : > { %3753 = vmatmul.msk.f32.gmra.mxu0 %vm869_vm12, %v2534_v41 }
 0x89a   : > { %v2489_v27 = vpop.xlane.xlu2 %2488 }
 0x89b   : > { %4046 = vrcp.f32 %v2489_v27  ;;  %v2546_v8 = vand.u32 2147483648, %v2489_v27  ;;  %vm2540_vm13 = vweird.f32 %v2489_v27  ;;  %v2544_v38 = vand.u32 2147483647, %v2489_v27 }
 0x89d   : > { %v2547_v22 = vor.u32 1.1754944e-38, %v2546_v8  ;;  %vm2545_vm15 = vcmp.eq.f32.partialorder %v2544_v38, 8.507059e+37 }
 0x8a1   : > { %v4047_v31 = vpop.eup %4046 }
 0x8a2   : > { %v2492_v5 = vpop.xlane.xlu1 %2491  ;;  %v2536_v10 = vmul.f32 %v4047_v31, %v2489_v27  ;;  %vm2541_vm10 = vweird.f32 %v4047_v31 }
 0x8a3   : > { %4048 = vrcp.f32 %v2492_v5  ;;  %vm2542_vm14 = vmor %vm2540_vm13, %vm2541_vm10  ;;  %v2561_v49 = vand.u32 2147483648, %v2492_v5  ;;  %vm2555_vm2 = vweird.f32 %v2492_v5  ;;  %v2559_v47 = vand.u32 2147483647, %v2492_v5 }
 0x8a4   : > { %v2537_v37 = vsub.f32 1.0, %v2536_v10 }
 0x8a5   : > { %v2562_v62 = vor.u32 1.1754944e-38, %v2561_v49  ;;  %vm2560_vm3 = vcmp.eq.f32.partialorder %v2559_v47, 8.507059e+37 }
 0x8a6   : > { %2497 = vadd.xlane.f32.xlu2 %v2496_v11  ;;  %v2538_v52 = vmul.f32 %v4047_v31, %v2537_v37 }
 0x8a8   : > { %v2539_v51 = vadd.f32 %v4047_v31, %v2538_v52 }
 0x8a9   : > { %v4049_v12 = vpop.eup %4048 }
 0x8aa   : > { %v2551_v14 = vmul.f32 %v4049_v12, %v2492_v5  ;;  %v2543_v26 = vsel %vm2542_vm14, %v4047_v31, %v2539_v51  ;;  %vm2556_vm1 = vweird.f32 %v4049_v12 }
 0x8ab   : > { %v2548_v56 = vsel %vm2545_vm15, %v2547_v22, %v2543_v26  ;;  %vm2557_vm11 = vmor %vm2555_vm2, %vm2556_vm1 }
 0x8ac   : > { %v2552_v45 = vsub.f32 1.0, %v2551_v14  ;;  %v2549_v24 = vmul.f32 %v5029_v59, %v2548_v56 }
 0x8ae   : > { %v2553_v35 = vmul.f32 %v4049_v12, %v2552_v45 }
 0x8b0   : > { %v2554_v46 = vadd.f32 %v4049_v12, %v2553_v35 }
 0x8b2   : > { %v2558_v54 = vsel %vm2557_vm11, %v4049_v12, %v2554_v46 }
 0x8b3   : > { %v2563_v55 = vsel %vm2560_vm3, %v2562_v62, %v2558_v54 }
 0x8b4   : > { %v2564_v28 = vmul.f32 %v5033_v30, %v2563_v55 }
 0x8ba   : > { %v3891_v61 = vpop.permute.xlu1 %3890 }
 0x8bb   : > { %v3892_v18 = vunpack.i.l.bf16 %v3891_v61  ;;  %v3893_v50 = vunpack.i.h.bf16 %v3891_v61 }
 0x8bd   : > { %2686 = vmatpush.msra.mxu1 %v3892_v18 }
 0x8be   : > { %3900 = vrot.lane.b32.xlu2 %v4550_v15, %s4133_s25 }
 0x8bf   : > { %2687 = vmatpush.msra.mxu1 %v3893_v50 }
 0x8c0   : > { %3754 = vmatmul.msk.f32.vlgmr.msra.gmra.mxu1 %vm869_vm12, %v2549_v24 }
 0x8c6   : > { %1709 = vrot.lane.b32.xlu2 %v4842_v58, %s4135_s28 }
 0x8c8   : > { %3755 = vmatmul.msk.f32.gmra.mxu1 %vm869_vm12, %v2564_v28 }
 0x8ce   : > { %1711 = vrot.lane.b32.xlu2 %v4846_v32, %s4135_s28 }
 0x8d8   : > { %v2495_v15 = vpop.xlane.xlu2 %2494 }
 0x8d9   : > { %4050 = vrcp.f32 %v2495_v15  ;;  %v2576_v16 = vand.u32 2147483648, %v2495_v15  ;;  %v2574_v58 = vand.u32 2147483647, %v2495_v15  ;;  %vm2570_vm5 = vweird.f32 %v2495_v15 }
 0x8db   : > { %v2501_v3 = vpop.xlane.xlu0 %2500  ;;  %v2577_v7 = vor.u32 1.1754944e-38, %v2576_v16  ;;  %vm2575_vm7 = vcmp.eq.f32.partialorder %v2574_v58, 8.507059e+37 }
 0x8dc   : > { %4052 = vrcp.f32 %v2501_v3  ;;  %v2606_v51 = vand.u32 2147483648, %v2501_v3  ;;  %vm2600_vm10 = vweird.f32 %v2501_v3  ;;  %v2604_v45 = vand.u32 2147483647, %v2501_v3 }
 0x8de   : > { %v2607_v35 = vor.u32 1.1754944e-38, %v2606_v51  ;;  %vm2605_vm14 = vcmp.eq.f32.partialorder %v2604_v45, 8.507059e+37  ;;  %v4106_v45 = vld [vmem:[%s4219_s27] sm:$0xff] }
 0x8df   : > { %v4051_v59 = vpop.eup %4050 }
 0x8e0   : > { %v2566_v4 = vmul.f32 %v4051_v59, %v2495_v15  ;;  %v3896_v43 = vpop.permute.xlu2 %3895  ;;  %vm2571_vm4 = vweird.f32 %v4051_v59 }
 0x8e1   : > { %v3897_v1 = vunpack.i.l.bf16 %v3896_v43  ;;  %v3898_v63 = vunpack.i.h.bf16 %v3896_v43  ;;  %vm2572_vm6 = vmor %vm2570_vm5, %vm2571_vm4  ;;  %vm2265_vm5 = vcmask 195712  }
 0x8e2   : > { %v2567_v40 = vsub.f32 1.0, %v2566_v4  ;;  %v4053_v27 = vpop.eup %4052 }
 0x8e3   : > { %2721 = vmatpush.msra.mxu2 %v3897_v1  ;;  %v2596_v11 = vmul.f32 %v4053_v27, %v2501_v3  ;;  %vm2601_vm9 = vweird.f32 %v4053_v27 }
 0x8e4   : > { %v2568_v36 = vmul.f32 %v4051_v59, %v2567_v40  ;;  %vm2602_vm13 = vmor %vm2600_vm10, %vm2601_vm9 }
 0x8e5   : > { %2722 = vmatpush.msra.mxu2 %v3898_v63  ;;  %v2504_v60 = vpop.xlane.xlu1 %2503 }
 0x8e6   : > { %v2569_v30 = vadd.f32 %v4051_v59, %v2568_v36  ;;  %4054 = vrcp.f32 %v2504_v60  ;;  %vm2615_vm15 = vweird.f32 %v2504_v60  ;;  %v2621_v49 = vand.u32 2147483648, %v2504_v60 }
 0x8e7   : > { %v2619_v47 = vand.u32 2147483647, %v2504_v60 }
 0x8e8   : > { %v2573_v32 = vsel %vm2572_vm6, %v4051_v59, %v2569_v30  ;;  %v2622_v59 = vor.u32 1.1754944e-38, %v2621_v49 }
 0x8e9   : > { %v2578_v39 = vsel %vm2575_vm7, %v2577_v7, %v2573_v32  ;;  %vm2620_vm7 = vcmp.eq.f32.partialorder %v2619_v47, 8.507059e+37 }
 0x8ea   : > { %v2579_v48 = vmul.f32 %v5039_v25, %v2578_v39  ;;  %v2597_v25 = vsub.f32 1.0, %v2596_v11 }
 0x8ec   : > { %3756 = vmatmul.msk.f32.vlgmr.msra.gmra.mxu2 %vm869_vm12, %v2579_v48  ;;  %v4055_v31 = vpop.eup %4054  ;;  %v2598_v10 = vmul.f32 %v4053_v27, %v2597_v25 }
 0x8ed   : > { %v2611_v37 = vmul.f32 %v4055_v31, %v2504_v60  ;;  %vm2616_vm1 = vweird.f32 %v4055_v31 }
 0x8ee   : > { %v5080_v53 = vpop.permute.xlu0 %2241  ;;  %v2599_v52 = vadd.f32 %v4053_v27, %v2598_v10  ;;  %vm5090_vm11 = vmor %vm2615_vm15, %vm2616_vm1 }
 0x8ef   : > { %v2612_v14 = vsub.f32 1.0, %v2611_v37 }
 0x8f0   : > { %v2603_v8 = vsel %vm2602_vm13, %v4053_v27, %v2599_v52 }
 0x8f1   : > { %v2613_v38 = vmul.f32 %v4055_v31, %v2612_v14  ;;  %v5165_v14 = vld [vmem:[%s5519_s6] ss:$0 sm:$0xff] }
 0x8f3   : > { %v2614_v46 = vadd.f32 %v4055_v31, %v2613_v38 }
 0x8f5   : > { %v2618_v15 = vsel %vm5090_vm11, %v4055_v31, %v2614_v46 }
 0x8f6   : > { %v1714_v41 = vpop.permute.xlu0 %1713  ;;  %v2623_v40 = vsel %vm2620_vm7, %v2622_v59, %v2618_v15  ;;  %v4108_v15 = vld [vmem:[%s4219_s27 + $0x10] sm:$0xff] }
 0x8f7   : > { %1736 = vst.msk [vmem:[#allocation2 + $0x10] sm:$0xff] %vm1733_vm8, %v1714_v41  ;;  %v2624_v16 = vmul.f32 %v5047_v0, %v2623_v40  ;;  %v2816_v0 = vld [vmem:[%s5518_s5 + $0x10] sm:$0xff] }
 0x8fd   : > { %v2244_v36 = vpop.permute.xlu1 %2243 }
 0x906   : > { %v2654_v13 = vpop.f32.mrf.mxu0 }
 0x907   : > { %2773 = vrot.lane.b32.xlu2 %v2654_v13, %s4136_s29 }
 0x90e   : > { %v2657_v5 = vpop.f32.mrf.mxu0 }
 0x90f   : > { %2775 = vrot.lane.b32.xlu2 %v2657_v5, %s4136_s29 }
 0x917   : > { %2245 = vrot.lane.b32.xlu2 %v4998_v19, %s4134_s26  ;;  %v2608_v19 = vsel %vm2605_vm14, %v2607_v35, %v2603_v8 }
 0x918   : > { %v2609_v62 = vmul.f32 %v5043_v44, %v2608_v19 }
 0x919   : > { %v2498_v12 = vpop.xlane.xlu2 %2497 }
 0x91a   : > { %4056 = vrcp.f32 %v2498_v12  ;;  %v2591_v50 = vand.u32 2147483648, %v2498_v12  ;;  %vm2585_vm3 = vweird.f32 %v2498_v12 }
 0x91c   : > { %v2592_v4 = vor.u32 1.1754944e-38, %v2591_v50 }
 0x91f   : > { %1715 = vrot.lane.b32.xlu2 %v4877_v2, %s4135_s28  ;;  %v2589_v2 = vand.u32 2147483647, %v2498_v12 }
 0x920   : > { %v4057_v26 = vpop.eup %4056 }
 0x921   : > { %v2581_v22 = vmul.f32 %v4057_v26, %v2498_v12  ;;  %v3901_v61 = vpop.permute.xlu2 %3900  ;;  %vm2586_vm2 = vweird.f32 %v4057_v26  ;;  %vm2590_vm6 = vcmp.eq.f32.partialorder %v2589_v2, 8.507059e+37 }
 0x922   : > { %v3902_v56 = vunpack.i.l.bf16 %v3901_v61  ;;  %v3903_v24 = vunpack.i.h.bf16 %v3901_v61  ;;  %vm2587_vm4 = vmor %vm2585_vm3, %vm2586_vm2 }
 0x923   : > { %v2582_v18 = vsub.f32 1.0, %v2581_v22 }
 0x924   : > { %2756 = vmatpush.msra.mxu3 %v3902_v56  ;;  %v4107_v56 = vld [vmem:[%s4219_s27 + $0x8] sm:$0xff] }
 0x925   : > { %v2583_v54 = vmul.f32 %v4057_v26, %v2582_v18 }
 0x926   : > { %2757 = vmatpush.msra.mxu3 %v3903_v24 }
 0x927   : > { %1717 = vrot.lane.b32.xlu2 %v4848_v33, %s4135_s28  ;;  %3758 = vmatmul.msk.f32.vlgmr.msra.gmra.mxu3 %vm869_vm12, %v2609_v62  ;;  %v2584_v28 = vadd.f32 %v4057_v26, %v2583_v54 }
 0x929   : > { %v1710_v44 = vpop.permute.xlu2 %1709  ;;  %v2588_v43 = vsel %vm2587_vm4, %v4057_v26, %v2584_v28 }
 0x92a   : > { %1734 = vst.msk [vmem:[#allocation2] sm:$0xff] %vm1733_vm8, %v1710_v44  ;;  %v2593_v1 = vsel %vm2590_vm6, %v2592_v4, %v2588_v43 }
 0x92b   : > { %v2594_v33 = vmul.f32 %v5064_v6, %v2593_v1  ;;  %2266 = vst.msk [vmem:[#allocation2] sm:$0xff] %vm2265_vm5, %v5080_v53 }
 0x92d   : > { %3757 = vmatmul.msk.f32.gmra.mxu2 %vm869_vm12, %v2594_v33 }
 0x92f   : > { %1719 = vrot.lane.b32.xlu2 %v4854_v23, %s4135_s28  ;;  %3759 = vmatmul.msk.f32.gmra.mxu3 %vm869_vm12, %v2624_v16  ;;  %v2817_v23 = vld [vmem:[%s5518_s5 + $0x18] sm:$0xff]  ;;  %vm2797_vm12 = vcmask 261312  }
 0x930   : > { %2854 = vmatpush.msra.mxu0 %v2817_v23  ;;  %v4109_v16 = vld [vmem:[%s4219_s27 + $0x18] sm:$0xff] }
 0x931   : > { %v1712_v63 = vpop.permute.xlu2 %1711 }
 0x932   : > { %1735 = vst.msk [vmem:[#allocation2 + $0x8] sm:$0xff] %vm1733_vm8, %v1712_v63  ;;  %2855 = vmatpush.msra.mxu0 %v2816_v0 }
 0x933   : > { %2267 = vst.msk [vmem:[#allocation2 + $0x8] sm:$0xff] %vm2265_vm5, %v2244_v36 }
 0x937   : > { %1721 = vrot.lane.b32.xlu2 %v4875_v34, %s4135_s28  ;;  %v2815_v34 = vld [vmem:[%s5518_s5 + $0x8] sm:$0xff] }
 0x938   : > { %2856 = vmatpush.msra.mxu0 %v2815_v34  ;;  %v3117_v34 = vld [vmem:[%s5521_s8 + $0x10] sm:$0xff] }
 0x93d   : > { %v2689_v6 = vpop.f32.mrf.mxu1 }
 0x93e   : > { %2777 = vrot.lane.b32.xlu0 %v2689_v6, %s4136_s29 }
 0x93f   : > { %1723 = vrot.lane.b32.xlu2 %v4879_v57, %s4135_s28  ;;  %v2814_v57 = vld [vmem:[%s5518_s5] sm:$0xff] }
 0x940   : > { %2857 = vmatpush.msra.mxu0 %v2814_v57  ;;  %v3116_v57 = vld [vmem:[%s5521_s8 + $0x8] sm:$0xff] }
 0x945   : > { %v2692_v58 = vpop.f32.mrf.mxu1 }
 0x946   : > { %2247 = vrot.lane.b32.xlu0 %v5000_v21, %s4134_s26  ;;  %2779 = vrot.lane.b32.xlu1 %v2692_v58, %s4136_s29  ;;  %v3118_v58 = vld [vmem:[%s5521_s8 + $0x18] sm:$0xff] }
 0x947   : > { %3159 = vmatpush.msrb.mxu1 %v3118_v58 }
 0x949   : > { %3160 = vmatpush.msrb.mxu1 %v3117_v34 }
 0x94b   : > { %3161 = vmatpush.msrb.mxu1 %v3116_v57  ;;  %v4112_v57 = vld [vmem:[%s4219_s27 + $0x30] sm:$0xff] }
 0x94e   : > { %2249 = vrot.lane.b32.xlu0 %v5004_v20, %s4134_s26 }
 0x956   : > { %2251 = vrot.lane.b32.xlu0 %v5008_v29, %s4134_s26 }
 0x95e   : > { %2253 = vrot.lane.b32.xlu0 %v5006_v17, %s4134_s26 }
 0x961   : > { %v2774_v21 = vpop.permute.xlu2 %2773 }
 0x962   : > { %2798 = vst.msk [vmem:[#allocation2] sm:$0xff] %vm2797_vm12, %v2774_v21 }
 0x966   : > { %2255 = vrot.lane.b32.xlu0 %v5010_v9, %s4134_s26 }
 0x969   : > { %v2776_v30 = vpop.permute.xlu2 %2775  ;;  %v2806_v3 = vld [vmem:[#allocation2] sm:$0xff] }
 0x96a   : > { %2799 = vst.msk [vmem:[#allocation2 + $0x8] sm:$0xff] %vm2797_vm12, %v2776_v30  ;;  %3760 = vmatmul.msk.f32.vlgmr.msra.gmra.mxu0 %vm427_vm0, %v2806_v3  ;;  %v3115_v30 = vld [vmem:[%s5521_s8] sm:$0xff] }
 0x96b   : > { %3162 = vmatpush.msrb.mxu1 %v3115_v30 }
 0x96f   : > { %v2724_v20 = vpop.f32.mrf.mxu2 }
 0x970   : > { %2781 = vrot.lane.b32.xlu1 %v2724_v20, %s4136_s29 }
 0x971   : > { %v2246_v29 = vpop.permute.xlu2 %2245  ;;  %v2807_v7 = vld [vmem:[#allocation2 + $0x8] sm:$0xff] }
 0x972   : > { %2268 = vst.msk [vmem:[#allocation2 + $0x10] sm:$0xff] %vm2265_vm5, %v2246_v29  ;;  %3761 = vmatmul.msk.f32.gmra.mxu0 %vm427_vm0, %v2807_v7 }
 0x979   : > { %v1716_v17 = vpop.permute.xlu2 %1715 }
 0x97a   : > { %1737 = vst.msk [vmem:[#allocation2 + $0x18] sm:$0xff] %vm1733_vm8, %v1716_v17 }
 0x981   : > { %v1718_v32 = vpop.permute.xlu2 %1717 }
 0x982   : > { %1738 = vst.msk [vmem:[#allocation2 + $0x20] sm:$0xff] %vm1733_vm8, %v1718_v32 }
 0x989   : > { %v1720_v9 = vpop.permute.xlu2 %1719 }
 0x98a   : > { %1739 = vst.msk [vmem:[#allocation2 + $0x28] sm:$0xff] %vm1733_vm8, %v1720_v9 }
 0x991   : > { %v1722_v39 = vpop.permute.xlu2 %1721 }
 0x992   : > { %1740 = vst.msk [vmem:[#allocation2 + $0x30] sm:$0xff] %vm1733_vm8, %v1722_v39 }
 0x999   : > { %v1724_v48 = vpop.permute.xlu2 %1723 }
 0x99a   : > { %1741 = vst.msk [vmem:[#allocation2 + $0x38] sm:$0xff] %vm1733_vm8, %v1724_v48  ;;  %v4110_v48 = vld [vmem:[%s4219_s27 + $0x20] sm:$0xff] }
 0x9aa   : > { %v2759_v13 = vpop.f32.mrf.mxu3 }
 0x9b0   : > { %v2727_v53 = vpop.f32.mrf.mxu2  ;;  %v2778_v41 = vpop.permute.xlu0 %2777 }
 0x9b1   : > { %2783 = vrot.lane.b32.xlu1 %v2727_v53, %s4136_s29  ;;  %2800 = vst.msk [vmem:[#allocation2 + $0x10] sm:$0xff] %vm2797_vm12, %v2778_v41 }
 0x9b2   : > { %v2762_v11 = vpop.f32.mrf.mxu3 }
 0x9b8   : > { %v2248_v60 = vpop.permute.xlu0 %2247  ;;  %v2780_v27 = vpop.permute.xlu1 %2779  ;;  %v2808_v5 = vld [vmem:[#allocation2 + $0x10] sm:$0xff] }
 0x9b9   : > { %2785 = vrot.lane.b32.xlu1 %v2759_v13, %s4136_s29  ;;  %2269 = vst.msk [vmem:[#allocation2 + $0x18] sm:$0xff] %vm2265_vm5, %v2248_v60  ;;  %3762 = vmatmul.msk.f32.gmra.mxu0 %vm427_vm0, %v2808_v5 }
 0x9ba   : > { %2801 = vst.msk [vmem:[#allocation2 + $0x18] sm:$0xff] %vm2797_vm12, %v2780_v27 }
 0x9c0   : > { %v2250_v25 = vpop.permute.xlu0 %2249 }
 0x9c1   : > { %2787 = vrot.lane.b32.xlu1 %v2762_v11, %s4136_s29  ;;  %2270 = vst.msk [vmem:[#allocation2 + $0x20] sm:$0xff] %vm2265_vm5, %v2250_v25  ;;  %v2809_v31 = vld [vmem:[#allocation2 + $0x18] sm:$0xff] }
 0x9c2   : > { %3763 = vmatmul.msk.f32.gmra.mxu0 %vm427_vm0, %v2809_v31 }
 0x9c8   : > { %v2252_v10 = vpop.permute.xlu0 %2251 }
 0x9c9   : > { %2271 = vst.msk [vmem:[#allocation2 + $0x28] sm:$0xff] %vm2265_vm5, %v2252_v10 }
 0x9d0   : > { %v2254_v37 = vpop.permute.xlu0 %2253 }
 0x9d1   : > { %2272 = vst.msk [vmem:[#allocation2 + $0x30] sm:$0xff] %vm2265_vm5, %v2254_v37 }
 0x9d8   : > { %v2256_v12 = vpop.permute.xlu0 %2255 }
 0x9d9   : > { %2273 = vst.msk [vmem:[#allocation2 + $0x38] sm:$0xff] %vm2265_vm5, %v2256_v12 }
 0x9e2   : > { %v2782_v52 = vpop.permute.xlu1 %2781 }
 0x9e3   : > { %2802 = vst.msk [vmem:[#allocation2 + $0x20] sm:$0xff] %vm2797_vm12, %v2782_v52 }
 0x9e7   : > { %v2859_v51 = vpop.f32.mrf.mxu0 }
 0x9e8   : > { %v2883_v8 = vadd.f32 %v4106_v45, %v2859_v51 }
 0x9ea   : > { %v5169_v38 = vadd.f32 %v5165_v14, %v2883_v8  ;;  %v2810_v26 = vld [vmem:[#allocation2 + $0x20] sm:$0xff] }
 0x9eb   : > { %3764 = vmatmul.msk.f32.gmra.mxu0 %vm427_vm0, %v2810_v26 }
 0x9ec   : > { %v2905_v35 = vsel %vm427_vm0, %v5169_v38, 0.0  ;;  %v2937_v22 = vmul.f32 %v5169_v38, %v5169_v38 }
 0x9ed   : > { %2906 = vadd.xlane.f32.xlu2 %v2905_v35 }
 0x9ee   : > { %v2945_v61 = vsel %vm427_vm0, %v2937_v22, 0.0 }
 0x9ef   : > { %2946 = vadd.xlane.f32.xlu0 %v2945_v61  ;;  %v2862_v19 = vpop.f32.mrf.mxu0 }
 0x9f0   : > { %v2884_v18 = vadd.f32 %v4107_v56, %v2862_v19  ;;  %v5239_v19 = vld [vmem:[%s5520_s7] ss:$0 sm:$0xff] }
 0x9f2   : > { %v5179_v46 = vadd.f32 %v5165_v14, %v2884_v18 }
 0x9f4   : > { %v2908_v49 = vsel %vm427_vm0, %v5179_v46, 0.0  ;;  %v2938_v50 = vmul.f32 %v5179_v46, %v5179_v46 }
 0x9f5   : > { %2909 = vadd.xlane.f32.xlu1 %v2908_v49 }
 0x9f6   : > { %v2948_v24 = vsel %vm427_vm0, %v2938_v50, 0.0  ;;  %v5244_v50 = vld [vmem:[%s5520_s7 + $0x1] ss:$0 sm:$0xff] }
 0x9f7   : > { %2949 = vadd.xlane.f32.xlu2 %v2948_v24 }
 0xa23   : > { %v2784_v47 = vpop.permute.xlu1 %2783 }
 0xa24   : > { %2803 = vst.msk [vmem:[#allocation2 + $0x28] sm:$0xff] %vm2797_vm12, %v2784_v47 }
 0xa2b   : > { %v2786_v54 = vpop.permute.xlu1 %2785  ;;  %v2811_v62 = vld [vmem:[#allocation2 + $0x28] sm:$0xff] }
 0xa2c   : > { %2804 = vst.msk [vmem:[#allocation2 + $0x30] sm:$0xff] %vm2797_vm12, %v2786_v54  ;;  %3765 = vmatmul.msk.f32.gmra.mxu0 %vm427_vm0, %v2811_v62 }
 0xa33   : > { %v2788_v2 = vpop.permute.xlu1 %2787  ;;  %v2812_v55 = vld [vmem:[#allocation2 + $0x30] sm:$0xff] }
 0xa34   : > { %2805 = vst.msk [vmem:[#allocation2 + $0x38] sm:$0xff] %vm2797_vm12, %v2788_v2  ;;  %3766 = vmatmul.msk.f32.gmra.mxu0 %vm427_vm0, %v2812_v55 }
 0xa36   : > { %v2865_v28 = vpop.f32.mrf.mxu0 }
 0xa37   : > { %v2885_v59 = vadd.f32 %v4108_v15, %v2865_v28 }
 0xa39   : > { %v5193_v4 = vadd.f32 %v5165_v14, %v2885_v59 }
 0xa3b   : > { %v2813_v44 = vld [vmem:[#allocation2 + $0x38] sm:$0xff]  ;;  %v2911_v43 = vsel %vm427_vm0, %v5193_v4, 0.0  ;;  %v2939_v1 = vmul.f32 %v5193_v4, %v5193_v4 }
 0xa3c   : > { %3767 = vmatmul.msk.f32.gmra.mxu0 %vm427_vm0, %v2813_v44  ;;  %2912 = vadd.xlane.f32.xlu0 %v2911_v43 }
 0xa3d   : > { %v2951_v40 = vsel %vm427_vm0, %v2939_v1, 0.0  ;;  %v4111_v1 = vld [vmem:[%s4219_s27 + $0x28] sm:$0xff] }
 0xa3e   : > { %2952 = vadd.xlane.f32.xlu2 %v2951_v40 }
 0xa3f   : > { %v2868_v33 = vpop.f32.mrf.mxu0 }
 0xa40   : > { %v2886_v63 = vadd.f32 %v4109_v16, %v2868_v33 }
 0xa42   : > { %v5203_v36 = vadd.f32 %v5165_v14, %v2886_v63 }
 0xa44   : > { %v2914_v6 = vsel %vm427_vm0, %v5203_v36, 0.0  ;;  %v2940_v23 = vmul.f32 %v5203_v36, %v5203_v36 }
 0xa45   : > { %2915 = vadd.xlane.f32.xlu1 %v2914_v6 }
 0xa46   : > { %v2954_v0 = vsel %vm427_vm0, %v2940_v23, 0.0 }
 0xa47   : > { %2955 = vadd.xlane.f32.xlu0 %v2954_v0 }
 0xa60   : > { %v2907_v21 = vpop.xlane.xlu2 %2906 }
 0xa61   : > { %v2929_v3 = vmul.f32 %v2907_v21, %v4288_v42 }
 0xa62   : > { %v2947_v20 = vpop.xlane.xlu0 %2946 }
 0xa63   : > { %v2977_v29 = vmul.f32 %v2929_v3, %v2929_v3  ;;  %v2969_v7 = vmul.f32 %v2947_v20, %v4288_v42  ;;  %v2993_v61 = vsub.f32 %v5169_v38, %v2929_v3 }
 0xa65   : > { %v2985_v17 = vsub.f32 %v2969_v7, %v2977_v29 }
 0xa67   : > { %v3001_v32 = vadd.f32 1e-05, %v2985_v17 }
 0xa68   : > { %v2871_v9 = vpop.f32.mrf.mxu0  ;;  %v2910_v39 = vpop.xlane.xlu1 %2909 }
 0xa69   : > { %4058 = vrsqrt.f32 %v3001_v32  ;;  %v2887_v53 = vadd.f32 %v4110_v48, %v2871_v9  ;;  %v2930_v41 = vmul.f32 %v2910_v39, %v4288_v42  ;;  %vm3015_vm9 = vweird.f32 %v3001_v32 }
 0xa6a   : > { %v2950_v13 = vpop.xlane.xlu2 %2949 }
 0xa6b   : > { %v5227_v60 = vadd.f32 %v5165_v14, %v2887_v53  ;;  %v2978_v27 = vmul.f32 %v2930_v41, %v2930_v41  ;;  %v2970_v5 = vmul.f32 %v2950_v13, %v4288_v42  ;;  %v2994_v55 = vsub.f32 %v5179_v46, %v2930_v41  ;;  %v4113_v41 = vld [vmem:[%s4219_s27 + $0x38] sm:$0xff] }
 0xa6d   : > { %v2986_v11 = vsub.f32 %v2970_v5, %v2978_v27  ;;  %v2917_v25 = vsel %vm427_vm0, %v5227_v60, 0.0  ;;  %v2941_v31 = vmul.f32 %v5227_v60, %v5227_v60 }
 0xa6e   : > { %2918 = vadd.xlane.f32.xlu2 %v2917_v25 }
 0xa6f   : > { %v4059_v10 = vpop.eup %4058  ;;  %v3002_v37 = vadd.f32 1e-05, %v2986_v11  ;;  %v2957_v12 = vsel %vm427_vm0, %v2941_v31, 0.0 }
 0xa70   : > { %v3010_v52 = vmul.f32 %v4059_v10, %v3001_v32  ;;  %2958 = vadd.xlane.f32.xlu1 %v2957_v12  ;;  %vm3016_vm8 = vweird.f32 %v4059_v10 }
 0xa71   : > { %4060 = vrsqrt.f32 %v3002_v37  ;;  %vm3017_vm10 = vmor %vm3015_vm9, %vm3016_vm8  ;;  %vm3025_vm14 = vweird.f32 %v3002_v37 }
 0xa72   : > { %v3011_v51 = vmul.f32 %v4059_v10, %v3010_v52 }
 0xa74   : > { %v3012_v45 = vmul.f32 0.5, %v3011_v51 }
 0xa76   : > { %v3013_v8 = vsub.f32 1.5, %v3012_v45 }
 0xa77   : > { %v4061_v26 = vpop.eup %4060 }
 0xa78   : > { %v3014_v35 = vmul.f32 %v4059_v10, %v3013_v8  ;;  %v3020_v22 = vmul.f32 %v4061_v26, %v3002_v37  ;;  %vm3026_vm13 = vweird.f32 %v4061_v26 }
 0xa79   : > { %vm3027_vm15 = vmor %vm3025_vm14, %vm3026_vm13 }
 0xa7a   : > { %v3018_v56 = vsel %vm3017_vm10, %v4059_v10, %v3014_v35  ;;  %v3021_v18 = vmul.f32 %v4061_v26, %v3020_v22 }
 0xa7b   : > { %v3089_v49 = vmul.f32 %v3018_v56, %v2993_v61 }
 0xa7c   : > { %v3022_v24 = vmul.f32 0.5, %v3021_v18 }
 0xa7d   : > { %v3098_v47 = vmul.f32 %v5239_v19, %v3089_v49 }
 0xa7e   : > { %v3023_v54 = vsub.f32 1.5, %v3022_v24 }
 0xa7f   : > { %v3107_v62 = vadd.f32 %v5244_v50, %v3098_v47 }
 0xa80   : > { %v3024_v2 = vmul.f32 %v4061_v26, %v3023_v54 }
 0xa81   : > { %3768 = vmatmul.msk.f32.vlgmr.msrb.gmra.mxu1 %vm427_vm0, %v3107_v62 }
 0xa82   : > { %v3028_v28 = vsel %vm3027_vm15, %v4061_v26, %v3024_v2 }
 0xa83   : > { %v3090_v15 = vmul.f32 %v3028_v28, %v2994_v55 }
 0xa85   : > { %v3099_v59 = vmul.f32 %v5239_v19, %v3090_v15 }
 0xa87   : > { %v3108_v44 = vadd.f32 %v5244_v50, %v3099_v59 }
 0xa89   : > { %3769 = vmatmul.msk.f32.gmra.mxu1 %vm427_vm0, %v3108_v44 }
 0xaa9   : > { %v2874_v43 = vpop.f32.mrf.mxu0 }
 0xaaa   : > { %v2888_v40 = vadd.f32 %v4111_v1, %v2874_v43 }
 0xaac   : > { %v5255_v33 = vadd.f32 %v5165_v14, %v2888_v40 }
 0xaae   : > { %v2920_v16 = vsel %vm427_vm0, %v5255_v33, 0.0  ;;  %v2942_v63 = vmul.f32 %v5255_v33, %v5255_v33 }
 0xaaf   : > { %2921 = vadd.xlane.f32.xlu0 %v2920_v16  ;;  %v2913_v6 = vpop.xlane.xlu0 %2912 }
 0xab0   : > { %v2960_v23 = vsel %vm427_vm0, %v2942_v63, 0.0  ;;  %v2931_v0 = vmul.f32 %v2913_v6, %v4288_v42 }
 0xab1   : > { %2961 = vadd.xlane.f32.xlu2 %v2960_v23  ;;  %v2877_v58 = vpop.f32.mrf.mxu0  ;;  %v2953_v34 = vpop.xlane.xlu2 %2952 }
 0xab2   : > { %v2889_v21 = vadd.f32 %v4112_v57, %v2877_v58  ;;  %v2979_v30 = vmul.f32 %v2931_v0, %v2931_v0  ;;  %v2971_v3 = vmul.f32 %v2953_v34, %v4288_v42  ;;  %v2995_v61 = vsub.f32 %v5193_v4, %v2931_v0 }
 0xab4   : > { %v5266_v20 = vadd.f32 %v5165_v14, %v2889_v21  ;;  %v2987_v29 = vsub.f32 %v2971_v3, %v2979_v30  ;;  %v3523_v3 = vld [vmem:[%s5523_s10 + $0x78] sm:$0xff] }
 0xab5   : > { %3528 = vmatpush.msrb.mxu2 %v3523_v3  ;;  %3784 = vmatpush.msrb.mxu3 %v3523_v3 }
 0xab6   : > { %v2923_v7 = vsel %vm427_vm0, %v5266_v20, 0.0  ;;  %v2943_v17 = vmul.f32 %v5266_v20, %v5266_v20  ;;  %v3003_v32 = vadd.f32 1e-05, %v2987_v29 }
 0xab7   : > { %2924 = vadd.xlane.f32.xlu1 %v2923_v7 }
 0xab8   : > { %v2963_v9 = vsel %vm427_vm0, %v2943_v17, 0.0  ;;  %4062 = vrsqrt.f32 %v3003_v32  ;;  %v2916_v39 = vpop.xlane.xlu1 %2915  ;;  %vm3035_vm2 = vweird.f32 %v3003_v32  ;;  %v3522_v17 = vld [vmem:[%s5523_s10 + $0x70] sm:$0xff] }
 0xab9   : > { %2964 = vadd.xlane.f32.xlu0 %v2963_v9  ;;  %v2880_v48 = vpop.f32.mrf.mxu0  ;;  %v2932_v53 = vmul.f32 %v2916_v39, %v4288_v42  ;;  %3529 = vmatpush.msrb.mxu2 %v3522_v17 }
 0xaba   : > { %v2890_v13 = vadd.f32 %v4113_v41, %v2880_v48  ;;  %v2956_v27 = vpop.xlane.xlu0 %2955  ;;  %3785 = vmatpush.msrb.mxu3 %v3522_v17  ;;  %v3521_v48 = vld [vmem:[%s5523_s10 + $0x68] sm:$0xff] }
 0xabb   : > { %v2980_v5 = vmul.f32 %v2932_v53, %v2932_v53  ;;  %v2972_v25 = vmul.f32 %v2956_v27, %v4288_v42  ;;  %v2996_v28 = vsub.f32 %v5203_v36, %v2932_v53  ;;  %3530 = vmatpush.msrb.mxu2 %v3521_v48 }
 0xabc   : > { %v5276_v11 = vadd.f32 %v5165_v14, %v2890_v13  ;;  %3786 = vmatpush.msrb.mxu3 %v3521_v48  ;;  %v3520_v13 = vld [vmem:[%s5523_s10 + $0x60] sm:$0xff] }
 0xabd   : > { %v2988_v31 = vsub.f32 %v2972_v25, %v2980_v5  ;;  %3531 = vmatpush.msrb.mxu2 %v3520_v13  ;;  %v3519_v25 = vld [vmem:[%s5523_s10 + $0x58] sm:$0xff] }
 0xabe   : > { %v2926_v10 = vsel %vm427_vm0, %v5276_v11, 0.0  ;;  %v2944_v37 = vmul.f32 %v5276_v11, %v5276_v11  ;;  %v4063_v12 = vpop.eup %4062  ;;  %3787 = vmatpush.msrb.mxu3 %v3520_v13 }
 0xabf   : > { %2927 = vadd.xlane.f32.xlu2 %v2926_v10  ;;  %v3030_v52 = vmul.f32 %v4063_v12, %v3003_v32  ;;  %v3004_v51 = vadd.f32 1e-05, %v2988_v31  ;;  %vm3036_vm1 = vweird.f32 %v4063_v12  ;;  %v5304_v32 = vld [vmem:[%s5522_s9] ss:$0 sm:$0xff]  ;;  %3532 = vmatpush.msrb.mxu2 %v3519_v25  ;;  %v3518_v10 = vld [vmem:[%s5523_s10 + $0x50] sm:$0xff] }
 0xac0   : > { %v2966_v45 = vsel %vm427_vm0, %v2944_v37, 0.0  ;;  %vm3037_vm11 = vmor %vm3035_vm2, %vm3036_vm1  ;;  %3788 = vmatpush.msrb.mxu3 %v3519_v25 }
 0xac1   : > { %2967 = vadd.xlane.f32.xlu1 %v2966_v45  ;;  %v3031_v8 = vmul.f32 %v4063_v12, %v3030_v52  ;;  %4064 = vrsqrt.f32 %v3004_v51  ;;  %vm3045_vm4 = vweird.f32 %v3004_v51  ;;  %3533 = vmatpush.msrb.mxu2 %v3518_v10  ;;  %v3516_v45 = vld [vmem:[%s5523_s10 + $0x40] sm:$0xff] }
 0xac2   : > { %3789 = vmatpush.msrb.mxu3 %v3518_v10 }
 0xac3   : > { %v3032_v14 = vmul.f32 0.5, %v3031_v8 }
 0xac5   : > { %v3033_v26 = vsub.f32 1.5, %v3032_v14 }
 0xac7   : > { %v4065_v35 = vpop.eup %4064  ;;  %v3034_v22 = vmul.f32 %v4063_v12, %v3033_v26  ;;  %v3515_v26 = vld [vmem:[%s5523_s10 + $0x38] sm:$0xff] }
 0xac8   : > { %v3040_v56 = vmul.f32 %v4065_v35, %v3004_v51  ;;  %vm3046_vm3 = vweird.f32 %v4065_v35 }
 0xac9   : > { %v3038_v18 = vsel %vm3037_vm11, %v4063_v12, %v3034_v22  ;;  %vm3047_vm5 = vmor %vm3045_vm4, %vm3046_vm3  ;;  %v3517_v12 = vld [vmem:[%s5523_s10 + $0x48] sm:$0xff]  ;;  %v3514_v22 = vld [vmem:[%s5523_s10 + $0x30] sm:$0xff] }
 0xaca   : > { %v3041_v49 = vmul.f32 %v4065_v35, %v3040_v56  ;;  %v3091_v24 = vmul.f32 %v3038_v18, %v2995_v61  ;;  %3534 = vmatpush.msrb.mxu2 %v3517_v12  ;;  %3790 = vmatpush.msrb.mxu3 %v3517_v12  ;;  %v3513_v56 = vld [vmem:[%s5523_s10 + $0x28] sm:$0xff] }
 0xacc   : > { %v3042_v47 = vmul.f32 0.5, %v3041_v49  ;;  %v3100_v54 = vmul.f32 %v5239_v19, %v3091_v24  ;;  %3535 = vmatpush.msrb.mxu2 %v3516_v45  ;;  %3791 = vmatpush.msrb.mxu3 %v3516_v45  ;;  %v3512_v49 = vld [vmem:[%s5523_s10 + $0x20] sm:$0xff] }
 0xace   : > { %v3043_v62 = vsub.f32 1.5, %v3042_v47  ;;  %v3109_v2 = vadd.f32 %v5244_v50, %v3100_v54  ;;  %3536 = vmatpush.msrb.mxu2 %v3515_v26  ;;  %3792 = vmatpush.msrb.mxu3 %v3515_v26 }
 0xad0   : > { %v3044_v55 = vmul.f32 %v4065_v35, %v3043_v62  ;;  %3770 = vmatmul.msk.f32.gmra.mxu1 %vm427_vm0, %v3109_v2  ;;  %3537 = vmatpush.msrb.mxu2 %v3514_v22  ;;  %v3511_v62 = vld [vmem:[%s5523_s10 + $0x18] sm:$0xff] }
 0xad1   : > { %3793 = vmatpush.msrb.mxu3 %v3514_v22 }
 0xad2   : > { %v3048_v15 = vsel %vm3047_vm5, %v4065_v35, %v3044_v55  ;;  %3538 = vmatpush.msrb.mxu2 %v3513_v56  ;;  %v3510_v55 = vld [vmem:[%s5523_s10 + $0x10] sm:$0xff] }
 0xad3   : > { %v3092_v59 = vmul.f32 %v3048_v15, %v2996_v28  ;;  %3794 = vmatpush.msrb.mxu3 %v3513_v56 }
 0xad4   : > { %3539 = vmatpush.msrb.mxu2 %v3512_v49 }
 0xad5   : > { %v3101_v44 = vmul.f32 %v5239_v19, %v3092_v59  ;;  %3795 = vmatpush.msrb.mxu3 %v3512_v49 }
 0xad6   : > { %3540 = vmatpush.msrb.mxu2 %v3511_v62 }
 0xad7   : > { %v3110_v43 = vadd.f32 %v5244_v50, %v3101_v44  ;;  %3796 = vmatpush.msrb.mxu3 %v3511_v62  ;;  %v3509_v44 = vld [vmem:[%s5523_s10 + $0x8] sm:$0xff] }
 0xad8   : > { %3541 = vmatpush.msrb.mxu2 %v3510_v55 }
 0xad9   : > { %3771 = vmatmul.msk.f32.gmra.mxu1 %vm427_vm0, %v3110_v43  ;;  %3797 = vmatpush.msrb.mxu3 %v3510_v55 }
 0xada   : > { %3542 = vmatpush.msrb.mxu2 %v3509_v44 }
 0xadb   : > { %3798 = vmatpush.msrb.mxu3 %v3509_v44 }
 0xae1   : > { %v2919_v1 = vpop.xlane.xlu2 %2918 }
 0xae2   : > { %v2933_v40 = vmul.f32 %v2919_v1, %v4288_v42  ;;  %v3508_v1 = vld [vmem:[%s5523_s10] sm:$0xff] }
 0xae3   : > { %v2959_v16 = vpop.xlane.xlu1 %2958  ;;  %3543 = vmatpush.msrb.mxu2 %v3508_v1  ;;  %3799 = vmatpush.msrb.mxu3 %v3508_v1 }
 0xae4   : > { %v2981_v63 = vmul.f32 %v2933_v40, %v2933_v40  ;;  %v2973_v6 = vmul.f32 %v2959_v16, %v4288_v42  ;;  %v2997_v7 = vsub.f32 %v5227_v60, %v2933_v40 }
 0xae6   : > { %v2989_v23 = vsub.f32 %v2973_v6, %v2981_v63 }
 0xae8   : > { %v3005_v0 = vadd.f32 1e-05, %v2989_v23 }
 0xaea   : > { %4066 = vrsqrt.f32 %v3005_v0  ;;  %vm3055_vm7 = vweird.f32 %v3005_v0 }
 0xaf0   : > { %v4067_v58 = vpop.eup %4066 }
 0xaf1   : > { %v3050_v34 = vmul.f32 %v4067_v58, %v3005_v0  ;;  %vm3056_vm6 = vweird.f32 %v4067_v58 }
 0xaf2   : > { %vm3057_vm12 = vmor %vm3055_vm7, %vm3056_vm6 }
 0xaf3   : > { %v3051_v57 = vmul.f32 %v4067_v58, %v3050_v34 }
 0xaf5   : > { %v3052_v21 = vmul.f32 0.5, %v3051_v57 }
 0xaf7   : > { %v3053_v30 = vsub.f32 1.5, %v3052_v21 }
 0xaf9   : > { %v3054_v29 = vmul.f32 %v4067_v58, %v3053_v30 }
 0xafb   : > { %v3058_v9 = vsel %vm3057_vm12, %v4067_v58, %v3054_v29 }
 0xafc   : > { %v3093_v39 = vmul.f32 %v3058_v9, %v2997_v7 }
 0xafe   : > { %v3164_v53 = vpop.f32.mrf.mxu1  ;;  %v3102_v41 = vmul.f32 %v5239_v19, %v3093_v39 }
 0xaff   : > { %v5314_v27 = vadd.f32 %v5304_v32, %v3164_v53 }
 0xb00   : > { %v3111_v5 = vadd.f32 %v5244_v50, %v3102_v41 }
 0xb01   : > { %v5321_v31 = vmul.f32 0.70710677, %v5314_v27 }
 0xb02   : > { %3772 = vmatmul.msk.f32.gmra.mxu1 %vm427_vm0, %v3111_v5 }
 0xb03   : > { %v5328_v37 = vand.u32 2147483647, %v5321_v31  ;;  %vm3204_vm11 = vcmp.lt.f32.partialorder %v5321_v31, 0.0  ;;  %v3188_v31 = vmul.f32 0.5, %v5314_v27 }
 0xb05   : > { %v3228_v52 = vmul.f32 0.3275911, %v5328_v37  ;;  %v3436_v23 = vsub.f32 0.0, %v5328_v37 }
 0xb06   : > { %v3167_v51 = vpop.f32.mrf.mxu1 }
 0xb07   : > { %v3236_v8 = vadd.f32 1.0, %v3228_v52  ;;  %v5338_v14 = vadd.f32 %v5304_v32, %v3167_v51  ;;  %v3444_v30 = vmul.f32 %v3436_v23, %v5328_v37 }
 0xb09   : > { %4068 = vrcp.f32 %v3236_v8  ;;  %v5344_v35 = vmul.f32 0.70710677, %v5338_v14  ;;  %v3255_v28 = vand.u32 2147483648, %v3236_v8  ;;  %v3253_v59 = vand.u32 2147483647, %v3236_v8 }
 0xb0a   : > { %vm3249_vm9 = vweird.f32 %v3236_v8  ;;  %v3452_v48 = vmul.f32 1.442695, %v3444_v30 }
 0xb0b   : > { %v5350_v61 = vand.u32 2147483647, %v5344_v35  ;;  %v3256_v40 = vor.u32 1.1754944e-38, %v3255_v28  ;;  %vm3254_vm13 = vcmp.eq.f32.partialorder %v3253_v59, 8.507059e+37  ;;  %vm3205_vm3 = vcmp.lt.f32.partialorder %v5344_v35, 0.0 }
 0xb0c   : > { %v3189_v35 = vmul.f32 0.5, %v5338_v14 }
 0xb0d   : > { %v3229_v18 = vmul.f32 0.3275911, %v5350_v61  ;;  %v3437_v13 = vsub.f32 0.0, %v5350_v61 }
 0xb0f   : > { %v4069_v24 = vpop.eup %4068  ;;  %v3237_v54 = vadd.f32 1.0, %v3229_v18  ;;  %v3445_v22 = vmul.f32 %v3437_v13, %v5350_v61 }
 0xb10   : > { %v3245_v47 = vmul.f32 %v4069_v24, %v3236_v8  ;;  %vm3250_vm8 = vweird.f32 %v4069_v24 }
 0xb11   : > { %4070 = vrcp.f32 %v3237_v54  ;;  %vm3251_vm10 = vmor %vm3249_vm9, %vm3250_vm8  ;;  %v3270_v21 = vand.u32 2147483648, %v3237_v54  ;;  %v3268_v29 = vand.u32 2147483647, %v3237_v54  ;;  %vm3264_vm15 = vweird.f32 %v3237_v54 }
 0xb12   : > { %v3246_v2 = vsub.f32 1.0, %v3245_v47  ;;  %4072 = vpow2.f32 %v3452_v48  ;;  %v3454_v62 = vmul.f32 1.442695, %v3445_v22 }
 0xb13   : > { %v3271_v39 = vor.u32 1.1754944e-38, %v3270_v21  ;;  %vm3269_vm2 = vcmp.eq.f32.partialorder %v3268_v29, 8.507059e+37 }
 0xb14   : > { %v3247_v15 = vmul.f32 %v4069_v24, %v3246_v2 }
 0xb16   : > { %v3248_v43 = vadd.f32 %v4069_v24, %v3247_v15 }
 0xb17   : > { %v4071_v16 = vpop.eup %4070 }
 0xb18   : > { %v3252_v63 = vsel %vm3251_vm10, %v4069_v24, %v3248_v43  ;;  %v3260_v0 = vmul.f32 %v4071_v16, %v3237_v54  ;;  %vm3265_vm14 = vweird.f32 %v4071_v16  ;;  %v4073_v55 = vpop.eup %4072 }
 0xb19   : > { %v3257_v6 = vsel %vm3254_vm13, %v3256_v40, %v3252_v63  ;;  %vm3266_vm1 = vmor %vm3264_vm15, %vm3265_vm14 }
 0xb1a   : > { %v3364_v58 = vmul.f32 1.0614054, %v3257_v6  ;;  %v3261_v34 = vsub.f32 1.0, %v3260_v0 }
 0xb1c   : > { %v3372_v57 = vadd.f32 -1.4531521, %v3364_v58  ;;  %v3262_v3 = vmul.f32 %v4071_v16, %v3261_v34 }
 0xb1e   : > { %v3380_v7 = vmul.f32 %v3372_v57, %v3257_v6  ;;  %v3263_v17 = vadd.f32 %v4071_v16, %v3262_v3 }
 0xb20   : > { %v3388_v9 = vadd.f32 1.4214138, %v3380_v7  ;;  %v3267_v53 = vsel %vm3266_vm1, %v4071_v16, %v3263_v17  ;;  %v4137_v16 = vmov 1.0  }
 0xb21   : > { %v3272_v25 = vsel %vm3269_vm2, %v3271_v39, %v3267_v53  ;;  %v3212_v63 = vsel %vm3204_vm11, -1.0, %v4137_v16 }
 0xb22   : > { %v3396_v41 = vmul.f32 %v3388_v9, %v3257_v6  ;;  %v2922_v5 = vpop.xlane.xlu0 %2921  ;;  %v3365_v37 = vmul.f32 1.0614054, %v3272_v25 }
 0xb23   : > { %v5375_v10 = vmul.f32 %v2922_v5, %v4288_v42 }
 0xb24   : > { %v3404_v12 = vadd.f32 -0.28449672, %v3396_v41  ;;  %v2962_v52 = vpop.xlane.xlu2 %2961  ;;  %v3373_v8 = vadd.f32 -1.4531521, %v3365_v37 }
 0xb25   : > { %v2982_v51 = vmul.f32 %v5375_v10, %v5375_v10  ;;  %v2974_v45 = vmul.f32 %v2962_v52, %v4288_v42  ;;  %v3213_v52 = vsel %vm3205_vm3, -1.0, %v4137_v16 }
 0xb26   : > { %v3412_v26 = vmul.f32 %v3404_v12, %v3257_v6  ;;  %v3381_v18 = vmul.f32 %v3373_v8, %v3272_v25 }
 0xb27   : > { %v2990_v56 = vsub.f32 %v2974_v45, %v2982_v51 }
 0xb28   : > { %v3420_v49 = vadd.f32 0.2548296, %v3412_v26  ;;  %v3389_v47 = vadd.f32 1.4214138, %v3381_v18 }
 0xb29   : > { %v3006_v24 = vadd.f32 1e-05, %v2990_v56 }
 0xb2a   : > { %v3428_v54 = vmul.f32 %v3420_v49, %v3257_v6  ;;  %v2925_v2 = vpop.xlane.xlu1 %2924  ;;  %v3397_v15 = vmul.f32 %v3389_v47, %v3272_v25 }
 0xb2b   : > { %4074 = vrsqrt.f32 %v3006_v24  ;;  %v5382_v28 = vmul.f32 %v2925_v2, %v4288_v42  ;;  %vm3065_vm5 = vweird.f32 %v3006_v24 }
 0xb2c   : > { %v3468_v59 = vmul.f32 %v4073_v55, %v3428_v54  ;;  %v2965_v44 = vpop.xlane.xlu0 %2964  ;;  %v3405_v1 = vadd.f32 -0.28449672, %v3397_v15  ;;  %4076 = vpow2.f32 %v3454_v62 }
 0xb2d   : > { %v2983_v61 = vmul.f32 %v5382_v28, %v5382_v28  ;;  %v2975_v43 = vmul.f32 %v2965_v44, %v4288_v42 }
 0xb2e   : > { %v3476_v40 = vsub.f32 1.0, %v3468_v59  ;;  %v3413_v23 = vmul.f32 %v3405_v1, %v3272_v25 }
 0xb2f   : > { %v2991_v6 = vsub.f32 %v2975_v43, %v2983_v61 }
 0xb30   : > { %v3484_v0 = vmul.f32 %v3476_v40, %v3212_v63  ;;  %v3421_v57 = vadd.f32 0.2548296, %v3413_v23 }
 0xb31   : > { %v4075_v58 = vpop.eup %4074  ;;  %v3007_v34 = vadd.f32 1e-05, %v2991_v6 }
 0xb32   : > { %v3492_v21 = vadd.f32 1.0, %v3484_v0  ;;  %v3060_v30 = vmul.f32 %v4075_v58, %v3006_v24  ;;  %v2928_v3 = vpop.xlane.xlu2 %2927  ;;  %v3429_v7 = vmul.f32 %v3421_v57, %v3272_v25  ;;  %v4077_v17 = vpop.eup %4076  ;;  %vm3066_vm4 = vweird.f32 %v4075_v58 }
 0xb33   : > { %4078 = vrsqrt.f32 %v3007_v34  ;;  %v2936_v29 = vmul.f32 %v2928_v3, %v4288_v42  ;;  %vm3067_vm6 = vmor %vm3065_vm5, %vm3066_vm4  ;;  %vm3075_vm12 = vweird.f32 %v3007_v34 }
 0xb34   : > { %v3500_v9 = vmul.f32 %v3492_v21, %v3188_v31  ;;  %v3061_v39 = vmul.f32 %v4075_v58, %v3060_v30  ;;  %v2968_v48 = vpop.xlane.xlu1 %2967  ;;  %v3469_v13 = vmul.f32 %v4077_v17, %v3429_v7 }
 0xb35   : > { %v2984_v53 = vmul.f32 %v2936_v29, %v2936_v29  ;;  %v2976_v41 = vmul.f32 %v2968_v48, %v4288_v42  ;;  %v2998_v42 = vsub.f32 %v5255_v33, %v5375_v10  ;;  %v2999_v10 = vsub.f32 %v5266_v20, %v5382_v28 }
 0xb36   : > { %v3062_v5 = vmul.f32 0.5, %v3061_v39  ;;  %3544 = vmatmul.f32.vlgmr.msrb.gmra.mxu2 %v3500_v9  ;;  %v3477_v37 = vsub.f32 1.0, %v3469_v13  ;;  %v3000_v23 = vsub.f32 %v5276_v11, %v2936_v29 }
 0xb37   : > { %v2992_v27 = vsub.f32 %v2976_v41, %v2984_v53 }
 0xb38   : > { %v3063_v12 = vsub.f32 1.5, %v3062_v5  ;;  %v3485_v45 = vmul.f32 %v3477_v37, %v3213_v52 }
 0xb39   : > { %v4079_v51 = vpop.eup %4078  ;;  %v3008_v25 = vadd.f32 1e-05, %v2992_v27 }
 0xb3a   : > { %v3064_v8 = vmul.f32 %v4075_v58, %v3063_v12  ;;  %v3070_v26 = vmul.f32 %v4079_v51, %v3007_v34  ;;  %v3493_v22 = vadd.f32 1.0, %v3485_v45  ;;  %vm3076_vm7 = vweird.f32 %v4079_v51 }
 0xb3b   : > { %4080 = vrsqrt.f32 %v3008_v25  ;;  %vm3077_vm8 = vmor %vm3075_vm12, %vm3076_vm7  ;;  %vm3085_vm10 = vweird.f32 %v3008_v25 }
 0xb3c   : > { %v3071_v56 = vmul.f32 %v4079_v51, %v3070_v26  ;;  %v3068_v18 = vsel %vm3067_vm6, %v4075_v58, %v3064_v8  ;;  %v3501_v49 = vmul.f32 %v3493_v22, %v3189_v35 }
 0xb3d   : > { %v3094_v47 = vmul.f32 %v3068_v18, %v2998_v42 }
 0xb3e   : > { %v3072_v54 = vmul.f32 0.5, %v3071_v56  ;;  %3547 = vmatmul.f32.gmra.mxu2 %v3501_v49 }
 0xb3f   : > { %v3103_v62 = vmul.f32 %v5239_v19, %v3094_v47 }
 0xb40   : > { %v3073_v2 = vsub.f32 1.5, %v3072_v54 }
 0xb41   : > { %v4081_v24 = vpop.eup %4080  ;;  %v3112_v55 = vadd.f32 %v5244_v50, %v3103_v62 }
 0xb42   : > { %v3074_v14 = vmul.f32 %v4079_v51, %v3073_v2  ;;  %v3080_v15 = vmul.f32 %v4081_v24, %v3008_v25  ;;  %vm3086_vm9 = vweird.f32 %v4081_v24 }
 0xb43   : > { %3773 = vmatmul.msk.f32.gmra.mxu1 %vm427_vm0, %v3112_v55  ;;  %vm3087_vm13 = vmor %vm3085_vm10, %vm3086_vm9 }
 0xb44   : > { %v3081_v59 = vmul.f32 %v4081_v24, %v3080_v15  ;;  %v3078_v44 = vsel %vm3077_vm8, %v4079_v51, %v3074_v14 }
 0xb45   : > { %v3095_v61 = vmul.f32 %v3078_v44, %v2999_v10 }
 0xb46   : > { %v3082_v43 = vmul.f32 0.5, %v3081_v59 }
 0xb47   : > { %v3104_v1 = vmul.f32 %v5239_v19, %v3095_v61 }
 0xb48   : > { %v3083_v40 = vsub.f32 1.5, %v3082_v43 }
 0xb49   : > { %v3113_v63 = vadd.f32 %v5244_v50, %v3104_v1 }
 0xb4a   : > { %v3084_v6 = vmul.f32 %v4081_v24, %v3083_v40 }
 0xb4b   : > { %3774 = vmatmul.msk.f32.gmra.mxu1 %vm427_vm0, %v3113_v63 }
 0xb4c   : > { %v3088_v28 = vsel %vm3087_vm13, %v4081_v24, %v3084_v6 }
 0xb4d   : > { %v3096_v0 = vmul.f32 %v3088_v28, %v3000_v23  ;;  %v3170_v58 = vpop.f32.mrf.mxu1 }
 0xb4e   : > { %v5407_v34 = vadd.f32 %v5304_v32, %v3170_v58 }
 0xb4f   : > { %v3105_v57 = vmul.f32 %v5239_v19, %v3096_v0 }
 0xb50   : > { %v5411_v31 = vmul.f32 0.70710677, %v5407_v34 }
 0xb51   : > { %v3114_v21 = vadd.f32 %v5244_v50, %v3105_v57 }
 0xb52   : > { %v3222_v30 = vand.u32 2147483647, %v5411_v31  ;;  %vm3206_vm6 = vcmp.lt.f32.partialorder %v5411_v31, 0.0 }
 0xb53   : > { %3775 = vmatmul.msk.f32.gmra.mxu1 %vm427_vm0, %v3114_v21 }
 0xb54   : > { %v3230_v3 = vmul.f32 0.3275911, %v3222_v30  ;;  %v3438_v25 = vsub.f32 0.0, %v3222_v30 }
 0xb56   : > { %v3238_v29 = vadd.f32 1.0, %v3230_v3  ;;  %v3173_v7 = vpop.f32.mrf.mxu1  ;;  %v3446_v56 = vmul.f32 %v3438_v25, %v3222_v30 }
 0xb57   : > { %v5417_v17 = vadd.f32 %v5304_v32, %v3173_v7 }
 0xb58   : > { %4082 = vrcp.f32 %v3238_v29  ;;  %v3285_v13 = vand.u32 2147483648, %v3238_v29  ;;  %v3283_v27 = vand.u32 2147483647, %v3238_v29  ;;  %vm3279_vm15 = vweird.f32 %v3238_v29 }
 0xb59   : > { %v5420_v9 = vmul.f32 0.70710677, %v5417_v17  ;;  %v3456_v24 = vmul.f32 1.442695, %v3446_v56 }
 0xb5a   : > { %v3286_v12 = vor.u32 1.1754944e-38, %v3285_v13  ;;  %vm3284_vm2 = vcmp.eq.f32.partialorder %v3283_v27, 8.507059e+37 }
 0xb5b   : > { %v3223_v19 = vand.u32 2147483647, %v5420_v9  ;;  %vm3207_vm7 = vcmp.lt.f32.partialorder %v5420_v9, 0.0 }
 0xb5c   : > { %v3215_v25 = vsel %vm3207_vm7, -1.0, %v4137_v16 }
 0xb5d   : > { %v3231_v39 = vmul.f32 0.3275911, %v3223_v19  ;;  %v3439_v14 = vsub.f32 0.0, %v3223_v19 }
 0xb5e   : > { %v4083_v48 = vpop.eup %4082 }
 0xb5f   : > { %v3275_v53 = vmul.f32 %v4083_v48, %v3238_v29  ;;  %v3239_v50 = vadd.f32 1.0, %v3231_v39  ;;  %vm3280_vm14 = vweird.f32 %v4083_v48  ;;  %v3447_v43 = vmul.f32 %v3439_v14, %v3223_v19 }
 0xb60   : > { %vm3281_vm1 = vmor %vm3279_vm15, %vm3280_vm14  ;;  %v3214_v29 = vsel %vm3206_vm6, -1.0, %v4137_v16 }
 0xb61   : > { %v3276_v41 = vsub.f32 1.0, %v3275_v53  ;;  %4084 = vrcp.f32 %v3239_v50  ;;  %v3300_v22 = vand.u32 2147483648, %v3239_v50  ;;  %v3298_v49 = vand.u32 2147483647, %v3239_v50 }
 0xb62   : > { %vm3294_vm3 = vweird.f32 %v3239_v50  ;;  %4086 = vpow2.f32 %v3456_v24  ;;  %v3458_v23 = vmul.f32 1.442695, %v3447_v43  ;;  %v3190_v53 = vmul.f32 0.5, %v5407_v34 }
 0xb63   : > { %v3277_v5 = vmul.f32 %v4083_v48, %v3276_v41  ;;  %v3301_v2 = vor.u32 1.1754944e-38, %v3300_v22  ;;  %vm3299_vm5 = vcmp.eq.f32.partialorder %v3298_v49, 8.507059e+37 }
 0xb64   : > { %4088 = vpow2.f32 %v3458_v23 }
 0xb65   : > { %v3278_v37 = vadd.f32 %v4083_v48, %v3277_v5 }
 0xb67   : > { %v4085_v52 = vpop.eup %4084  ;;  %v3282_v51 = vsel %vm3281_vm1, %v4083_v48, %v3278_v37 }
 0xb68   : > { %v3290_v45 = vmul.f32 %v4085_v52, %v3239_v50  ;;  %v3287_v8 = vsel %vm3284_vm2, %v3286_v12, %v3282_v51  ;;  %vm3295_vm11 = vweird.f32 %v4085_v52  ;;  %v4087_v0 = vpop.eup %4086 }
 0xb69   : > { %v3366_v26 = vmul.f32 1.0614054, %v3287_v8  ;;  %vm3296_vm4 = vmor %vm3294_vm3, %vm3295_vm11 }
 0xb6a   : > { %v3291_v35 = vsub.f32 1.0, %v3290_v45  ;;  %v4089_v5 = vpop.eup %4088 }
 0xb6b   : > { %v3374_v42 = vadd.f32 -1.4531521, %v3366_v26 }
 0xb6c   : > { %v3292_v18 = vmul.f32 %v4085_v52, %v3291_v35 }
 0xb6d   : > { %v3382_v47 = vmul.f32 %v3374_v42, %v3287_v8 }
 0xb6e   : > { %v3293_v54 = vadd.f32 %v4085_v52, %v3292_v18 }
 0xb6f   : > { %v3390_v62 = vadd.f32 1.4214138, %v3382_v47 }
 0xb70   : > { %v3297_v55 = vsel %vm3296_vm4, %v4085_v52, %v3293_v54 }
 0xb71   : > { %v3398_v15 = vmul.f32 %v3390_v62, %v3287_v8  ;;  %v3302_v10 = vsel %vm3299_vm5, %v3301_v2, %v3297_v55 }
 0xb72   : > { %v3367_v59 = vmul.f32 1.0614054, %v3302_v10 }
 0xb73   : > { %v3406_v44 = vadd.f32 -0.28449672, %v3398_v15 }
 0xb74   : > { %v3375_v61 = vadd.f32 -1.4531521, %v3367_v59 }
 0xb75   : > { %v3414_v1 = vmul.f32 %v3406_v44, %v3287_v8 }
 0xb76   : > { %v3383_v40 = vmul.f32 %v3375_v61, %v3302_v10 }
 0xb77   : > { %v3422_v63 = vadd.f32 0.2548296, %v3414_v1 }
 0xb78   : > { %v3391_v6 = vadd.f32 1.4214138, %v3383_v40 }
 0xb79   : > { %v3430_v28 = vmul.f32 %v3422_v63, %v3287_v8  ;;  %v3191_v8 = vmul.f32 0.5, %v5417_v17 }
 0xb7a   : > { %v3399_v58 = vmul.f32 %v3391_v6, %v3302_v10 }
 0xb7b   : > { %v3470_v57 = vmul.f32 %v4087_v0, %v3430_v28 }
 0xb7c   : > { %v3407_v21 = vadd.f32 -0.28449672, %v3399_v58 }
 0xb7d   : > { %v3478_v30 = vsub.f32 1.0, %v3470_v57 }
 0xb7e   : > { %v3415_v7 = vmul.f32 %v3407_v21, %v3302_v10  ;;  %v5434_v21 = vld [vmem:[%s5524_s11] ss:$0 sm:$0xff] }
 0xb7f   : > { %v3176_v3 = vpop.f32.mrf.mxu1  ;;  %v3486_v39 = vmul.f32 %v3478_v30, %v3214_v29 }
 0xb80   : > { %v3177_v19 = vadd.f32 %v5304_v32, %v3176_v3  ;;  %v3423_v48 = vadd.f32 0.2548296, %v3415_v7 }
 0xb81   : > { %v3494_v41 = vadd.f32 1.0, %v3486_v39 }
 0xb82   : > { %v3200_v50 = vmul.f32 0.70710677, %v3177_v19  ;;  %v3431_v13 = vmul.f32 %v3423_v48, %v3302_v10  ;;  %v3192_v0 = vmul.f32 0.5, %v3177_v19 }
 0xb83   : > { %v3502_v31 = vmul.f32 %v3494_v41, %v3190_v53 }
 0xb84   : > { %v3224_v27 = vand.u32 2147483647, %v3200_v50  ;;  %v3471_v37 = vmul.f32 %v4089_v5, %v3431_v13  ;;  %vm3208_vm13 = vcmp.lt.f32.partialorder %v3200_v50, 0.0 }
 0xb85   : > { %3550 = vmatmul.f32.gmra.mxu2 %v3502_v31  ;;  %v3216_v23 = vsel %vm3208_vm13, -1.0, %v4137_v16 }
 0xb86   : > { %v3232_v12 = vmul.f32 0.3275911, %v3224_v27  ;;  %v3479_v52 = vsub.f32 1.0, %v3471_v37  ;;  %v3440_v62 = vsub.f32 0.0, %v3224_v27 }
 0xb88   : > { %v3240_v51 = vadd.f32 1.0, %v3232_v12  ;;  %v3487_v45 = vmul.f32 %v3479_v52, %v3215_v25  ;;  %v3448_v55 = vmul.f32 %v3440_v62, %v3224_v27 }
 0xb8a   : > { %4090 = vrcp.f32 %v3240_v51  ;;  %v3495_v34 = vadd.f32 1.0, %v3487_v45  ;;  %v3315_v56 = vand.u32 2147483648, %v3240_v51  ;;  %v3313_v9 = vand.u32 2147483647, %v3240_v51 }
 0xb8b   : > { %vm3309_vm8 = vweird.f32 %v3240_v51  ;;  %v3460_v10 = vmul.f32 1.442695, %v3448_v55 }
 0xb8c   : > { %v3503_v26 = vmul.f32 %v3495_v34, %v3191_v8  ;;  %v3316_v47 = vor.u32 1.1754944e-38, %v3315_v56  ;;  %vm3314_vm10 = vcmp.eq.f32.partialorder %v3313_v9, 8.507059e+37 }
 0xb8d   : > { %4092 = vpow2.f32 %v3460_v10 }
 0xb8e   : > { %3553 = vmatmul.f32.gmra.mxu2 %v3503_v26 }
 0xb90   : > { %v4091_v35 = vpop.eup %4090 }
 0xb91   : > { %v3305_v42 = vmul.f32 %v4091_v35, %v3240_v51  ;;  %vm3310_vm12 = vweird.f32 %v4091_v35 }
 0xb92   : > { %vm3311_vm9 = vmor %vm3309_vm8, %vm3310_vm12 }
 0xb93   : > { %v3306_v22 = vsub.f32 1.0, %v3305_v42  ;;  %v4093_v40 = vpop.eup %4092 }
 0xb95   : > { %v3307_v18 = vmul.f32 %v4091_v35, %v3306_v22 }
 0xb97   : > { %v3308_v49 = vadd.f32 %v4091_v35, %v3307_v18 }
 0xb99   : > { %v3312_v54 = vsel %vm3311_vm9, %v4091_v35, %v3308_v49 }
 0xb9a   : > { %v3317_v2 = vsel %vm3314_vm10, %v3316_v47, %v3312_v54 }
 0xb9b   : > { %v3368_v24 = vmul.f32 1.0614054, %v3317_v2 }
 0xb9d   : > { %v3376_v17 = vadd.f32 -1.4531521, %v3368_v24 }
 0xb9f   : > { %v3384_v14 = vmul.f32 %v3376_v17, %v3317_v2 }
 0xba1   : > { %v3392_v15 = vadd.f32 1.4214138, %v3384_v14 }
 0xba3   : > { %v3400_v59 = vmul.f32 %v3392_v15, %v3317_v2 }
 0xba5   : > { %v3408_v44 = vadd.f32 -0.28449672, %v3400_v59 }
 0xba7   : > { %v3416_v61 = vmul.f32 %v3408_v44, %v3317_v2 }
 0xba9   : > { %v3424_v43 = vadd.f32 0.2548296, %v3416_v61 }
 0xbab   : > { %v3432_v1 = vmul.f32 %v3424_v43, %v3317_v2 }
 0xbad   : > { %v3472_v63 = vmul.f32 %v4093_v40, %v3432_v1 }
 0xbaf   : > { %v3480_v6 = vsub.f32 1.0, %v3472_v63 }
 0xbb1   : > { %v3488_v28 = vmul.f32 %v3480_v6, %v3216_v23 }
 0xbb3   : > { %v3496_v58 = vadd.f32 1.0, %v3488_v28 }
 0xbb5   : > { %v3504_v57 = vmul.f32 %v3496_v58, %v3192_v0 }
 0xbb7   : > { %3556 = vmatmul.f32.gmra.mxu2 %v3504_v57 }
 0xbb9   : > { %v3545_v30 = vpop.f32.mrf.mxu2 }
 0xbba   : > { %v3546_v3 = vadd.f32 %v5434_v21, %v3545_v30 }
 0xbbc   : > { %v3569_v29 = vadd.f32 %v3546_v3, %v5169_v38 }
 0xbbe   : > { %3577 = vst.msk [vmem:[%s5442_s13] sm:$0xff] %vm427_vm0, %v3569_v29 }
 0xbc0   : > { %v3179_v7 = vpop.f32.mrf.mxu1 }
 0xbc1   : > { %v5448_v19 = vadd.f32 %v5304_v32, %v3179_v7  ;;  %v3548_v39 = vpop.f32.mrf.mxu2 }
 0xbc2   : > { %v3549_v53 = vadd.f32 %v5434_v21, %v3548_v39 }
 0xbc3   : > { %v5451_v48 = vmul.f32 0.70710677, %v5448_v19 }
 0xbc4   : > { %v3570_v41 = vadd.f32 %v3549_v53, %v5179_v46 }
 0xbc5   : > { %v3225_v50 = vand.u32 2147483647, %v5451_v48  ;;  %vm3209_vm9 = vcmp.lt.f32.partialorder %v5451_v48, 0.0 }
 0xbc6   : > { %3578 = vst.msk [vmem:[%s5442_s13 + $0x8] sm:$0xff] %vm427_vm0, %v3570_v41 }
 0xbc7   : > { %v3233_v13 = vmul.f32 0.3275911, %v3225_v50  ;;  %v3441_v62 = vsub.f32 0.0, %v3225_v50 }
 0xbc8   : > { %v3182_v38 = vpop.f32.mrf.mxu1 }
 0xbc9   : > { %v3241_v5 = vadd.f32 1.0, %v3233_v13  ;;  %v5459_v27 = vadd.f32 %v5304_v32, %v3182_v38  ;;  %v3449_v15 = vmul.f32 %v3441_v62, %v3225_v50  ;;  %v3217_v62 = vsel %vm3209_vm9, -1.0, %v4137_v16 }
 0xbcb   : > { %4094 = vrcp.f32 %v3241_v5  ;;  %v5462_v31 = vmul.f32 0.70710677, %v5459_v27  ;;  %v3330_v26 = vand.u32 2147483648, %v3241_v5  ;;  %v3328_v22 = vand.u32 2147483647, %v3241_v5 }
 0xbcc   : > { %vm3324_vm15 = vweird.f32 %v3241_v5  ;;  %v3462_v6 = vmul.f32 1.442695, %v3449_v15 }
 0xbcd   : > { %v3226_v37 = vand.u32 2147483647, %v5462_v31  ;;  %vm3329_vm2 = vcmp.eq.f32.partialorder %v3328_v22, 8.507059e+37  ;;  %vm3210_vm10 = vcmp.lt.f32.partialorder %v5462_v31, 0.0 }
 0xbcf   : > { %v3234_v12 = vmul.f32 0.3275911, %v3226_v37  ;;  %v3442_v0 = vsub.f32 0.0, %v3226_v37 }
 0xbd0   : > { %v3185_v52 = vpop.f32.mrf.mxu1 }
 0xbd1   : > { %v4095_v51 = vpop.eup %4094  ;;  %v5466_v25 = vadd.f32 %v5304_v32, %v3185_v52  ;;  %v3242_v45 = vadd.f32 1.0, %v3234_v12  ;;  %v3331_v32 = vor.u32 1.1754944e-38, %v3330_v26  ;;  %v3450_v41 = vmul.f32 %v3442_v0, %v3226_v37 }
 0xbd2   : > { %v3320_v46 = vmul.f32 %v4095_v51, %v3241_v5  ;;  %vm3325_vm14 = vweird.f32 %v4095_v51 }
 0xbd3   : > { %v5469_v8 = vmul.f32 0.70710677, %v5466_v25  ;;  %4096 = vrcp.f32 %v3242_v45  ;;  %vm3326_vm1 = vmor %vm3324_vm15, %vm3325_vm14  ;;  %v3345_v14 = vand.u32 2147483648, %v3242_v45  ;;  %v3343_v59 = vand.u32 2147483647, %v3242_v45 }
 0xbd4   : > { %v3321_v34 = vsub.f32 1.0, %v3320_v46  ;;  %vm3339_vm3 = vweird.f32 %v3242_v45  ;;  %v3464_v26 = vmul.f32 1.442695, %v3450_v41 }
 0xbd5   : > { %v5472_v35 = vand.u32 2147483647, %v5469_v8  ;;  %v3346_v63 = vor.u32 1.1754944e-38, %v3345_v14  ;;  %vm3344_vm5 = vcmp.eq.f32.partialorder %v3343_v59, 8.507059e+37  ;;  %v3193_v14 = vmul.f32 0.5, %v5448_v19 }
 0xbd6   : > { %v3322_v42 = vmul.f32 %v4095_v51, %v3321_v34  ;;  %v3194_v19 = vmul.f32 0.5, %v5459_v27  ;;  %vm3211_vm13 = vcmp.lt.f32.partialorder %v5469_v8, 0.0 }
 0xbd7   : > { %v3235_v56 = vmul.f32 0.3275911, %v5472_v35 }
 0xbd8   : > { %v3323_v18 = vadd.f32 %v4095_v51, %v3322_v42 }
 0xbd9   : > { %v3243_v9 = vadd.f32 1.0, %v3235_v56  ;;  %v4097_v49 = vpop.eup %4096 }
 0xbda   : > { %v3327_v47 = vsel %vm3326_vm1, %v4095_v51, %v3323_v18  ;;  %v3335_v2 = vmul.f32 %v4097_v49, %v3242_v45  ;;  %vm3340_vm11 = vweird.f32 %v4097_v49  ;;  %v3443_v51 = vsub.f32 0.0, %v5472_v35 }
 0xbdb   : > { %v3332_v54 = vsel %vm3329_vm2, %v3331_v32, %v3327_v47  ;;  %4098 = vrcp.f32 %v3243_v9  ;;  %vm3341_vm4 = vmor %vm3339_vm3, %vm3340_vm11  ;;  %v3360_v3 = vand.u32 2147483648, %v3243_v9  ;;  %v3358_v39 = vand.u32 2147483647, %v3243_v9 }
 0xbdc   : > { %v3369_v24 = vmul.f32 1.0614054, %v3332_v54  ;;  %v3336_v17 = vsub.f32 1.0, %v3335_v2  ;;  %4100 = vpow2.f32 %v3462_v6  ;;  %vm3354_vm7 = vweird.f32 %v3243_v9 }
 0xbdd   : > { %v3361_v5 = vor.u32 1.1754944e-38, %v3360_v3  ;;  %vm3359_vm8 = vcmp.eq.f32.partialorder %v3358_v39, 8.507059e+37  ;;  %v3451_v32 = vmul.f32 %v3443_v51, %v5472_v35  ;;  %4102 = vpow2.f32 %v3464_v26 }
 0xbde   : > { %v3377_v55 = vadd.f32 -1.4531521, %v3369_v24  ;;  %v3337_v10 = vmul.f32 %v4097_v49, %v3336_v17 }
 0xbe0   : > { %v3385_v44 = vmul.f32 %v3377_v55, %v3332_v54  ;;  %v3338_v43 = vadd.f32 %v4097_v49, %v3337_v10 }
 0xbe1   : > { %v4099_v61 = vpop.eup %4098 }
 0xbe2   : > { %v3393_v1 = vadd.f32 1.4214138, %v3385_v44  ;;  %v3350_v40 = vmul.f32 %v4099_v61, %v3243_v9  ;;  %v3342_v23 = vsel %vm3341_vm4, %v4097_v49, %v3338_v43  ;;  %vm3355_vm6 = vweird.f32 %v4099_v61  ;;  %v4101_v22 = vpop.eup %4100 }
 0xbe3   : > { %v3347_v57 = vsel %vm3344_vm5, %v3346_v63, %v3342_v23  ;;  %vm3356_vm12 = vmor %vm3354_vm7, %vm3355_vm6  ;;  %v4103_v59 = vpop.eup %4102 }
 0xbe4   : > { %v3401_v28 = vmul.f32 %v3393_v1, %v3332_v54  ;;  %v3351_v58 = vsub.f32 1.0, %v3350_v40  ;;  %v3370_v30 = vmul.f32 1.0614054, %v3347_v57  ;;  %v3218_v40 = vsel %vm3210_vm10, -1.0, %v4137_v16 }
 0xbe6   : > { %v3409_v29 = vadd.f32 -0.28449672, %v3401_v28  ;;  %v3352_v7 = vmul.f32 %v4099_v61, %v3351_v58  ;;  %v3378_v53 = vadd.f32 -1.4531521, %v3370_v30  ;;  %v3219_v30 = vsel %vm3211_vm13, -1.0, %v4137_v16 }
 0xbe8   : > { %v3417_v50 = vmul.f32 %v3409_v29, %v3332_v54  ;;  %v3353_v13 = vadd.f32 %v4099_v61, %v3352_v7  ;;  %v3386_v38 = vmul.f32 %v3378_v53, %v3347_v57  ;;  %v3195_v29 = vmul.f32 0.5, %v5466_v25 }
 0xbea   : > { %v3425_v12 = vadd.f32 0.2548296, %v3417_v50  ;;  %v3357_v52 = vsel %vm3356_vm12, %v4099_v61, %v3353_v13  ;;  %v3394_v46 = vadd.f32 1.4214138, %v3386_v38 }
 0xbeb   : > { %v3362_v45 = vsel %vm3359_vm8, %v3361_v5, %v3357_v52 }
 0xbec   : > { %v3433_v34 = vmul.f32 %v3425_v12, %v3332_v54  ;;  %v3371_v42 = vmul.f32 1.0614054, %v3362_v45  ;;  %v3402_v56 = vmul.f32 %v3394_v46, %v3347_v57  ;;  %v3466_v54 = vmul.f32 1.442695, %v3451_v32 }
 0xbee   : > { %v3473_v37 = vmul.f32 %v4101_v22, %v3433_v34  ;;  %v3379_v18 = vadd.f32 -1.4531521, %v3371_v42  ;;  %v3410_v9 = vadd.f32 -0.28449672, %v3402_v56  ;;  %4104 = vpow2.f32 %v3466_v54 }
 0xbf0   : > { %v3481_v49 = vsub.f32 1.0, %v3473_v37  ;;  %v3387_v47 = vmul.f32 %v3379_v18, %v3362_v45  ;;  %v3418_v2 = vmul.f32 %v3410_v9, %v3347_v57 }
 0xbf2   : > { %v3489_v24 = vmul.f32 %v3481_v49, %v3217_v62  ;;  %v3395_v17 = vadd.f32 1.4214138, %v3387_v47  ;;  %v3426_v55 = vadd.f32 0.2548296, %v3418_v2 }
 0xbf4   : > { %v3497_v15 = vadd.f32 1.0, %v3489_v24  ;;  %v3403_v10 = vmul.f32 %v3395_v17, %v3362_v45  ;;  %v3434_v48 = vmul.f32 %v3426_v55, %v3347_v57  ;;  %v4105_v28 = vpop.eup %4104 }
 0xbf6   : > { %v3505_v44 = vmul.f32 %v3497_v15, %v3193_v14  ;;  %v3411_v61 = vadd.f32 -0.28449672, %v3403_v10  ;;  %v3474_v35 = vmul.f32 %v4103_v59, %v3434_v48 }
 0xbf8   : > { %3559 = vmatmul.f32.vlgmr.msrb.gmra.mxu3 %v3505_v44  ;;  %v3419_v43 = vmul.f32 %v3411_v61, %v3362_v45  ;;  %v3482_v1 = vsub.f32 1.0, %v3474_v35 }
 0xbfa   : > { %v3427_v63 = vadd.f32 0.2548296, %v3419_v43  ;;  %v3490_v6 = vmul.f32 %v3482_v1, %v3218_v40 }
 0xbfc   : > { %v3435_v23 = vmul.f32 %v3427_v63, %v3362_v45  ;;  %v3498_v0 = vadd.f32 1.0, %v3490_v6 }
 0xbfe   : > { %v3475_v58 = vmul.f32 %v4105_v28, %v3435_v23  ;;  %v3506_v57 = vmul.f32 %v3498_v0, %v3194_v19 }
 0xc00   : > { %v3483_v31 = vsub.f32 1.0, %v3475_v58  ;;  %3562 = vmatmul.f32.gmra.mxu3 %v3506_v57 }
 0xc02   : > { %v3491_v3 = vmul.f32 %v3483_v31, %v3219_v30 }
 0xc04   : > { %v3499_v7 = vadd.f32 1.0, %v3491_v3 }
 0xc06   : > { %v3507_v39 = vmul.f32 %v3499_v7, %v3195_v29 }
 0xc08   : > { %v3551_v53 = vpop.f32.mrf.mxu2  ;;  %3565 = vmatmul.f32.gmra.mxu3 %v3507_v39 }
 0xc09   : > { %v3552_v27 = vadd.f32 %v5434_v21, %v3551_v53 }
 0xc0b   : > { %v3571_v8 = vadd.f32 %v3552_v27, %v5193_v4 }
 0xc0d   : > { %3579 = vst.msk [vmem:[%s5442_s13 + $0x10] sm:$0xff] %vm427_vm0, %v3571_v8 }
 0xc11   : > { %v3554_v50 = vpop.f32.mrf.mxu2 }
 0xc12   : > { %v3555_v41 = vadd.f32 %v5434_v21, %v3554_v50 }
 0xc14   : > { %v3572_v16 = vadd.f32 %v3555_v41, %v5203_v36 }
 0xc16   : > { %3580 = vst.msk [vmem:[%s5442_s13 + $0x18] sm:$0xff] %vm427_vm0, %v3572_v16 }
 0xc3a   : > { %v3557_v25 = vpop.f32.mrf.mxu2 }
 0xc3b   : > { %v3558_v13 = vadd.f32 %v5434_v21, %v3557_v25 }
 0xc3d   : > { %v3573_v38 = vadd.f32 %v3558_v13, %v5227_v60 }
 0xc3f   : > { %3581 = vst.msk [vmem:[%s5442_s13 + $0x20] sm:$0xff] %vm427_vm0, %v3573_v38 }
 0xc7b   : > { %v3560_v5 = vpop.f32.mrf.mxu3 }
 0xc7c   : > { %v3561_v4 = vadd.f32 %v5434_v21, %v3560_v5 }
 0xc7e   : > { %v3574_v12 = vadd.f32 %v3561_v4, %v5255_v33 }
 0xc80   : > { %3582 = vst.msk [vmem:[%s5442_s13 + $0x28] sm:$0xff] %vm427_vm0, %v3574_v12 }
 0xc83   : > { %v3563_v52 = vpop.f32.mrf.mxu3 }
 0xc84   : > { %v3564_v36 = vadd.f32 %v5434_v21, %v3563_v52 }
 0xc86   : > { %v3575_v51 = vadd.f32 %v3564_v36, %v5266_v20 }
 0xc88   : > { %3583 = vst.msk [vmem:[%s5442_s13 + $0x30] sm:$0xff] %vm427_vm0, %v3575_v51 }
 0xc8b   : > { %v3566_v46 = vpop.f32.mrf.mxu3 }
 0xc8c   : > { %v3567_v45 = vadd.f32 %v5434_v21, %v3566_v46 }
 0xc8e   : > { %v3576_v60 = vadd.f32 %v3567_v45, %v5276_v11 }
 0xc90   : > { %3584 = vst.msk [vmem:[%s5442_s13 + $0x38] sm:$0xff] %vm427_vm0, %v3576_v60 }
 0xc91 PF: > { %s22_s21 = sadd.s32 1, %s4120_s21  }
 0xc92   : > { %p19_p4 = scmp.ge.s32.totalorder %s22_s21, 4  }
 0xc94   :  { %21 = sbr.rel (!%p19_p4) target bundleno = 1 (0x1), region = 101 }

</bundles_post_ra>
